<compile_context>
chip_gen: v7x
topology: tpu7x:2x2x1
jax: 0.10.0
libtpu: 0.0.40
codegen_flags: <defaults>
</compile_context>

<pallas_src>
import math

import jax
import jax.numpy as jnp
from jax import lax
from jax.experimental import pallas as pl
from jax.experimental.pallas import tpu as pltpu

# ----------------------------- model hyper-params ---------------------------
M = 100                      # conv out channels
M_PAD = 128                  # lane-padded channel count carried through the kernel
K = 5                        # conv kernel size
N_POOL = 14                  # maxpool window
POOL_STRIDE = 2
C_IN = 3
H_IN = W_IN = 32             # implied by the "(33 - k)" in the module
CONV_HW = H_IN - K + 1       # 28
CONV_W_PAD = 32              # conv width padded to a sublane multiple (garbage cols 28..31)
W_IN_PAD = CONV_W_PAD + K - 1            # 36 (zero-padded input width)
P_OUT = (CONV_HW - N_POOL) // POOL_STRIDE + 1           # 8
VEC_SIZE = M * int(((33 - K) / N_POOL) ** 2)            # 400 (same formula as module)
N_CLASSES = 10
PATCH_K = K * K * C_IN       # 75  (im2col contraction)
PATCH_ROWS = CONV_HW * CONV_W_PAD        # 896


# ------------------------------ Pallas kernels ------------------------------
def fused_conv_pool_kernel(p_ref, w_ref, b_ref, o_ref, conv_scr):
    """Fused im2col-conv + bias + ReLU + MaxPool2d(14, stride=2), one sample.

    p_ref:    (896, 75)   im2col patches, row = i*32 + j (j=28..31 are padding)
    w_ref:    (75, 128)   conv weight, channels zero-padded 100 -> 128
    b_ref:    (1, 128)    conv bias, zero-padded
    o_ref:    (64, 128)   pooled output, row = ph*8 + pj, lane-dense
    conv_scr: (896, 128)  VMEM scratch holding relu(conv) for the whole sample
    """
    # One lane-dense MXU pass for the whole sample's conv.
    acc = jnp.dot(p_ref[...], w_ref[...], preferred_element_type=jnp.float32)
    conv_scr[...] = jnp.maximum(acc + b_ref[...], 0.0)

    rows = []
    for ph in range(P_OUT):
        base = POOL_STRIDE * ph
        # Pool over kh: elementwise max of 14 aligned (32,128) row slabs.
        hp = conv_scr[base * CONV_W_PAD:(base + 1) * CONV_W_PAD, :]
        for kh in range(1, N_POOL):
            r0 = (base + kh) * CONV_W_PAD
            hp = jnp.maximum(hp, conv_scr[r0:r0 + CONV_W_PAD, :])
        # hp[w, c] = max_kh relu(conv)[2*ph+kh, w, c]; cols w>=28 are never read.
        row = jnp.concatenate(
            [jnp.max(hp[POOL_STRIDE * pj:POOL_STRIDE * pj + N_POOL, :],
                     axis=0, keepdims=True)
             for pj in range(P_OUT)],
            axis=0)                                   # (8, 128)
        rows.append(row)
    o_ref[...] = jnp.concatenate(rows, axis=0)        # (64, 128), single dense store


def fc_kernel(x_ref, w_ref, b_ref, o_ref):
    """Linear(400 -> 10) with bias.  x:(TR,400) w:(400,10) b:(1,10) o:(TR,10)."""
    o_ref[...] = jnp.dot(x_ref[...], w_ref[...],
                         preferred_element_type=jnp.float32) + b_ref[...]


# ------------------------------ pallas_call wrappers ------------------------
def fused_conv_relu_pool(patches, w1p, b1p):
    B = patches.shape[0]
    return pl.pallas_call(
        fused_conv_pool_kernel,
        out_shape=jax.ShapeDtypeStruct((B, P_OUT * P_OUT, M_PAD), jnp.float32),
        grid=(B,),
        in_specs=[
            pl.BlockSpec((None, PATCH_ROWS, PATCH_K), lambda b: (b, 0, 0)),
            pl.BlockSpec((PATCH_K, M_PAD), lambda b: (0, 0)),   # resident weight
            pl.BlockSpec((1, M_PAD), lambda b: (0, 0)),         # resident bias
        ],
        out_specs=pl.BlockSpec((None, P_OUT * P_OUT, M_PAD), lambda b: (b, 0, 0)),
        scratch_shapes=[pltpu.VMEM((PATCH_ROWS, M_PAD), jnp.float32)],
        compiler_params=pltpu.CompilerParams(
            dimension_semantics=("parallel",)),      # sample-parallel (v7x 2 TCs)
    )(patches, w1p, b1p)


def fc(x_flat, w_in_out, b_row):
    R = x_flat.shape[0]                  # R = B*16, always a multiple of 8
    TR = R if R <= 512 else 512
    return pl.pallas_call(
        fc_kernel,
        out_shape=jax.ShapeDtypeStruct((R, N_CLASSES), jnp.float32),
        grid=(pl.cdiv(R, TR),),
        in_specs=[
            pl.BlockSpec((TR, VEC_SIZE), lambda i: (i, 0)),
            pl.BlockSpec((VEC_SIZE, N_CLASSES), lambda i: (0, 0)),  # resident
            pl.BlockSpec((1, N_CLASSES), lambda i: (0, 0)),         # resident
        ],
        out_specs=pl.BlockSpec((TR, N_CLASSES), lambda i: (i, 0)),
        compiler_params=pltpu.CompilerParams(dimension_semantics=("parallel",)),
    )(x_flat, w_in_out, b_row)


# ------------------------------ full forward ---------------------------------
@jax.jit
def net_forward(x_nchw, w1_oihw, b1, w2_oi, b2):
    B = x_nchw.shape[0]

    # layout prep (cheap XLA glue, all tiny): NHWC, im2col patches, padded weights.
    x_nhwc = jnp.transpose(x_nchw, (0, 2, 3, 1))                   # (B,32,32,3)
    xp = jnp.pad(x_nhwc, ((0, 0), (0, 0), (0, W_IN_PAD - W_IN), (0, 0)))  # (B,32,36,3)
    # patches[b, i*32+j, (kh*5+kw)*3+c] = x[b, i+kh, j+kw, c]   (j=28..31 padding)
    patches = jnp.concatenate(
        [xp[:, kh:kh + CONV_HW, kw:kw + CONV_W_PAD, :]
         for kh in range(K) for kw in range(K)],
        axis=-1).reshape(B, PATCH_ROWS, PATCH_K)                   # (B,896,75)

    w1r = jnp.transpose(w1_oihw, (2, 3, 1, 0)).reshape(PATCH_K, M) # (75,100), HWIO order
    w1p = jnp.pad(w1r, ((0, 0), (0, M_PAD - M)))                   # (75,128)
    b1p = jnp.pad(b1, (0, M_PAD - M)).reshape(1, M_PAD)            # (1,128)

    pooled = fused_conv_relu_pool(patches, w1p, b1p)               # (B,64,128)

    # Reproduce torch's x.view(-1, vec_size) on a contiguous NCHW tensor.
    # Padded channels (exact zeros) must be dropped before the flatten.
    pooled = pooled.reshape(B, P_OUT, P_OUT, M_PAD)[..., :M]       # (B,8,8,100)
    pooled_nchw = jnp.transpose(pooled, (0, 3, 1, 2))              # (B,100,8,8)
    flat = pooled_nchw.reshape(-1, VEC_SIZE)                       # (B*16,400)

    w2_io = w2_oi.T                                                # (400,10)
    b2_row = b2.reshape(1, N_CLASSES)
    return fc(flat, w2_io, b2_row)                                 # (B*16,10)


# ------------------------------ reference (pure JAX) -------------------------
def net_forward_ref(x, w1, b1, w2, b2):
    conv = lax.conv_general_dilated(
        x, w1, window_strides=(1, 1), padding="VALID",
        dimension_numbers=("NCHW", "OIHW", "NCHW"))
    conv = jnp.maximum(conv + b1[None, :, None, None], 0.0)
    pooled = lax.reduce_window(conv, -jnp.inf, lax.max,
                               (1, 1, N_POOL, N_POOL),
                               (1, 1, POOL_STRIDE, POOL_STRIDE), "VALID")
    flat = pooled.reshape(-1, VEC_SIZE)
    return flat @ w2.T + b2[None, :]


# ------------------------------ main -----------------------------------------
if __name__ == "__main__":
    key = jax.random.PRNGKey(0)
    k1, k2, k3, k4, k5 = jax.random.split(key, 5)

    # Deterministic PyTorch-style (kaiming-uniform-ish) init.
    fan1 = C_IN * K * K
    bound1 = 1.0 / math.sqrt(fan1)
    w1 = jax.random.uniform(k1, (M, C_IN, K, K), jnp.float32, -bound1, bound1)
    b1 = jax.random.uniform(k2, (M,), jnp.float32, -bound1, bound1)

    bound2 = 1.0 / math.sqrt(VEC_SIZE)
    w2 = jax.random.uniform(k3, (N_CLASSES, VEC_SIZE), jnp.float32, -bound2, bound2)
    b2 = jax.random.uniform(k4, (N_CLASSES,), jnp.float32, -bound2, bound2)

    B = 2
    x = jax.random.normal(k5, (B, C_IN, H_IN, W_IN), jnp.float32)

    out = net_forward(x, w1, b1, w2, b2)
    out = jax.block_until_ready(out)

    ref = net_forward_ref(x, w1, b1, w2, b2)
    assert out.shape == (B * 16, N_CLASSES), out.shape
    assert jnp.allclose(out, ref, atol=1e-3, rtol=1e-3), \
        float(jnp.max(jnp.abs(out - ref)))

    print("KERNEL_OK")
</pallas_src>

<mosaic_0001>
module attributes {stable_mosaic.version = 11 : i64} {
  func.func @fused_conv_pool_kernel(%arg0: i32, %arg1: memref<1x896x75xf32, #tpu.memory_space<vmem>>, %arg2: memref<75x128xf32, #tpu.memory_space<vmem>>, %arg3: memref<1x128xf32, #tpu.memory_space<vmem>>, %arg4: memref<1x64x128xf32, #tpu.memory_space<vmem>>, %arg5: memref<896x128xf32, #tpu.memory_space<vmem>>) attributes {dimension_semantics = [#tpu.dimension_semantics<parallel>], iteration_bounds = array<i64: 2>, scalar_prefetch = 0 : i64, scratch_operands = 1 : i64, tpu.core_type = #tpu.core_type<tc>, window_params = [{transform_indices = @transform_0, window_bounds = array<i64: 1, 896, 75>}, {pipeline_mode = #tpu.pipeline_mode<synchronous>, transform_indices = @transform_1, window_bounds = array<i64: 75, 128>}, {pipeline_mode = #tpu.pipeline_mode<synchronous>, transform_indices = @transform_2, window_bounds = array<i64: 1, 128>}, {transform_indices = @transform_3, window_bounds = array<i64: 1, 64, 128>}]} {
    %c0 = arith.constant 0 : index
    %c0_0 = arith.constant 0 : index
    %c0_1 = arith.constant 0 : index
    %0 = vector.load %arg1[%c0, %c0_0, %c0_1] : memref<1x896x75xf32, #tpu.memory_space<vmem>>, vector<1x896x75xf32>
    %1 = vector.shape_cast %0 : vector<1x896x75xf32> to vector<896x75xf32>
    %c0_2 = arith.constant 0 : index
    %c0_3 = arith.constant 0 : index
    %2 = vector.load %arg2[%c0_2, %c0_3] : memref<75x128xf32, #tpu.memory_space<vmem>>, vector<75x128xf32>
    %cst = arith.constant dense<0.000000e+00> : vector<896x128xf32>
    %3 = tpu.matmul %1, %2, %cst {dimension_numbers = #tpu.dot_dimension_numbers<[1], [0], [0], [1], [0, 0, 1, 1], [], []>} : vector<896x75xf32>, vector<75x128xf32>, vector<896x128xf32> -> vector<896x128xf32>
    %c0_4 = arith.constant 0 : index
    %c0_5 = arith.constant 0 : index
    %4 = vector.load %arg3[%c0_4, %c0_5] : memref<1x128xf32, #tpu.memory_space<vmem>>, vector<1x128xf32>
    %5 = vector.broadcast %4 : vector<1x128xf32> to vector<896x128xf32>
    %6 = arith.addf %3, %5 : vector<896x128xf32>
    %cst_6 = arith.constant 0.000000e+00 : f32
    %7 = vector.broadcast %cst_6 : f32 to vector<896x128xf32>
    %8 = arith.maximumf %6, %7 : vector<896x128xf32>
    %c0_7 = arith.constant 0 : index
    %c0_8 = arith.constant 0 : index
    %9 = vector.load %arg5[%c0_7, %c0_8] : memref<896x128xf32, #tpu.memory_space<vmem>>, vector<896x128xf32>
    tpu.vector_store %arg5[%c0_7, %c0_8], %8 {strides = array<i32>} : memref<896x128xf32, #tpu.memory_space<vmem>>, vector<896x128xf32>,
    %c0_9 = arith.constant 0 : index
    %c0_10 = arith.constant 0 : index
    %10 = vector.load %arg5[%c0_9, %c0_10] : memref<896x128xf32, #tpu.memory_space<vmem>>, vector<32x128xf32>
    %c32 = arith.constant 32 : index
    %c0_11 = arith.constant 0 : index
    %11 = vector.load %arg5[%c32, %c0_11] : memref<896x128xf32, #tpu.memory_space<vmem>>, vector<32x128xf32>
    %12 = arith.maximumf %10, %11 : vector<32x128xf32>
    %c64 = arith.constant 64 : index
    %c0_12 = arith.constant 0 : index
    %13 = vector.load %arg5[%c64, %c0_12] : memref<896x128xf32, #tpu.memory_space<vmem>>, vector<32x128xf32>
    %14 = arith.maximumf %12, %13 : vector<32x128xf32>
    %c96 = arith.constant 96 : index
    %c0_13 = arith.constant 0 : index
    %15 = vector.load %arg5[%c96, %c0_13] : memref<896x128xf32, #tpu.memory_space<vmem>>, vector<32x128xf32>
    %16 = arith.maximumf %14, %15 : vector<32x128xf32>
    %c128 = arith.constant 128 : index
    %c0_14 = arith.constant 0 : index
    %17 = vector.load %arg5[%c128, %c0_14] : memref<896x128xf32, #tpu.memory_space<vmem>>, vector<32x128xf32>
    %18 = arith.maximumf %16, %17 : vector<32x128xf32>
    %c160 = arith.constant 160 : index
    %c0_15 = arith.constant 0 : index
    %19 = vector.load %arg5[%c160, %c0_15] : memref<896x128xf32, #tpu.memory_space<vmem>>, vector<32x128xf32>
    %20 = arith.maximumf %18, %19 : vector<32x128xf32>
    %c192 = arith.constant 192 : index
    %c0_16 = arith.constant 0 : index
    %21 = vector.load %arg5[%c192, %c0_16] : memref<896x128xf32, #tpu.memory_space<vmem>>, vector<32x128xf32>
    %22 = arith.maximumf %20, %21 : vector<32x128xf32>
    %c224 = arith.constant 224 : index
    %c0_17 = arith.constant 0 : index
    %23 = vector.load %arg5[%c224, %c0_17] : memref<896x128xf32, #tpu.memory_space<vmem>>, vector<32x128xf32>
    %24 = arith.maximumf %22, %23 : vector<32x128xf32>
    %c256 = arith.constant 256 : index
    %c0_18 = arith.constant 0 : index
    %25 = vector.load %arg5[%c256, %c0_18] : memref<896x128xf32, #tpu.memory_space<vmem>>, vector<32x128xf32>
    %26 = arith.maximumf %24, %25 : vector<32x128xf32>
    %c288 = arith.constant 288 : index
    %c0_19 = arith.constant 0 : index
    %27 = vector.load %arg5[%c288, %c0_19] : memref<896x128xf32, #tpu.memory_space<vmem>>, vector<32x128xf32>
    %28 = arith.maximumf %26, %27 : vector<32x128xf32>
    %c320 = arith.constant 320 : index
    %c0_20 = arith.constant 0 : index
    %29 = vector.load %arg5[%c320, %c0_20] : memref<896x128xf32, #tpu.memory_space<vmem>>, vector<32x128xf32>
    %30 = arith.maximumf %28, %29 : vector<32x128xf32>
    %c352 = arith.constant 352 : index
    %c0_21 = arith.constant 0 : index
    %31 = vector.load %arg5[%c352, %c0_21] : memref<896x128xf32, #tpu.memory_space<vmem>>, vector<32x128xf32>
    %32 = arith.maximumf %30, %31 : vector<32x128xf32>
    %c384 = arith.constant 384 : index
    %c0_22 = arith.constant 0 : index
    %33 = vector.load %arg5[%c384, %c0_22] : memref<896x128xf32, #tpu.memory_space<vmem>>, vector<32x128xf32>
    %34 = arith.maximumf %32, %33 : vector<32x128xf32>
    %c416 = arith.constant 416 : index
    %c0_23 = arith.constant 0 : index
    %35 = vector.load %arg5[%c416, %c0_23] : memref<896x128xf32, #tpu.memory_space<vmem>>, vector<32x128xf32>
    %36 = arith.maximumf %34, %35 : vector<32x128xf32>
    %37 = vector.extract_strided_slice %36 {offsets = [0, 0], sizes = [14, 128], strides = [1, 1]} : vector<32x128xf32> to vector<14x128xf32>
    %cst_24 = arith.constant dense<0xFF800000> : vector<128xf32>
    %38 = vector.multi_reduction <maximumf>, %37, %cst_24 [0] : vector<14x128xf32> to vector<128xf32>
    %39 = vector.shape_cast %38 : vector<128xf32> to vector<1x128xf32>
    %40 = vector.extract_strided_slice %36 {offsets = [2, 0], sizes = [14, 128], strides = [1, 1]} : vector<32x128xf32> to vector<14x128xf32>
    %cst_25 = arith.constant dense<0xFF800000> : vector<128xf32>
    %41 = vector.multi_reduction <maximumf>, %40, %cst_25 [0] : vector<14x128xf32> to vector<128xf32>
    %42 = vector.shape_cast %41 : vector<128xf32> to vector<1x128xf32>
    %43 = vector.extract_strided_slice %36 {offsets = [4, 0], sizes = [14, 128], strides = [1, 1]} : vector<32x128xf32> to vector<14x128xf32>
    %cst_26 = arith.constant dense<0xFF800000> : vector<128xf32>
    %44 = vector.multi_reduction <maximumf>, %43, %cst_26 [0] : vector<14x128xf32> to vector<128xf32>
    %45 = vector.shape_cast %44 : vector<128xf32> to vector<1x128xf32>
    %46 = vector.extract_strided_slice %36 {offsets = [6, 0], sizes = [14, 128], strides = [1, 1]} : vector<32x128xf32> to vector<14x128xf32>
    %cst_27 = arith.constant dense<0xFF800000> : vector<128xf32>
    %47 = vector.multi_reduction <maximumf>, %46, %cst_27 [0] : vector<14x128xf32> to vector<128xf32>
    %48 = vector.shape_cast %47 : vector<128xf32> to vector<1x128xf32>
    %49 = vector.extract_strided_slice %36 {offsets = [8, 0], sizes = [14, 128], strides = [1, 1]} : vector<32x128xf32> to vector<14x128xf32>
    %cst_28 = arith.constant dense<0xFF800000> : vector<128xf32>
    %50 = vector.multi_reduction <maximumf>, %49, %cst_28 [0] : vector<14x128xf32> to vector<128xf32>
    %51 = vector.shape_cast %50 : vector<128xf32> to vector<1x128xf32>
    %52 = vector.extract_strided_slice %36 {offsets = [10, 0], sizes = [14, 128], strides = [1, 1]} : vector<32x128xf32> to vector<14x128xf32>
    %cst_29 = arith.constant dense<0xFF800000> : vector<128xf32>
    %53 = vector.multi_reduction <maximumf>, %52, %cst_29 [0] : vector<14x128xf32> to vector<128xf32>
    %54 = vector.shape_cast %53 : vector<128xf32> to vector<1x128xf32>
    %55 = vector.extract_strided_slice %36 {offsets = [12, 0], sizes = [14, 128], strides = [1, 1]} : vector<32x128xf32> to vector<14x128xf32>
    %cst_30 = arith.constant dense<0xFF800000> : vector<128xf32>
    %56 = vector.multi_reduction <maximumf>, %55, %cst_30 [0] : vector<14x128xf32> to vector<128xf32>
    %57 = vector.shape_cast %56 : vector<128xf32> to vector<1x128xf32>
    %58 = vector.extract_strided_slice %36 {offsets = [14, 0], sizes = [14, 128], strides = [1, 1]} : vector<32x128xf32> to vector<14x128xf32>
    %cst_31 = arith.constant dense<0xFF800000> : vector<128xf32>
    %59 = vector.multi_reduction <maximumf>, %58, %cst_31 [0] : vector<14x128xf32> to vector<128xf32>
    %60 = vector.shape_cast %59 : vector<128xf32> to vector<1x128xf32>
    %61 = tpu.concatenate %39, %42, %45, %48, %51, %54, %57, %60 in 0 : vector<1x128xf32>, vector<1x128xf32>, vector<1x128xf32>, vector<1x128xf32>, vector<1x128xf32>, vector<1x128xf32>, vector<1x128xf32>, vector<1x128xf32> -> vector<8x128xf32>
    %c64_32 = arith.constant 64 : index
    %c0_33 = arith.constant 0 : index
    %62 = vector.load %arg5[%c64_32, %c0_33] : memref<896x128xf32, #tpu.memory_space<vmem>>, vector<32x128xf32>
    %c96_34 = arith.constant 96 : index
    %c0_35 = arith.constant 0 : index
    %63 = vector.load %arg5[%c96_34, %c0_35] : memref<896x128xf32, #tpu.memory_space<vmem>>, vector<32x128xf32>
    %64 = arith.maximumf %62, %63 : vector<32x128xf32>
    %c128_36 = arith.constant 128 : index
    %c0_37 = arith.constant 0 : index
    %65 = vector.load %arg5[%c128_36, %c0_37] : memref<896x128xf32, #tpu.memory_space<vmem>>, vector<32x128xf32>
    %66 = arith.maximumf %64, %65 : vector<32x128xf32>
    %c160_38 = arith.constant 160 : index
    %c0_39 = arith.constant 0 : index
    %67 = vector.load %arg5[%c160_38, %c0_39] : memref<896x128xf32, #tpu.memory_space<vmem>>, vector<32x128xf32>
    %68 = arith.maximumf %66, %67 : vector<32x128xf32>
    %c192_40 = arith.constant 192 : index
    %c0_41 = arith.constant 0 : index
    %69 = vector.load %arg5[%c192_40, %c0_41] : memref<896x128xf32, #tpu.memory_space<vmem>>, vector<32x128xf32>
    %70 = arith.maximumf %68, %69 : vector<32x128xf32>
    %c224_42 = arith.constant 224 : index
    %c0_43 = arith.constant 0 : index
    %71 = vector.load %arg5[%c224_42, %c0_43] : memref<896x128xf32, #tpu.memory_space<vmem>>, vector<32x128xf32>
    %72 = arith.maximumf %70, %71 : vector<32x128xf32>
    %c256_44 = arith.constant 256 : index
    %c0_45 = arith.constant 0 : index
    %73 = vector.load %arg5[%c256_44, %c0_45] : memref<896x128xf32, #tpu.memory_space<vmem>>, vector<32x128xf32>
    %74 = arith.maximumf %72, %73 : vector<32x128xf32>
    %c288_46 = arith.constant 288 : index
    %c0_47 = arith.constant 0 : index
    %75 = vector.load %arg5[%c288_46, %c0_47] : memref<896x128xf32, #tpu.memory_space<vmem>>, vector<32x128xf32>
    %76 = arith.maximumf %74, %75 : vector<32x128xf32>
    %c320_48 = arith.constant 320 : index
    %c0_49 = arith.constant 0 : index
    %77 = vector.load %arg5[%c320_48, %c0_49] : memref<896x128xf32, #tpu.memory_space<vmem>>, vector<32x128xf32>
    %78 = arith.maximumf %76, %77 : vector<32x128xf32>
    %c352_50 = arith.constant 352 : index
    %c0_51 = arith.constant 0 : index
    %79 = vector.load %arg5[%c352_50, %c0_51] : memref<896x128xf32, #tpu.memory_space<vmem>>, vector<32x128xf32>
    %80 = arith.maximumf %78, %79 : vector<32x128xf32>
    %c384_52 = arith.constant 384 : index
    %c0_53 = arith.constant 0 : index
    %81 = vector.load %arg5[%c384_52, %c0_53] : memref<896x128xf32, #tpu.memory_space<vmem>>, vector<32x128xf32>
    %82 = arith.maximumf %80, %81 : vector<32x128xf32>
    %c416_54 = arith.constant 416 : index
    %c0_55 = arith.constant 0 : index
    %83 = vector.load %arg5[%c416_54, %c0_55] : memref<896x128xf32, #tpu.memory_space<vmem>>, vector<32x128xf32>
    %84 = arith.maximumf %82, %83 : vector<32x128xf32>
    %c448 = arith.constant 448 : index
    %c0_56 = arith.constant 0 : index
    %85 = vector.load %arg5[%c448, %c0_56] : memref<896x128xf32, #tpu.memory_space<vmem>>, vector<32x128xf32>
    %86 = arith.maximumf %84, %85 : vector<32x128xf32>
    %c480 = arith.constant 480 : index
    %c0_57 = arith.constant 0 : index
    %87 = vector.load %arg5[%c480, %c0_57] : memref<896x128xf32, #tpu.memory_space<vmem>>, vector<32x128xf32>
    %88 = arith.maximumf %86, %87 : vector<32x128xf32>
    %89 = vector.extract_strided_slice %88 {offsets = [0, 0], sizes = [14, 128], strides = [1, 1]} : vector<32x128xf32> to vector<14x128xf32>
    %cst_58 = arith.constant dense<0xFF800000> : vector<128xf32>
    %90 = vector.multi_reduction <maximumf>, %89, %cst_58 [0] : vector<14x128xf32> to vector<128xf32>
    %91 = vector.shape_cast %90 : vector<128xf32> to vector<1x128xf32>
    %92 = vector.extract_strided_slice %88 {offsets = [2, 0], sizes = [14, 128], strides = [1, 1]} : vector<32x128xf32> to vector<14x128xf32>
    %cst_59 = arith.constant dense<0xFF800000> : vector<128xf32>
    %93 = vector.multi_reduction <maximumf>, %92, %cst_59 [0] : vector<14x128xf32> to vector<128xf32>
    %94 = vector.shape_cast %93 : vector<128xf32> to vector<1x128xf32>
    %95 = vector.extract_strided_slice %88 {offsets = [4, 0], sizes = [14, 128], strides = [1, 1]} : vector<32x128xf32> to vector<14x128xf32>
    %cst_60 = arith.constant dense<0xFF800000> : vector<128xf32>
    %96 = vector.multi_reduction <maximumf>, %95, %cst_60 [0] : vector<14x128xf32> to vector<128xf32>
    %97 = vector.shape_cast %96 : vector<128xf32> to vector<1x128xf32>
    %98 = vector.extract_strided_slice %88 {offsets = [6, 0], sizes = [14, 128], strides = [1, 1]} : vector<32x128xf32> to vector<14x128xf32>
    %cst_61 = arith.constant dense<0xFF800000> : vector<128xf32>
    %99 = vector.multi_reduction <maximumf>, %98, %cst_61 [0] : vector<14x128xf32> to vector<128xf32>
    %100 = vector.shape_cast %99 : vector<128xf32> to vector<1x128xf32>
    %101 = vector.extract_strided_slice %88 {offsets = [8, 0], sizes = [14, 128], strides = [1, 1]} : vector<32x128xf32> to vector<14x128xf32>
    %cst_62 = arith.constant dense<0xFF800000> : vector<128xf32>
    %102 = vector.multi_reduction <maximumf>, %101, %cst_62 [0] : vector<14x128xf32> to vector<128xf32>
    %103 = vector.shape_cast %102 : vector<128xf32> to vector<1x128xf32>
    %104 = vector.extract_strided_slice %88 {offsets = [10, 0], sizes = [14, 128], strides = [1, 1]} : vector<32x128xf32> to vector<14x128xf32>
    %cst_63 = arith.constant dense<0xFF800000> : vector<128xf32>
    %105 = vector.multi_reduction <maximumf>, %104, %cst_63 [0] : vector<14x128xf32> to vector<128xf32>
    %106 = vector.shape_cast %105 : vector<128xf32> to vector<1x128xf32>
    %107 = vector.extract_strided_slice %88 {offsets = [12, 0], sizes = [14, 128], strides = [1, 1]} : vector<32x128xf32> to vector<14x128xf32>
    %cst_64 = arith.constant dense<0xFF800000> : vector<128xf32>
    %108 = vector.multi_reduction <maximumf>, %107, %cst_64 [0] : vector<14x128xf32> to vector<128xf32>
    %109 = vector.shape_cast %108 : vector<128xf32> to vector<1x128xf32>
    %110 = vector.extract_strided_slice %88 {offsets = [14, 0], sizes = [14, 128], strides = [1, 1]} : vector<32x128xf32> to vector<14x128xf32>
    %cst_65 = arith.constant dense<0xFF800000> : vector<128xf32>
    %111 = vector.multi_reduction <maximumf>, %110, %cst_65 [0] : vector<14x128xf32> to vector<128xf32>
    %112 = vector.shape_cast %111 : vector<128xf32> to vector<1x128xf32>
    %113 = tpu.concatenate %91, %94, %97, %100, %103, %106, %109, %112 in 0 : vector<1x128xf32>, vector<1x128xf32>, vector<1x128xf32>, vector<1x128xf32>, vector<1x128xf32>, vector<1x128xf32>, vector<1x128xf32>, vector<1x128xf32> -> vector<8x128xf32>
    %c128_66 = arith.constant 128 : index
    %c0_67 = arith.constant 0 : index
    %114 = vector.load %arg5[%c128_66, %c0_67] : memref<896x128xf32, #tpu.memory_space<vmem>>, vector<32x128xf32>
    %c160_68 = arith.constant 160 : index
    %c0_69 = arith.constant 0 : index
    %115 = vector.load %arg5[%c160_68, %c0_69] : memref<896x128xf32, #tpu.memory_space<vmem>>, vector<32x128xf32>
    %116 = arith.maximumf %114, %115 : vector<32x128xf32>
    %c192_70 = arith.constant 192 : index
    %c0_71 = arith.constant 0 : index
    %117 = vector.load %arg5[%c192_70, %c0_71] : memref<896x128xf32, #tpu.memory_space<vmem>>, vector<32x128xf32>
    %118 = arith.maximumf %116, %117 : vector<32x128xf32>
    %c224_72 = arith.constant 224 : index
    %c0_73 = arith.constant 0 : index
    %119 = vector.load %arg5[%c224_72, %c0_73] : memref<896x128xf32, #tpu.memory_space<vmem>>, vector<32x128xf32>
    %120 = arith.maximumf %118, %119 : vector<32x128xf32>
    %c256_74 = arith.constant 256 : index
    %c0_75 = arith.constant 0 : index
    %121 = vector.load %arg5[%c256_74, %c0_75] : memref<896x128xf32, #tpu.memory_space<vmem>>, vector<32x128xf32>
    %122 = arith.maximumf %120, %121 : vector<32x128xf32>
    %c288_76 = arith.constant 288 : index
    %c0_77 = arith.constant 0 : index
    %123 = vector.load %arg5[%c288_76, %c0_77] : memref<896x128xf32, #tpu.memory_space<vmem>>, vector<32x128xf32>
    %124 = arith.maximumf %122, %123 : vector<32x128xf32>
    %c320_78 = arith.constant 320 : index
    %c0_79 = arith.constant 0 : index
    %125 = vector.load %arg5[%c320_78, %c0_79] : memref<896x128xf32, #tpu.memory_space<vmem>>, vector<32x128xf32>
    %126 = arith.maximumf %124, %125 : vector<32x128xf32>
    %c352_80 = arith.constant 352 : index
    %c0_81 = arith.constant 0 : index
    %127 = vector.load %arg5[%c352_80, %c0_81] : memref<896x128xf32, #tpu.memory_space<vmem>>, vector<32x128xf32>
    %128 = arith.maximumf %126, %127 : vector<32x128xf32>
    %c384_82 = arith.constant 384 : index
    %c0_83 = arith.constant 0 : index
    %129 = vector.load %arg5[%c384_82, %c0_83] : memref<896x128xf32, #tpu.memory_space<vmem>>, vector<32x128xf32>
    %130 = arith.maximumf %128, %129 : vector<32x128xf32>
    %c416_84 = arith.constant 416 : index
    %c0_85 = arith.constant 0 : index
    %131 = vector.load %arg5[%c416_84, %c0_85] : memref<896x128xf32, #tpu.memory_space<vmem>>, vector<32x128xf32>
    %132 = arith.maximumf %130, %131 : vector<32x128xf32>
    %c448_86 = arith.constant 448 : index
    %c0_87 = arith.constant 0 : index
    %133 = vector.load %arg5[%c448_86, %c0_87] : memref<896x128xf32, #tpu.memory_space<vmem>>, vector<32x128xf32>
    %134 = arith.maximumf %132, %133 : vector<32x128xf32>
    %c480_88 = arith.constant 480 : index
    %c0_89 = arith.constant 0 : index
    %135 = vector.load %arg5[%c480_88, %c0_89] : memref<896x128xf32, #tpu.memory_space<vmem>>, vector<32x128xf32>
    %136 = arith.maximumf %134, %135 : vector<32x128xf32>
    %c512 = arith.constant 512 : index
    %c0_90 = arith.constant 0 : index
    %137 = vector.load %arg5[%c512, %c0_90] : memref<896x128xf32, #tpu.memory_space<vmem>>, vector<32x128xf32>
    %138 = arith.maximumf %136, %137 : vector<32x128xf32>
    %c544 = arith.constant 544 : index
    %c0_91 = arith.constant 0 : index
    %139 = vector.load %arg5[%c544, %c0_91] : memref<896x128xf32, #tpu.memory_space<vmem>>, vector<32x128xf32>
    %140 = arith.maximumf %138, %139 : vector<32x128xf32>
    %141 = vector.extract_strided_slice %140 {offsets = [0, 0], sizes = [14, 128], strides = [1, 1]} : vector<32x128xf32> to vector<14x128xf32>
    %cst_92 = arith.constant dense<0xFF800000> : vector<128xf32>
    %142 = vector.multi_reduction <maximumf>, %141, %cst_92 [0] : vector<14x128xf32> to vector<128xf32>
    %143 = vector.shape_cast %142 : vector<128xf32> to vector<1x128xf32>
    %144 = vector.extract_strided_slice %140 {offsets = [2, 0], sizes = [14, 128], strides = [1, 1]} : vector<32x128xf32> to vector<14x128xf32>
    %cst_93 = arith.constant dense<0xFF800000> : vector<128xf32>
    %145 = vector.multi_reduction <maximumf>, %144, %cst_93 [0] : vector<14x128xf32> to vector<128xf32>
    %146 = vector.shape_cast %145 : vector<128xf32> to vector<1x128xf32>
    %147 = vector.extract_strided_slice %140 {offsets = [4, 0], sizes = [14, 128], strides = [1, 1]} : vector<32x128xf32> to vector<14x128xf32>
    %cst_94 = arith.constant dense<0xFF800000> : vector<128xf32>
    %148 = vector.multi_reduction <maximumf>, %147, %cst_94 [0] : vector<14x128xf32> to vector<128xf32>
    %149 = vector.shape_cast %148 : vector<128xf32> to vector<1x128xf32>
    %150 = vector.extract_strided_slice %140 {offsets = [6, 0], sizes = [14, 128], strides = [1, 1]} : vector<32x128xf32> to vector<14x128xf32>
    %cst_95 = arith.constant dense<0xFF800000> : vector<128xf32>
    %151 = vector.multi_reduction <maximumf>, %150, %cst_95 [0] : vector<14x128xf32> to vector<128xf32>
    %152 = vector.shape_cast %151 : vector<128xf32> to vector<1x128xf32>
    %153 = vector.extract_strided_slice %140 {offsets = [8, 0], sizes = [14, 128], strides = [1, 1]} : vector<32x128xf32> to vector<14x128xf32>
    %cst_96 = arith.constant dense<0xFF800000> : vector<128xf32>
    %154 = vector.multi_reduction <maximumf>, %153, %cst_96 [0] : vector<14x128xf32> to vector<128xf32>
    %155 = vector.shape_cast %154 : vector<128xf32> to vector<1x128xf32>
    %156 = vector.extract_strided_slice %140 {offsets = [10, 0], sizes = [14, 128], strides = [1, 1]} : vector<32x128xf32> to vector<14x128xf32>
    %cst_97 = arith.constant dense<0xFF800000> : vector<128xf32>
    %157 = vector.multi_reduction <maximumf>, %156, %cst_97 [0] : vector<14x128xf32> to vector<128xf32>
    %158 = vector.shape_cast %157 : vector<128xf32> to vector<1x128xf32>
    %159 = vector.extract_strided_slice %140 {offsets = [12, 0], sizes = [14, 128], strides = [1, 1]} : vector<32x128xf32> to vector<14x128xf32>
    %cst_98 = arith.constant dense<0xFF800000> : vector<128xf32>
    %160 = vector.multi_reduction <maximumf>, %159, %cst_98 [0] : vector<14x128xf32> to vector<128xf32>
    %161 = vector.shape_cast %160 : vector<128xf32> to vector<1x128xf32>
    %162 = vector.extract_strided_slice %140 {offsets = [14, 0], sizes = [14, 128], strides = [1, 1]} : vector<32x128xf32> to vector<14x128xf32>
    %cst_99 = arith.constant dense<0xFF800000> : vector<128xf32>
    %163 = vector.multi_reduction <maximumf>, %162, %cst_99 [0] : vector<14x128xf32> to vector<128xf32>
    %164 = vector.shape_cast %163 : vector<128xf32> to vector<1x128xf32>
    %165 = tpu.concatenate %143, %146, %149, %152, %155, %158, %161, %164 in 0 : vector<1x128xf32>, vector<1x128xf32>, vector<1x128xf32>, vector<1x128xf32>, vector<1x128xf32>, vector<1x128xf32>, vector<1x128xf32>, vector<1x128xf32> -> vector<8x128xf32>
    %c192_100 = arith.constant 192 : index
    %c0_101 = arith.constant 0 : index
    %166 = vector.load %arg5[%c192_100, %c0_101] : memref<896x128xf32, #tpu.memory_space<vmem>>, vector<32x128xf32>
    %c224_102 = arith.constant 224 : index
    %c0_103 = arith.constant 0 : index
    %167 = vector.load %arg5[%c224_102, %c0_103] : memref<896x128xf32, #tpu.memory_space<vmem>>, vector<32x128xf32>
    %168 = arith.maximumf %166, %167 : vector<32x128xf32>
    %c256_104 = arith.constant 256 : index
    %c0_105 = arith.constant 0 : index
    %169 = vector.load %arg5[%c256_104, %c0_105] : memref<896x128xf32, #tpu.memory_space<vmem>>, vector<32x128xf32>
    %170 = arith.maximumf %168, %169 : vector<32x128xf32>
    %c288_106 = arith.constant 288 : index
    %c0_107 = arith.constant 0 : index
    %171 = vector.load %arg5[%c288_106, %c0_107] : memref<896x128xf32, #tpu.memory_space<vmem>>, vector<32x128xf32>
    %172 = arith.maximumf %170, %171 : vector<32x128xf32>
    %c320_108 = arith.constant 320 : index
    %c0_109 = arith.constant 0 : index
    %173 = vector.load %arg5[%c320_108, %c0_109] : memref<896x128xf32, #tpu.memory_space<vmem>>, vector<32x128xf32>
    %174 = arith.maximumf %172, %173 : vector<32x128xf32>
    %c352_110 = arith.constant 352 : index
    %c0_111 = arith.constant 0 : index
    %175 = vector.load %arg5[%c352_110, %c0_111] : memref<896x128xf32, #tpu.memory_space<vmem>>, vector<32x128xf32>
    %176 = arith.maximumf %174, %175 : vector<32x128xf32>
    %c384_112 = arith.constant 384 : index
    %c0_113 = arith.constant 0 : index
    %177 = vector.load %arg5[%c384_112, %c0_113] : memref<896x128xf32, #tpu.memory_space<vmem>>, vector<32x128xf32>
    %178 = arith.maximumf %176, %177 : vector<32x128xf32>
    %c416_114 = arith.constant 416 : index
    %c0_115 = arith.constant 0 : index
    %179 = vector.load %arg5[%c416_114, %c0_115] : memref<896x128xf32, #tpu.memory_space<vmem>>, vector<32x128xf32>
    %180 = arith.maximumf %178, %179 : vector<32x128xf32>
    %c448_116 = arith.constant 448 : index
    %c0_117 = arith.constant 0 : index
    %181 = vector.load %arg5[%c448_116, %c0_117] : memref<896x128xf32, #tpu.memory_space<vmem>>, vector<32x128xf32>
    %182 = arith.maximumf %180, %181 : vector<32x128xf32>
    %c480_118 = arith.constant 480 : index
    %c0_119 = arith.constant 0 : index
    %183 = vector.load %arg5[%c480_118, %c0_119] : memref<896x128xf32, #tpu.memory_space<vmem>>, vector<32x128xf32>
    %184 = arith.maximumf %182, %183 : vector<32x128xf32>
    %c512_120 = arith.constant 512 : index
    %c0_121 = arith.constant 0 : index
    %185 = vector.load %arg5[%c512_120, %c0_121] : memref<896x128xf32, #tpu.memory_space<vmem>>, vector<32x128xf32>
    %186 = arith.maximumf %184, %185 : vector<32x128xf32>
    %c544_122 = arith.constant 544 : index
    %c0_123 = arith.constant 0 : index
    %187 = vector.load %arg5[%c544_122, %c0_123] : memref<896x128xf32, #tpu.memory_space<vmem>>, vector<32x128xf32>
    %188 = arith.maximumf %186, %187 : vector<32x128xf32>
    %c576 = arith.constant 576 : index
    %c0_124 = arith.constant 0 : index
    %189 = vector.load %arg5[%c576, %c0_124] : memref<896x128xf32, #tpu.memory_space<vmem>>, vector<32x128xf32>
    %190 = arith.maximumf %188, %189 : vector<32x128xf32>
    %c608 = arith.constant 608 : index
    %c0_125 = arith.constant 0 : index
    %191 = vector.load %arg5[%c608, %c0_125] : memref<896x128xf32, #tpu.memory_space<vmem>>, vector<32x128xf32>
    %192 = arith.maximumf %190, %191 : vector<32x128xf32>
    %193 = vector.extract_strided_slice %192 {offsets = [0, 0], sizes = [14, 128], strides = [1, 1]} : vector<32x128xf32> to vector<14x128xf32>
    %cst_126 = arith.constant dense<0xFF800000> : vector<128xf32>
    %194 = vector.multi_reduction <maximumf>, %193, %cst_126 [0] : vector<14x128xf32> to vector<128xf32>
    %195 = vector.shape_cast %194 : vector<128xf32> to vector<1x128xf32>
    %196 = vector.extract_strided_slice %192 {offsets = [2, 0], sizes = [14, 128], strides = [1, 1]} : vector<32x128xf32> to vector<14x128xf32>
    %cst_127 = arith.constant dense<0xFF800000> : vector<128xf32>
    %197 = vector.multi_reduction <maximumf>, %196, %cst_127 [0] : vector<14x128xf32> to vector<128xf32>
    %198 = vector.shape_cast %197 : vector<128xf32> to vector<1x128xf32>
    %199 = vector.extract_strided_slice %192 {offsets = [4, 0], sizes = [14, 128], strides = [1, 1]} : vector<32x128xf32> to vector<14x128xf32>
    %cst_128 = arith.constant dense<0xFF800000> : vector<128xf32>
    %200 = vector.multi_reduction <maximumf>, %199, %cst_128 [0] : vector<14x128xf32> to vector<128xf32>
    %201 = vector.shape_cast %200 : vector<128xf32> to vector<1x128xf32>
    %202 = vector.extract_strided_slice %192 {offsets = [6, 0], sizes = [14, 128], strides = [1, 1]} : vector<32x128xf32> to vector<14x128xf32>
    %cst_129 = arith.constant dense<0xFF800000> : vector<128xf32>
    %203 = vector.multi_reduction <maximumf>, %202, %cst_129 [0] : vector<14x128xf32> to vector<128xf32>
    %204 = vector.shape_cast %203 : vector<128xf32> to vector<1x128xf32>
    %205 = vector.extract_strided_slice %192 {offsets = [8, 0], sizes = [14, 128], strides = [1, 1]} : vector<32x128xf32> to vector<14x128xf32>
    %cst_130 = arith.constant dense<0xFF800000> : vector<128xf32>
    %206 = vector.multi_reduction <maximumf>, %205, %cst_130 [0] : vector<14x128xf32> to vector<128xf32>
    %207 = vector.shape_cast %206 : vector<128xf32> to vector<1x128xf32>
    %208 = vector.extract_strided_slice %192 {offsets = [10, 0], sizes = [14, 128], strides = [1, 1]} : vector<32x128xf32> to vector<14x128xf32>
    %cst_131 = arith.constant dense<0xFF800000> : vector<128xf32>
    %209 = vector.multi_reduction <maximumf>, %208, %cst_131 [0] : vector<14x128xf32> to vector<128xf32>
    %210 = vector.shape_cast %209 : vector<128xf32> to vector<1x128xf32>
    %211 = vector.extract_strided_slice %192 {offsets = [12, 0], sizes = [14, 128], strides = [1, 1]} : vector<32x128xf32> to vector<14x128xf32>
    %cst_132 = arith.constant dense<0xFF800000> : vector<128xf32>
    %212 = vector.multi_reduction <maximumf>, %211, %cst_132 [0] : vector<14x128xf32> to vector<128xf32>
    %213 = vector.shape_cast %212 : vector<128xf32> to vector<1x128xf32>
    %214 = vector.extract_strided_slice %192 {offsets = [14, 0], sizes = [14, 128], strides = [1, 1]} : vector<32x128xf32> to vector<14x128xf32>
    %cst_133 = arith.constant dense<0xFF800000> : vector<128xf32>
    %215 = vector.multi_reduction <maximumf>, %214, %cst_133 [0] : vector<14x128xf32> to vector<128xf32>
    %216 = vector.shape_cast %215 : vector<128xf32> to vector<1x128xf32>
    %217 = tpu.concatenate %195, %198, %201, %204, %207, %210, %213, %216 in 0 : vector<1x128xf32>, vector<1x128xf32>, vector<1x128xf32>, vector<1x128xf32>, vector<1x128xf32>, vector<1x128xf32>, vector<1x128xf32>, vector<1x128xf32> -> vector<8x128xf32>
    %c256_134 = arith.constant 256 : index
    %c0_135 = arith.constant 0 : index
    %218 = vector.load %arg5[%c256_134, %c0_135] : memref<896x128xf32, #tpu.memory_space<vmem>>, vector<32x128xf32>
    %c288_136 = arith.constant 288 : index
    %c0_137 = arith.constant 0 : index
    %219 = vector.load %arg5[%c288_136, %c0_137] : memref<896x128xf32, #tpu.memory_space<vmem>>, vector<32x128xf32>
    %220 = arith.maximumf %218, %219 : vector<32x128xf32>
    %c320_138 = arith.constant 320 : index
    %c0_139 = arith.constant 0 : index
    %221 = vector.load %arg5[%c320_138, %c0_139] : memref<896x128xf32, #tpu.memory_space<vmem>>, vector<32x128xf32>
    %222 = arith.maximumf %220, %221 : vector<32x128xf32>
    %c352_140 = arith.constant 352 : index
    %c0_141 = arith.constant 0 : index
    %223 = vector.load %arg5[%c352_140, %c0_141] : memref<896x128xf32, #tpu.memory_space<vmem>>, vector<32x128xf32>
    %224 = arith.maximumf %222, %223 : vector<32x128xf32>
    %c384_142 = arith.constant 384 : index
    %c0_143 = arith.constant 0 : index
    %225 = vector.load %arg5[%c384_142, %c0_143] : memref<896x128xf32, #tpu.memory_space<vmem>>, vector<32x128xf32>
    %226 = arith.maximumf %224, %225 : vector<32x128xf32>
    %c416_144 = arith.constant 416 : index
    %c0_145 = arith.constant 0 : index
    %227 = vector.load %arg5[%c416_144, %c0_145] : memref<896x128xf32, #tpu.memory_space<vmem>>, vector<32x128xf32>
    %228 = arith.maximumf %226, %227 : vector<32x128xf32>
    %c448_146 = arith.constant 448 : index
    %c0_147 = arith.constant 0 : index
    %229 = vector.load %arg5[%c448_146, %c0_147] : memref<896x128xf32, #tpu.memory_space<vmem>>, vector<32x128xf32>
    %230 = arith.maximumf %228, %229 : vector<32x128xf32>
    %c480_148 = arith.constant 480 : index
    %c0_149 = arith.constant 0 : index
    %231 = vector.load %arg5[%c480_148, %c0_149] : memref<896x128xf32, #tpu.memory_space<vmem>>, vector<32x128xf32>
    %232 = arith.maximumf %230, %231 : vector<32x128xf32>
    %c512_150 = arith.constant 512 : index
    %c0_151 = arith.constant 0 : index
    %233 = vector.load %arg5[%c512_150, %c0_151] : memref<896x128xf32, #tpu.memory_space<vmem>>, vector<32x128xf32>
    %234 = arith.maximumf %232, %233 : vector<32x128xf32>
    %c544_152 = arith.constant 544 : index
    %c0_153 = arith.constant 0 : index
    %235 = vector.load %arg5[%c544_152, %c0_153] : memref<896x128xf32, #tpu.memory_space<vmem>>, vector<32x128xf32>
    %236 = arith.maximumf %234, %235 : vector<32x128xf32>
    %c576_154 = arith.constant 576 : index
    %c0_155 = arith.constant 0 : index
    %237 = vector.load %arg5[%c576_154, %c0_155] : memref<896x128xf32, #tpu.memory_space<vmem>>, vector<32x128xf32>
    %238 = arith.maximumf %236, %237 : vector<32x128xf32>
    %c608_156 = arith.constant 608 : index
    %c0_157 = arith.constant 0 : index
    %239 = vector.load %arg5[%c608_156, %c0_157] : memref<896x128xf32, #tpu.memory_space<vmem>>, vector<32x128xf32>
    %240 = arith.maximumf %238, %239 : vector<32x128xf32>
    %c640 = arith.constant 640 : index
    %c0_158 = arith.constant 0 : index
    %241 = vector.load %arg5[%c640, %c0_158] : memref<896x128xf32, #tpu.memory_space<vmem>>, vector<32x128xf32>
    %242 = arith.maximumf %240, %241 : vector<32x128xf32>
    %c672 = arith.constant 672 : index
    %c0_159 = arith.constant 0 : index
    %243 = vector.load %arg5[%c672, %c0_159] : memref<896x128xf32, #tpu.memory_space<vmem>>, vector<32x128xf32>
    %244 = arith.maximumf %242, %243 : vector<32x128xf32>
    %245 = vector.extract_strided_slice %244 {offsets = [0, 0], sizes = [14, 128], strides = [1, 1]} : vector<32x128xf32> to vector<14x128xf32>
    %cst_160 = arith.constant dense<0xFF800000> : vector<128xf32>
    %246 = vector.multi_reduction <maximumf>, %245, %cst_160 [0] : vector<14x128xf32> to vector<128xf32>
    %247 = vector.shape_cast %246 : vector<128xf32> to vector<1x128xf32>
    %248 = vector.extract_strided_slice %244 {offsets = [2, 0], sizes = [14, 128], strides = [1, 1]} : vector<32x128xf32> to vector<14x128xf32>
    %cst_161 = arith.constant dense<0xFF800000> : vector<128xf32>
    %249 = vector.multi_reduction <maximumf>, %248, %cst_161 [0] : vector<14x128xf32> to vector<128xf32>
    %250 = vector.shape_cast %249 : vector<128xf32> to vector<1x128xf32>
    %251 = vector.extract_strided_slice %244 {offsets = [4, 0], sizes = [14, 128], strides = [1, 1]} : vector<32x128xf32> to vector<14x128xf32>
    %cst_162 = arith.constant dense<0xFF800000> : vector<128xf32>
    %252 = vector.multi_reduction <maximumf>, %251, %cst_162 [0] : vector<14x128xf32> to vector<128xf32>
    %253 = vector.shape_cast %252 : vector<128xf32> to vector<1x128xf32>
    %254 = vector.extract_strided_slice %244 {offsets = [6, 0], sizes = [14, 128], strides = [1, 1]} : vector<32x128xf32> to vector<14x128xf32>
    %cst_163 = arith.constant dense<0xFF800000> : vector<128xf32>
    %255 = vector.multi_reduction <maximumf>, %254, %cst_163 [0] : vector<14x128xf32> to vector<128xf32>
    %256 = vector.shape_cast %255 : vector<128xf32> to vector<1x128xf32>
    %257 = vector.extract_strided_slice %244 {offsets = [8, 0], sizes = [14, 128], strides = [1, 1]} : vector<32x128xf32> to vector<14x128xf32>
    %cst_164 = arith.constant dense<0xFF800000> : vector<128xf32>
    %258 = vector.multi_reduction <maximumf>, %257, %cst_164 [0] : vector<14x128xf32> to vector<128xf32>
    %259 = vector.shape_cast %258 : vector<128xf32> to vector<1x128xf32>
    %260 = vector.extract_strided_slice %244 {offsets = [10, 0], sizes = [14, 128], strides = [1, 1]} : vector<32x128xf32> to vector<14x128xf32>
    %cst_165 = arith.constant dense<0xFF800000> : vector<128xf32>
    %261 = vector.multi_reduction <maximumf>, %260, %cst_165 [0] : vector<14x128xf32> to vector<128xf32>
    %262 = vector.shape_cast %261 : vector<128xf32> to vector<1x128xf32>
    %263 = vector.extract_strided_slice %244 {offsets = [12, 0], sizes = [14, 128], strides = [1, 1]} : vector<32x128xf32> to vector<14x128xf32>
    %cst_166 = arith.constant dense<0xFF800000> : vector<128xf32>
    %264 = vector.multi_reduction <maximumf>, %263, %cst_166 [0] : vector<14x128xf32> to vector<128xf32>
    %265 = vector.shape_cast %264 : vector<128xf32> to vector<1x128xf32>
    %266 = vector.extract_strided_slice %244 {offsets = [14, 0], sizes = [14, 128], strides = [1, 1]} : vector<32x128xf32> to vector<14x128xf32>
    %cst_167 = arith.constant dense<0xFF800000> : vector<128xf32>
    %267 = vector.multi_reduction <maximumf>, %266, %cst_167 [0] : vector<14x128xf32> to vector<128xf32>
    %268 = vector.shape_cast %267 : vector<128xf32> to vector<1x128xf32>
    %269 = tpu.concatenate %247, %250, %253, %256, %259, %262, %265, %268 in 0 : vector<1x128xf32>, vector<1x128xf32>, vector<1x128xf32>, vector<1x128xf32>, vector<1x128xf32>, vector<1x128xf32>, vector<1x128xf32>, vector<1x128xf32> -> vector<8x128xf32>
    %c320_168 = arith.constant 320 : index
    %c0_169 = arith.constant 0 : index
    %270 = vector.load %arg5[%c320_168, %c0_169] : memref<896x128xf32, #tpu.memory_space<vmem>>, vector<32x128xf32>
    %c352_170 = arith.constant 352 : index
    %c0_171 = arith.constant 0 : index
    %271 = vector.load %arg5[%c352_170, %c0_171] : memref<896x128xf32, #tpu.memory_space<vmem>>, vector<32x128xf32>
    %272 = arith.maximumf %270, %271 : vector<32x128xf32>
    %c384_172 = arith.constant 384 : index
    %c0_173 = arith.constant 0 : index
    %273 = vector.load %arg5[%c384_172, %c0_173] : memref<896x128xf32, #tpu.memory_space<vmem>>, vector<32x128xf32>
    %274 = arith.maximumf %272, %273 : vector<32x128xf32>
    %c416_174 = arith.constant 416 : index
    %c0_175 = arith.constant 0 : index
    %275 = vector.load %arg5[%c416_174, %c0_175] : memref<896x128xf32, #tpu.memory_space<vmem>>, vector<32x128xf32>
    %276 = arith.maximumf %274, %275 : vector<32x128xf32>
    %c448_176 = arith.constant 448 : index
    %c0_177 = arith.constant 0 : index
    %277 = vector.load %arg5[%c448_176, %c0_177] : memref<896x128xf32, #tpu.memory_space<vmem>>, vector<32x128xf32>
    %278 = arith.maximumf %276, %277 : vector<32x128xf32>
    %c480_178 = arith.constant 480 : index
    %c0_179 = arith.constant 0 : index
    %279 = vector.load %arg5[%c480_178, %c0_179] : memref<896x128xf32, #tpu.memory_space<vmem>>, vector<32x128xf32>
    %280 = arith.maximumf %278, %279 : vector<32x128xf32>
    %c512_180 = arith.constant 512 : index
    %c0_181 = arith.constant 0 : index
    %281 = vector.load %arg5[%c512_180, %c0_181] : memref<896x128xf32, #tpu.memory_space<vmem>>, vector<32x128xf32>
    %282 = arith.maximumf %280, %281 : vector<32x128xf32>
    %c544_182 = arith.constant 544 : index
    %c0_183 = arith.constant 0 : index
    %283 = vector.load %arg5[%c544_182, %c0_183] : memref<896x128xf32, #tpu.memory_space<vmem>>, vector<32x128xf32>
    %284 = arith.maximumf %282, %283 : vector<32x128xf32>
    %c576_184 = arith.constant 576 : index
    %c0_185 = arith.constant 0 : index
    %285 = vector.load %arg5[%c576_184, %c0_185] : memref<896x128xf32, #tpu.memory_space<vmem>>, vector<32x128xf32>
    %286 = arith.maximumf %284, %285 : vector<32x128xf32>
    %c608_186 = arith.constant 608 : index
    %c0_187 = arith.constant 0 : index
    %287 = vector.load %arg5[%c608_186, %c0_187] : memref<896x128xf32, #tpu.memory_space<vmem>>, vector<32x128xf32>
    %288 = arith.maximumf %286, %287 : vector<32x128xf32>
    %c640_188 = arith.constant 640 : index
    %c0_189 = arith.constant 0 : index
    %289 = vector.load %arg5[%c640_188, %c0_189] : memref<896x128xf32, #tpu.memory_space<vmem>>, vector<32x128xf32>
    %290 = arith.maximumf %288, %289 : vector<32x128xf32>
    %c672_190 = arith.constant 672 : index
    %c0_191 = arith.constant 0 : index
    %291 = vector.load %arg5[%c672_190, %c0_191] : memref<896x128xf32, #tpu.memory_space<vmem>>, vector<32x128xf32>
    %292 = arith.maximumf %290, %291 : vector<32x128xf32>
    %c704 = arith.constant 704 : index
    %c0_192 = arith.constant 0 : index
    %293 = vector.load %arg5[%c704, %c0_192] : memref<896x128xf32, #tpu.memory_space<vmem>>, vector<32x128xf32>
    %294 = arith.maximumf %292, %293 : vector<32x128xf32>
    %c736 = arith.constant 736 : index
    %c0_193 = arith.constant 0 : index
    %295 = vector.load %arg5[%c736, %c0_193] : memref<896x128xf32, #tpu.memory_space<vmem>>, vector<32x128xf32>
    %296 = arith.maximumf %294, %295 : vector<32x128xf32>
    %297 = vector.extract_strided_slice %296 {offsets = [0, 0], sizes = [14, 128], strides = [1, 1]} : vector<32x128xf32> to vector<14x128xf32>
    %cst_194 = arith.constant dense<0xFF800000> : vector<128xf32>
    %298 = vector.multi_reduction <maximumf>, %297, %cst_194 [0] : vector<14x128xf32> to vector<128xf32>
    %299 = vector.shape_cast %298 : vector<128xf32> to vector<1x128xf32>
    %300 = vector.extract_strided_slice %296 {offsets = [2, 0], sizes = [14, 128], strides = [1, 1]} : vector<32x128xf32> to vector<14x128xf32>
    %cst_195 = arith.constant dense<0xFF800000> : vector<128xf32>
    %301 = vector.multi_reduction <maximumf>, %300, %cst_195 [0] : vector<14x128xf32> to vector<128xf32>
    %302 = vector.shape_cast %301 : vector<128xf32> to vector<1x128xf32>
    %303 = vector.extract_strided_slice %296 {offsets = [4, 0], sizes = [14, 128], strides = [1, 1]} : vector<32x128xf32> to vector<14x128xf32>
    %cst_196 = arith.constant dense<0xFF800000> : vector<128xf32>
    %304 = vector.multi_reduction <maximumf>, %303, %cst_196 [0] : vector<14x128xf32> to vector<128xf32>
    %305 = vector.shape_cast %304 : vector<128xf32> to vector<1x128xf32>
    %306 = vector.extract_strided_slice %296 {offsets = [6, 0], sizes = [14, 128], strides = [1, 1]} : vector<32x128xf32> to vector<14x128xf32>
    %cst_197 = arith.constant dense<0xFF800000> : vector<128xf32>
    %307 = vector.multi_reduction <maximumf>, %306, %cst_197 [0] : vector<14x128xf32> to vector<128xf32>
    %308 = vector.shape_cast %307 : vector<128xf32> to vector<1x128xf32>
    %309 = vector.extract_strided_slice %296 {offsets = [8, 0], sizes = [14, 128], strides = [1, 1]} : vector<32x128xf32> to vector<14x128xf32>
    %cst_198 = arith.constant dense<0xFF800000> : vector<128xf32>
    %310 = vector.multi_reduction <maximumf>, %309, %cst_198 [0] : vector<14x128xf32> to vector<128xf32>
    %311 = vector.shape_cast %310 : vector<128xf32> to vector<1x128xf32>
    %312 = vector.extract_strided_slice %296 {offsets = [10, 0], sizes = [14, 128], strides = [1, 1]} : vector<32x128xf32> to vector<14x128xf32>
    %cst_199 = arith.constant dense<0xFF800000> : vector<128xf32>
    %313 = vector.multi_reduction <maximumf>, %312, %cst_199 [0] : vector<14x128xf32> to vector<128xf32>
    %314 = vector.shape_cast %313 : vector<128xf32> to vector<1x128xf32>
    %315 = vector.extract_strided_slice %296 {offsets = [12, 0], sizes = [14, 128], strides = [1, 1]} : vector<32x128xf32> to vector<14x128xf32>
    %cst_200 = arith.constant dense<0xFF800000> : vector<128xf32>
    %316 = vector.multi_reduction <maximumf>, %315, %cst_200 [0] : vector<14x128xf32> to vector<128xf32>
    %317 = vector.shape_cast %316 : vector<128xf32> to vector<1x128xf32>
    %318 = vector.extract_strided_slice %296 {offsets = [14, 0], sizes = [14, 128], strides = [1, 1]} : vector<32x128xf32> to vector<14x128xf32>
    %cst_201 = arith.constant dense<0xFF800000> : vector<128xf32>
    %319 = vector.multi_reduction <maximumf>, %318, %cst_201 [0] : vector<14x128xf32> to vector<128xf32>
    %320 = vector.shape_cast %319 : vector<128xf32> to vector<1x128xf32>
    %321 = tpu.concatenate %299, %302, %305, %308, %311, %314, %317, %320 in 0 : vector<1x128xf32>, vector<1x128xf32>, vector<1x128xf32>, vector<1x128xf32>, vector<1x128xf32>, vector<1x128xf32>, vector<1x128xf32>, vector<1x128xf32> -> vector<8x128xf32>
    %c384_202 = arith.constant 384 : index
    %c0_203 = arith.constant 0 : index
    %322 = vector.load %arg5[%c384_202, %c0_203] : memref<896x128xf32, #tpu.memory_space<vmem>>, vector<32x128xf32>
    %c416_204 = arith.constant 416 : index
    %c0_205 = arith.constant 0 : index
    %323 = vector.load %arg5[%c416_204, %c0_205] : memref<896x128xf32, #tpu.memory_space<vmem>>, vector<32x128xf32>
    %324 = arith.maximumf %322, %323 : vector<32x128xf32>
    %c448_206 = arith.constant 448 : index
    %c0_207 = arith.constant 0 : index
    %325 = vector.load %arg5[%c448_206, %c0_207] : memref<896x128xf32, #tpu.memory_space<vmem>>, vector<32x128xf32>
    %326 = arith.maximumf %324, %325 : vector<32x128xf32>
    %c480_208 = arith.constant 480 : index
    %c0_209 = arith.constant 0 : index
    %327 = vector.load %arg5[%c480_208, %c0_209] : memref<896x128xf32, #tpu.memory_space<vmem>>, vector<32x128xf32>
    %328 = arith.maximumf %326, %327 : vector<32x128xf32>
    %c512_210 = arith.constant 512 : index
    %c0_211 = arith.constant 0 : index
    %329 = vector.load %arg5[%c512_210, %c0_211] : memref<896x128xf32, #tpu.memory_space<vmem>>, vector<32x128xf32>
    %330 = arith.maximumf %328, %329 : vector<32x128xf32>
    %c544_212 = arith.constant 544 : index
    %c0_213 = arith.constant 0 : index
    %331 = vector.load %arg5[%c544_212, %c0_213] : memref<896x128xf32, #tpu.memory_space<vmem>>, vector<32x128xf32>
    %332 = arith.maximumf %330, %331 : vector<32x128xf32>
    %c576_214 = arith.constant 576 : index
    %c0_215 = arith.constant 0 : index
    %333 = vector.load %arg5[%c576_214, %c0_215] : memref<896x128xf32, #tpu.memory_space<vmem>>, vector<32x128xf32>
    %334 = arith.maximumf %332, %333 : vector<32x128xf32>
    %c608_216 = arith.constant 608 : index
    %c0_217 = arith.constant 0 : index
    %335 = vector.load %arg5[%c608_216, %c0_217] : memref<896x128xf32, #tpu.memory_space<vmem>>, vector<32x128xf32>
    %336 = arith.maximumf %334, %335 : vector<32x128xf32>
    %c640_218 = arith.constant 640 : index
    %c0_219 = arith.constant 0 : index
    %337 = vector.load %arg5[%c640_218, %c0_219] : memref<896x128xf32, #tpu.memory_space<vmem>>, vector<32x128xf32>
    %338 = arith.maximumf %336, %337 : vector<32x128xf32>
    %c672_220 = arith.constant 672 : index
    %c0_221 = arith.constant 0 : index
    %339 = vector.load %arg5[%c672_220, %c0_221] : memref<896x128xf32, #tpu.memory_space<vmem>>, vector<32x128xf32>
    %340 = arith.maximumf %338, %339 : vector<32x128xf32>
    %c704_222 = arith.constant 704 : index
    %c0_223 = arith.constant 0 : index
    %341 = vector.load %arg5[%c704_222, %c0_223] : memref<896x128xf32, #tpu.memory_space<vmem>>, vector<32x128xf32>
    %342 = arith.maximumf %340, %341 : vector<32x128xf32>
    %c736_224 = arith.constant 736 : index
    %c0_225 = arith.constant 0 : index
    %343 = vector.load %arg5[%c736_224, %c0_225] : memref<896x128xf32, #tpu.memory_space<vmem>>, vector<32x128xf32>
    %344 = arith.maximumf %342, %343 : vector<32x128xf32>
    %c768 = arith.constant 768 : index
    %c0_226 = arith.constant 0 : index
    %345 = vector.load %arg5[%c768, %c0_226] : memref<896x128xf32, #tpu.memory_space<vmem>>, vector<32x128xf32>
    %346 = arith.maximumf %344, %345 : vector<32x128xf32>
    %c800 = arith.constant 800 : index
    %c0_227 = arith.constant 0 : index
    %347 = vector.load %arg5[%c800, %c0_227] : memref<896x128xf32, #tpu.memory_space<vmem>>, vector<32x128xf32>
    %348 = arith.maximumf %346, %347 : vector<32x128xf32>
    %349 = vector.extract_strided_slice %348 {offsets = [0, 0], sizes = [14, 128], strides = [1, 1]} : vector<32x128xf32> to vector<14x128xf32>
    %cst_228 = arith.constant dense<0xFF800000> : vector<128xf32>
    %350 = vector.multi_reduction <maximumf>, %349, %cst_228 [0] : vector<14x128xf32> to vector<128xf32>
    %351 = vector.shape_cast %350 : vector<128xf32> to vector<1x128xf32>
    %352 = vector.extract_strided_slice %348 {offsets = [2, 0], sizes = [14, 128], strides = [1, 1]} : vector<32x128xf32> to vector<14x128xf32>
    %cst_229 = arith.constant dense<0xFF800000> : vector<128xf32>
    %353 = vector.multi_reduction <maximumf>, %352, %cst_229 [0] : vector<14x128xf32> to vector<128xf32>
    %354 = vector.shape_cast %353 : vector<128xf32> to vector<1x128xf32>
    %355 = vector.extract_strided_slice %348 {offsets = [4, 0], sizes = [14, 128], strides = [1, 1]} : vector<32x128xf32> to vector<14x128xf32>
    %cst_230 = arith.constant dense<0xFF800000> : vector<128xf32>
    %356 = vector.multi_reduction <maximumf>, %355, %cst_230 [0] : vector<14x128xf32> to vector<128xf32>
    %357 = vector.shape_cast %356 : vector<128xf32> to vector<1x128xf32>
    %358 = vector.extract_strided_slice %348 {offsets = [6, 0], sizes = [14, 128], strides = [1, 1]} : vector<32x128xf32> to vector<14x128xf32>
    %cst_231 = arith.constant dense<0xFF800000> : vector<128xf32>
    %359 = vector.multi_reduction <maximumf>, %358, %cst_231 [0] : vector<14x128xf32> to vector<128xf32>
    %360 = vector.shape_cast %359 : vector<128xf32> to vector<1x128xf32>
    %361 = vector.extract_strided_slice %348 {offsets = [8, 0], sizes = [14, 128], strides = [1, 1]} : vector<32x128xf32> to vector<14x128xf32>
    %cst_232 = arith.constant dense<0xFF800000> : vector<128xf32>
    %362 = vector.multi_reduction <maximumf>, %361, %cst_232 [0] : vector<14x128xf32> to vector<128xf32>
    %363 = vector.shape_cast %362 : vector<128xf32> to vector<1x128xf32>
    %364 = vector.extract_strided_slice %348 {offsets = [10, 0], sizes = [14, 128], strides = [1, 1]} : vector<32x128xf32> to vector<14x128xf32>
    %cst_233 = arith.constant dense<0xFF800000> : vector<128xf32>
    %365 = vector.multi_reduction <maximumf>, %364, %cst_233 [0] : vector<14x128xf32> to vector<128xf32>
    %366 = vector.shape_cast %365 : vector<128xf32> to vector<1x128xf32>
    %367 = vector.extract_strided_slice %348 {offsets = [12, 0], sizes = [14, 128], strides = [1, 1]} : vector<32x128xf32> to vector<14x128xf32>
    %cst_234 = arith.constant dense<0xFF800000> : vector<128xf32>
    %368 = vector.multi_reduction <maximumf>, %367, %cst_234 [0] : vector<14x128xf32> to vector<128xf32>
    %369 = vector.shape_cast %368 : vector<128xf32> to vector<1x128xf32>
    %370 = vector.extract_strided_slice %348 {offsets = [14, 0], sizes = [14, 128], strides = [1, 1]} : vector<32x128xf32> to vector<14x128xf32>
    %cst_235 = arith.constant dense<0xFF800000> : vector<128xf32>
    %371 = vector.multi_reduction <maximumf>, %370, %cst_235 [0] : vector<14x128xf32> to vector<128xf32>
    %372 = vector.shape_cast %371 : vector<128xf32> to vector<1x128xf32>
    %373 = tpu.concatenate %351, %354, %357, %360, %363, %366, %369, %372 in 0 : vector<1x128xf32>, vector<1x128xf32>, vector<1x128xf32>, vector<1x128xf32>, vector<1x128xf32>, vector<1x128xf32>, vector<1x128xf32>, vector<1x128xf32> -> vector<8x128xf32>
    %c448_236 = arith.constant 448 : index
    %c0_237 = arith.constant 0 : index
    %374 = vector.load %arg5[%c448_236, %c0_237] : memref<896x128xf32, #tpu.memory_space<vmem>>, vector<32x128xf32>
    %c480_238 = arith.constant 480 : index
    %c0_239 = arith.constant 0 : index
    %375 = vector.load %arg5[%c480_238, %c0_239] : memref<896x128xf32, #tpu.memory_space<vmem>>, vector<32x128xf32>
    %376 = arith.maximumf %374, %375 : vector<32x128xf32>
    %c512_240 = arith.constant 512 : index
    %c0_241 = arith.constant 0 : index
    %377 = vector.load %arg5[%c512_240, %c0_241] : memref<896x128xf32, #tpu.memory_space<vmem>>, vector<32x128xf32>
    %378 = arith.maximumf %376, %377 : vector<32x128xf32>
    %c544_242 = arith.constant 544 : index
    %c0_243 = arith.constant 0 : index
    %379 = vector.load %arg5[%c544_242, %c0_243] : memref<896x128xf32, #tpu.memory_space<vmem>>, vector<32x128xf32>
    %380 = arith.maximumf %378, %379 : vector<32x128xf32>
    %c576_244 = arith.constant 576 : index
    %c0_245 = arith.constant 0 : index
    %381 = vector.load %arg5[%c576_244, %c0_245] : memref<896x128xf32, #tpu.memory_space<vmem>>, vector<32x128xf32>
    %382 = arith.maximumf %380, %381 : vector<32x128xf32>
    %c608_246 = arith.constant 608 : index
    %c0_247 = arith.constant 0 : index
    %383 = vector.load %arg5[%c608_246, %c0_247] : memref<896x128xf32, #tpu.memory_space<vmem>>, vector<32x128xf32>
    %384 = arith.maximumf %382, %383 : vector<32x128xf32>
    %c640_248 = arith.constant 640 : index
    %c0_249 = arith.constant 0 : index
    %385 = vector.load %arg5[%c640_248, %c0_249] : memref<896x128xf32, #tpu.memory_space<vmem>>, vector<32x128xf32>
    %386 = arith.maximumf %384, %385 : vector<32x128xf32>
    %c672_250 = arith.constant 672 : index
    %c0_251 = arith.constant 0 : index
    %387 = vector.load %arg5[%c672_250, %c0_251] : memref<896x128xf32, #tpu.memory_space<vmem>>, vector<32x128xf32>
    %388 = arith.maximumf %386, %387 : vector<32x128xf32>
    %c704_252 = arith.constant 704 : index
    %c0_253 = arith.constant 0 : index
    %389 = vector.load %arg5[%c704_252, %c0_253] : memref<896x128xf32, #tpu.memory_space<vmem>>, vector<32x128xf32>
    %390 = arith.maximumf %388, %389 : vector<32x128xf32>
    %c736_254 = arith.constant 736 : index
    %c0_255 = arith.constant 0 : index
    %391 = vector.load %arg5[%c736_254, %c0_255] : memref<896x128xf32, #tpu.memory_space<vmem>>, vector<32x128xf32>
    %392 = arith.maximumf %390, %391 : vector<32x128xf32>
    %c768_256 = arith.constant 768 : index
    %c0_257 = arith.constant 0 : index
    %393 = vector.load %arg5[%c768_256, %c0_257] : memref<896x128xf32, #tpu.memory_space<vmem>>, vector<32x128xf32>
    %394 = arith.maximumf %392, %393 : vector<32x128xf32>
    %c800_258 = arith.constant 800 : index
    %c0_259 = arith.constant 0 : index
    %395 = vector.load %arg5[%c800_258, %c0_259] : memref<896x128xf32, #tpu.memory_space<vmem>>, vector<32x128xf32>
    %396 = arith.maximumf %394, %395 : vector<32x128xf32>
    %c832 = arith.constant 832 : index
    %c0_260 = arith.constant 0 : index
    %397 = vector.load %arg5[%c832, %c0_260] : memref<896x128xf32, #tpu.memory_space<vmem>>, vector<32x128xf32>
    %398 = arith.maximumf %396, %397 : vector<32x128xf32>
    %c864 = arith.constant 864 : index
    %c0_261 = arith.constant 0 : index
    %399 = vector.load %arg5[%c864, %c0_261] : memref<896x128xf32, #tpu.memory_space<vmem>>, vector<32x128xf32>
    %400 = arith.maximumf %398, %399 : vector<32x128xf32>
    %401 = vector.extract_strided_slice %400 {offsets = [0, 0], sizes = [14, 128], strides = [1, 1]} : vector<32x128xf32> to vector<14x128xf32>
    %cst_262 = arith.constant dense<0xFF800000> : vector<128xf32>
    %402 = vector.multi_reduction <maximumf>, %401, %cst_262 [0] : vector<14x128xf32> to vector<128xf32>
    %403 = vector.shape_cast %402 : vector<128xf32> to vector<1x128xf32>
    %404 = vector.extract_strided_slice %400 {offsets = [2, 0], sizes = [14, 128], strides = [1, 1]} : vector<32x128xf32> to vector<14x128xf32>
    %cst_263 = arith.constant dense<0xFF800000> : vector<128xf32>
    %405 = vector.multi_reduction <maximumf>, %404, %cst_263 [0] : vector<14x128xf32> to vector<128xf32>
    %406 = vector.shape_cast %405 : vector<128xf32> to vector<1x128xf32>
    %407 = vector.extract_strided_slice %400 {offsets = [4, 0], sizes = [14, 128], strides = [1, 1]} : vector<32x128xf32> to vector<14x128xf32>
    %cst_264 = arith.constant dense<0xFF800000> : vector<128xf32>
    %408 = vector.multi_reduction <maximumf>, %407, %cst_264 [0] : vector<14x128xf32> to vector<128xf32>
    %409 = vector.shape_cast %408 : vector<128xf32> to vector<1x128xf32>
    %410 = vector.extract_strided_slice %400 {offsets = [6, 0], sizes = [14, 128], strides = [1, 1]} : vector<32x128xf32> to vector<14x128xf32>
    %cst_265 = arith.constant dense<0xFF800000> : vector<128xf32>
    %411 = vector.multi_reduction <maximumf>, %410, %cst_265 [0] : vector<14x128xf32> to vector<128xf32>
    %412 = vector.shape_cast %411 : vector<128xf32> to vector<1x128xf32>
    %413 = vector.extract_strided_slice %400 {offsets = [8, 0], sizes = [14, 128], strides = [1, 1]} : vector<32x128xf32> to vector<14x128xf32>
    %cst_266 = arith.constant dense<0xFF800000> : vector<128xf32>
    %414 = vector.multi_reduction <maximumf>, %413, %cst_266 [0] : vector<14x128xf32> to vector<128xf32>
    %415 = vector.shape_cast %414 : vector<128xf32> to vector<1x128xf32>
    %416 = vector.extract_strided_slice %400 {offsets = [10, 0], sizes = [14, 128], strides = [1, 1]} : vector<32x128xf32> to vector<14x128xf32>
    %cst_267 = arith.constant dense<0xFF800000> : vector<128xf32>
    %417 = vector.multi_reduction <maximumf>, %416, %cst_267 [0] : vector<14x128xf32> to vector<128xf32>
    %418 = vector.shape_cast %417 : vector<128xf32> to vector<1x128xf32>
    %419 = vector.extract_strided_slice %400 {offsets = [12, 0], sizes = [14, 128], strides = [1, 1]} : vector<32x128xf32> to vector<14x128xf32>
    %cst_268 = arith.constant dense<0xFF800000> : vector<128xf32>
    %420 = vector.multi_reduction <maximumf>, %419, %cst_268 [0] : vector<14x128xf32> to vector<128xf32>
    %421 = vector.shape_cast %420 : vector<128xf32> to vector<1x128xf32>
    %422 = vector.extract_strided_slice %400 {offsets = [14, 0], sizes = [14, 128], strides = [1, 1]} : vector<32x128xf32> to vector<14x128xf32>
    %cst_269 = arith.constant dense<0xFF800000> : vector<128xf32>
    %423 = vector.multi_reduction <maximumf>, %422, %cst_269 [0] : vector<14x128xf32> to vector<128xf32>
    %424 = vector.shape_cast %423 : vector<128xf32> to vector<1x128xf32>
    %425 = tpu.concatenate %403, %406, %409, %412, %415, %418, %421, %424 in 0 : vector<1x128xf32>, vector<1x128xf32>, vector<1x128xf32>, vector<1x128xf32>, vector<1x128xf32>, vector<1x128xf32>, vector<1x128xf32>, vector<1x128xf32> -> vector<8x128xf32>
    %426 = tpu.concatenate %61, %113, %165, %217, %269, %321, %373, %425 in 0 : vector<8x128xf32>, vector<8x128xf32>, vector<8x128xf32>, vector<8x128xf32>, vector<8x128xf32>, vector<8x128xf32>, vector<8x128xf32>, vector<8x128xf32> -> vector<64x128xf32>
    %c0_270 = arith.constant 0 : index
    %c0_271 = arith.constant 0 : index
    %c0_272 = arith.constant 0 : index
    %427 = vector.load %arg4[%c0_270, %c0_271, %c0_272] : memref<1x64x128xf32, #tpu.memory_space<vmem>>, vector<1x64x128xf32>
    %428 = vector.shape_cast %427 : vector<1x64x128xf32> to vector<64x128xf32>
    %429 = vector.shape_cast %426 : vector<64x128xf32> to vector<1x64x128xf32>
    tpu.vector_store %arg4[%c0_270, %c0_271, %c0_272], %429 {strides = array<i32>} : memref<1x64x128xf32, #tpu.memory_space<vmem>>, vector<1x64x128xf32>,
    return
  }
  func.func @transform_0(%arg0: i32) -> (i32, i32, i32) {
    %c0_i32 = arith.constant 0 : i32
    %c0_i32_0 = arith.constant 0 : i32
    %c0_i32_1 = arith.constant 0 : i32
    return %arg0, %c0_i32, %c0_i32_0 : i32, i32, i32
  }
  func.func @transform_1(%arg0: i32) -> (i32, i32) {
    %c0_i32 = arith.constant 0 : i32
    %c0_i32_0 = arith.constant 0 : i32
    %c0_i32_1 = arith.constant 0 : i32
    return %c0_i32, %c0_i32_0 : i32, i32
  }
  func.func @transform_2(%arg0: i32) -> (i32, i32) {
    %c0_i32 = arith.constant 0 : i32
    %c0_i32_0 = arith.constant 0 : i32
    %c0_i32_1 = arith.constant 0 : i32
    return %c0_i32, %c0_i32_0 : i32, i32
  }
  func.func @transform_3(%arg0: i32) -> (i32, i32, i32) {
    %c0_i32 = arith.constant 0 : i32
    %c0_i32_0 = arith.constant 0 : i32
    %c0_i32_1 = arith.constant 0 : i32
    return %arg0, %c0_i32, %c0_i32_0 : i32, i32, i32
  }
}

module attributes {stable_mosaic.version = 11 : i64} {
  func.func @fc_kernel(%arg0: i32, %arg1: memref<32x400xf32, #tpu.memory_space<vmem>>, %arg2: memref<400x10xf32, #tpu.memory_space<vmem>>, %arg3: memref<1x10xf32, #tpu.memory_space<vmem>>, %arg4: memref<32x10xf32, #tpu.memory_space<vmem>>) attributes {dimension_semantics = [#tpu.dimension_semantics<parallel>], iteration_bounds = array<i64: 1>, scalar_prefetch = 0 : i64, scratch_operands = 0 : i64, tpu.core_type = #tpu.core_type<tc>, window_params = [{transform_indices = @transform_0, window_bounds = array<i64: 32, 400>}, {pipeline_mode = #tpu.pipeline_mode<synchronous>, transform_indices = @transform_1, window_bounds = array<i64: 400, 10>}, {pipeline_mode = #tpu.pipeline_mode<synchronous>, transform_indices = @transform_2, window_bounds = array<i64: 1, 10>}, {transform_indices = @transform_3, window_bounds = array<i64: 32, 10>}]} {
    %c0 = arith.constant 0 : index
    %c0_0 = arith.constant 0 : index
    %0 = vector.load %arg1[%c0, %c0_0] : memref<32x400xf32, #tpu.memory_space<vmem>>, vector<32x400xf32>
    %c0_1 = arith.constant 0 : index
    %c0_2 = arith.constant 0 : index
    %1 = vector.load %arg2[%c0_1, %c0_2] : memref<400x10xf32, #tpu.memory_space<vmem>>, vector<400x10xf32>
    %cst = arith.constant dense<0.000000e+00> : vector<32x10xf32>
    %2 = tpu.matmul %0, %1, %cst {dimension_numbers = #tpu.dot_dimension_numbers<[1], [0], [0], [1], [0, 0, 1, 1], [], []>} : vector<32x400xf32>, vector<400x10xf32>, vector<32x10xf32> -> vector<32x10xf32>
    %c0_3 = arith.constant 0 : index
    %c0_4 = arith.constant 0 : index
    %3 = vector.load %arg3[%c0_3, %c0_4] : memref<1x10xf32, #tpu.memory_space<vmem>>, vector<1x10xf32>
    %4 = vector.broadcast %3 : vector<1x10xf32> to vector<32x10xf32>
    %5 = arith.addf %2, %4 : vector<32x10xf32>
    %c0_5 = arith.constant 0 : index
    %c0_6 = arith.constant 0 : index
    %6 = vector.load %arg4[%c0_5, %c0_6] : memref<32x10xf32, #tpu.memory_space<vmem>>, vector<32x10xf32>
    tpu.vector_store %arg4[%c0_5, %c0_6], %5 {strides = array<i32>} : memref<32x10xf32, #tpu.memory_space<vmem>>, vector<32x10xf32>,
    return
  }
  func.func @transform_0(%arg0: i32) -> (i32, i32) {
    %c0_i32 = arith.constant 0 : i32
    %c0_i32_0 = arith.constant 0 : i32
    return %arg0, %c0_i32 : i32, i32
  }
  func.func @transform_1(%arg0: i32) -> (i32, i32) {
    %c0_i32 = arith.constant 0 : i32
    %c0_i32_0 = arith.constant 0 : i32
    %c0_i32_1 = arith.constant 0 : i32
    return %c0_i32, %c0_i32_0 : i32, i32
  }
  func.func @transform_2(%arg0: i32) -> (i32, i32) {
    %c0_i32 = arith.constant 0 : i32
    %c0_i32_0 = arith.constant 0 : i32
    %c0_i32_1 = arith.constant 0 : i32
    return %c0_i32, %c0_i32_0 : i32, i32
  }
  func.func @transform_3(%arg0: i32) -> (i32, i32) {
    %c0_i32 = arith.constant 0 : i32
    %c0_i32_0 = arith.constant 0 : i32
    return %arg0, %c0_i32 : i32, i32
  }
}

</mosaic_0001>

<bundles_post_ra>
// kernel: net_forward.2
= control target key start
LH: loop header
LB: loop body
LE: loop exit
PB: predicated region body
PF: predicated region fallthrough
CT: control target
= control target key end

     0   :  { %s3230_s12 = smov 0   ;;  %s5125_s0 = inlined_call_operand.vmem [shape: f32[2,896,75], index: 0, kind: input, shape index: {}]   ;;  %s5126_s1 = inlined_call_operand.vmem [shape: f32[75,128], index: 1, kind: input, shape index: {}]   ;;  %s5127_s2 = inlined_call_operand.vmem [shape: f32[1,128], index: 2, kind: input, shape index: {}]   ;;  %s5128_s3 = inlined_call_operand.vmem [shape: f32[2,64,128], index: 3, kind: output, shape index: {}]  }
   0x1 LB: > { %s2722_s13 = sadd.s32 4294967295, %s3207_s12   ;;  %p2726_p0 = scmp.ge.s32.totalorder %s3207_s12, 1  ;;  %s3207_s12 = sphi %s3230_s12, %s13_s12  }
   0x2   : > { %p137_p1 = scmp.lt.s32.totalorder %s3207_s12, 3 }
   0x4   : > { %p138_p2 = pnand %p2726_p0, %p137_p1 }
   0x6   : > { %141 = sbr.rel (%p138_p2) target bundleno = 580 (0x244), region = 32 }
   0xd   : > { %v283_v0 = vld [vmem:[%s5126_s1] sm:$0xff]  ;;  %v284_v1 = vld [vmem:[%s5126_s1 + $0x8] sm:$0xff]  ;;  %v285_v2 = vld [vmem:[%s5126_s1 + $0x10] sm:$0xff]  ;;  %p161_p3 = scmp.lt.s32.totalorder %s2722_s13, 1  ;;  %vm300_vm0 = vcmask 613376   ;;  %vm637_vm1 = vcmask 1042432  }
   0xe   : > { %v3157_v3 = vpack.c.bf16 %v284_v1, %v283_v0  ;;  %v286_v4 = vld [vmem:[%s5126_s1 + $0x18] sm:$0xff]  ;;  %v287_v6 = vld [vmem:[%s5126_s1 + $0x20] sm:$0xff]  ;;  %v288_v7 = vld [vmem:[%s5126_s1 + $0x28] sm:$0xff]  ;;  %vm3209_vm2 = vmmov 1   ;;  %vm1598_vm4 = vcmask 1045504   ;;  %vm1607_vm5 = vcmask 1047554  }
   0xf   : > { %v3161_v5 = vpack.c.bf16 %v286_v4, %v285_v2  ;;  %s5349_s13 = smov (!%p161_p3, %s2722_s13), 1  ;;  %v3165_v8 = vpack.c.bf16 %v288_v7, %v287_v6  ;;  %v289_v9 = vld [vmem:[%s5126_s1 + $0x30] sm:$0xff]  ;;  %v290_v10 = vld [vmem:[%s5126_s1 + $0x38] sm:$0xff]  ;;  %v291_v14 = vld [vmem:[%s5126_s1 + $0x40] sm:$0xff]  ;;  %vm1616_vm6 = vcmask 1047556   ;;  %vm1628_vm7 = vcmask 1047558  }
  0x10   : > { %3158 = vmatprep.subr.bf16.mxu0 %v3157_v3  ;;  %3179 = vmatprep.subr.bf16.mxu1 %v3157_v3  ;;  %s3189_s26 = smul.u32 896, %s5349_s13  ;;  %v3169_v13 = vpack.c.bf16 %v290_v10, %v289_v9  ;;  %v292_v15 = vld [vmem:[%s5126_s1 + $0x48] sm:$0x7]  ;;  %vm3174_vm3 = vmpackc.low %vm637_vm1, %vm3209_vm2  ;;  %vm1676_vm8 = vcmask 1040384   ;;  %vm1618_vm9 = vcmask 1041408   ;;  %vm1630_vm10 = vcmask 1043456  }
  0x11   : > { %3160 = vmatpush3.bf16.msra.mxu0 %v3157_v3  ;;  %3184 = vmatpush3.bf16.msra.mxu1 %v3157_v3  ;;  %v3173_v16 = vpack.c.bf16 %v292_v15, %v291_v14  ;;  %vm1681_vm11 = vcmask 1044480   ;;  %s2846_s19 = sshll.u32 %s5349_s13, 6  ;;  %vm1684_vm12 = vcmask 1046528  }
  0x12   : > { %3162 = vmatprep.subr.bf16.mxu0 %v3161_v5  ;;  %3180 = vmatprep.subr.bf16.mxu1 %v3161_v5  ;;  %s3268_s6 = scalar_lea.vmem %s5125_s0, %s3189_s26  ;;  %s5021_s22 = scalar_lea.vmem %s5128_s3, %s2846_s19 }
  0x13   : > { %v171_v11 = vld [vmem:[%s3268_s6] sm:$0xff]  ;;  %v172_v17 = vld [vmem:[%s3268_s6 + $0x8] sm:$0xff]  ;;  %v173_v19 = vld [vmem:[%s3268_s6 + $0x10] sm:$0xff] }
  0x14   : > { %v227_v12 = vld [vmem:[%s3268_s6 + $0x1c0] sm:$0xff]  ;;  %2989 = vmatprep.mubr.msk.f32.mxu0 %vm300_vm0, %v171_v11  ;;  %v228_v18 = vld [vmem:[%s3268_s6 + $0x1c8] sm:$0xff]  ;;  %v229_v20 = vld [vmem:[%s3268_s6 + $0x1d0] sm:$0xff] }
  0x15   : > { %3164 = vmatpush3.bf16.msra.mxu0 %v3161_v5  ;;  %3185 = vmatpush3.bf16.msra.mxu1 %v3161_v5  ;;  %v174_v21 = vld [vmem:[%s3268_s6 + $0x18] sm:$0xff]  ;;  %v175_v23 = vld [vmem:[%s3268_s6 + $0x20] sm:$0xff]  ;;  %v176_v25 = vld [vmem:[%s3268_s6 + $0x28] sm:$0xff] }
  0x16   : > { %3166 = vmatprep.subr.bf16.mxu0 %v3165_v8  ;;  %3181 = vmatprep.subr.bf16.mxu1 %v3165_v8  ;;  %v230_v22 = vld [vmem:[%s3268_s6 + $0x1d8] sm:$0xff]  ;;  %v231_v24 = vld [vmem:[%s3268_s6 + $0x1e0] sm:$0xff]  ;;  %v232_v26 = vld [vmem:[%s3268_s6 + $0x1e8] sm:$0xff] }
  0x17   : > { %3073 = vmatprep.mubr.msk.f32.mxu1 %vm300_vm0, %v227_v12  ;;  %v177_v27 = vld [vmem:[%s3268_s6 + $0x30] sm:$0xff]  ;;  %v178_v29 = vld [vmem:[%s3268_s6 + $0x38] sm:$0xff]  ;;  %v179_v31 = vld [vmem:[%s3268_s6 + $0x40] sm:$0xff] }
  0x18   : > { %v233_v28 = vld [vmem:[%s3268_s6 + $0x1f0] sm:$0xff]  ;;  %v234_v30 = vld [vmem:[%s3268_s6 + $0x1f8] sm:$0xff]  ;;  %v235_v32 = vld [vmem:[%s3268_s6 + $0x200] sm:$0xff] }
  0x19   : > { %3168 = vmatpush3.bf16.msra.mxu0 %v3165_v8  ;;  %3186 = vmatpush3.bf16.msra.mxu1 %v3165_v8  ;;  %v180_v33 = vld [vmem:[%s3268_s6 + $0x48] sm:$0xff]  ;;  %v181_v35 = vld [vmem:[%s3268_s6 + $0x50] sm:$0xff]  ;;  %v182_v37 = vld [vmem:[%s3268_s6 + $0x58] sm:$0xff] }
  0x1a   : > { %3170 = vmatprep.subr.bf16.mxu0 %v3169_v13  ;;  %3182 = vmatprep.subr.bf16.mxu1 %v3169_v13  ;;  %v236_v34 = vld [vmem:[%s3268_s6 + $0x208] sm:$0xff]  ;;  %v237_v36 = vld [vmem:[%s3268_s6 + $0x210] sm:$0xff]  ;;  %v238_v38 = vld [vmem:[%s3268_s6 + $0x218] sm:$0xff] }
  0x1b   : > { %v183_v39 = vld [vmem:[%s3268_s6 + $0x60] sm:$0xff]  ;;  %v184_v41 = vld [vmem:[%s3268_s6 + $0x68] sm:$0xff]  ;;  %v185_v43 = vld [vmem:[%s3268_s6 + $0x70] sm:$0xff] }
  0x1c   : > { %v239_v40 = vld [vmem:[%s3268_s6 + $0x220] sm:$0xff]  ;;  %v240_v42 = vld [vmem:[%s3268_s6 + $0x228] sm:$0xff]  ;;  %v241_v44 = vld [vmem:[%s3268_s6 + $0x230] sm:$0xff] }
  0x1d   : > { %3172 = vmatpush3.bf16.msra.mxu0 %v3169_v13  ;;  %3187 = vmatpush3.bf16.msra.mxu1 %v3169_v13  ;;  %v186_v45 = vld [vmem:[%s3268_s6 + $0x78] sm:$0xff]  ;;  %v187_v47 = vld [vmem:[%s3268_s6 + $0x80] sm:$0xff]  ;;  %v188_v49 = vld [vmem:[%s3268_s6 + $0x88] sm:$0xff] }
  0x1e   : > { %3175 = vmatprep.subr.msk.bf16.mxu0 %vm3174_vm3, %v3173_v16  ;;  %3183 = vmatprep.subr.msk.bf16.mxu1 %vm3174_vm3, %v3173_v16  ;;  %v242_v46 = vld [vmem:[%s3268_s6 + $0x238] sm:$0xff]  ;;  %v243_v48 = vld [vmem:[%s3268_s6 + $0x240] sm:$0xff]  ;;  %v244_v50 = vld [vmem:[%s3268_s6 + $0x248] sm:$0xff] }
  0x1f   : > { %v189_v51 = vld [vmem:[%s3268_s6 + $0x90] sm:$0xff]  ;;  %v190_v53 = vld [vmem:[%s3268_s6 + $0x98] sm:$0xff]  ;;  %v191_v55 = vld [vmem:[%s3268_s6 + $0xa0] sm:$0xff] }
  0x20   : > { %v245_v52 = vld [vmem:[%s3268_s6 + $0x250] sm:$0xff]  ;;  %v246_v54 = vld [vmem:[%s3268_s6 + $0x258] sm:$0xff]  ;;  %v247_v56 = vld [vmem:[%s3268_s6 + $0x260] sm:$0xff] }
  0x21   : > { %3178 = vmatpush3.bf16.msk.msra.mxu0 %vm3174_vm3, %v3173_v16  ;;  %3188 = vmatpush3.bf16.msk.msra.mxu1 %vm3174_vm3, %v3173_v16  ;;  %v192_v57 = vld [vmem:[%s3268_s6 + $0xa8] sm:$0xff]  ;;  %v193_v59 = vld [vmem:[%s3268_s6 + $0xb0] sm:$0xff]  ;;  %v194_v61 = vld [vmem:[%s3268_s6 + $0xb8] sm:$0xff] }
  0x22   : > { %v248_v58 = vld [vmem:[%s3268_s6 + $0x268] sm:$0xff]  ;;  %v249_v60 = vld [vmem:[%s3268_s6 + $0x270] sm:$0xff]  ;;  %v250_v62 = vld [vmem:[%s3268_s6 + $0x278] sm:$0xff] }
  0x23   : > { %v195_v63 = vld [vmem:[%s3268_s6 + $0xc0] sm:$0xff]  ;;  %v196_v1 = vld [vmem:[%s3268_s6 + $0xc8] sm:$0xff]  ;;  %v197_v3 = vld [vmem:[%s3268_s6 + $0xd0] sm:$0xff] }
  0x24   : > { %2990 = vmatmul.mubr.msk.f32.vlgmr.msra.gmra.mrb[0].mxu0 %vm300_vm0, %v172_v17  ;;  %3074 = vmatmul.mubr.msk.f32.vlgmr.msra.gmra.mrb[0].mxu1 %vm300_vm0, %v228_v18  ;;  %v251_v0 = vld [vmem:[%s3268_s6 + $0x280] sm:$0xff]  ;;  %v252_v2 = vld [vmem:[%s3268_s6 + $0x288] sm:$0xff]  ;;  %v253_v4 = vld [vmem:[%s3268_s6 + $0x290] sm:$0xff] }
  0x25   : > { %2992 = vmatprep.mubr.msk.f32.mxu0 %vm300_vm0, %v173_v19  ;;  %3076 = vmatprep.mubr.msk.f32.mxu1 %vm300_vm0, %v229_v20  ;;  %v198_v5 = vld [vmem:[%s3268_s6 + $0xd8] sm:$0xff]  ;;  %v199_v7 = vld [vmem:[%s3268_s6 + $0xe0] sm:$0xff]  ;;  %v200_v9 = vld [vmem:[%s3268_s6 + $0xe8] sm:$0xff] }
  0x26   : > { %v254_v6 = vld [vmem:[%s3268_s6 + $0x298] sm:$0xff]  ;;  %v255_v8 = vld [vmem:[%s3268_s6 + $0x2a0] sm:$0xff]  ;;  %v256_v10 = vld [vmem:[%s3268_s6 + $0x2a8] sm:$0xff] }
  0x27   : > { %v201_v11 = vld [vmem:[%s3268_s6 + $0xf0] sm:$0xff]  ;;  %v202_v13 = vld [vmem:[%s3268_s6 + $0xf8] sm:$0xff]  ;;  %v203_v15 = vld [vmem:[%s3268_s6 + $0x100] sm:$0xff] }
  0x28   : > { %2993 = vmatmul.mubr.msk.f32.gmra.mrb[2].mxu0 %vm300_vm0, %v174_v21  ;;  %3077 = vmatmul.mubr.msk.f32.gmra.mrb[2].mxu1 %vm300_vm0, %v230_v22  ;;  %v257_v12 = vld [vmem:[%s3268_s6 + $0x2b0] sm:$0xff]  ;;  %v258_v14 = vld [vmem:[%s3268_s6 + $0x2b8] sm:$0xff]  ;;  %v259_v16 = vld [vmem:[%s3268_s6 + $0x2c0] sm:$0xff] }
  0x29   : > { %2995 = vmatprep.mubr.msk.f32.mxu0 %vm300_vm0, %v175_v23  ;;  %3079 = vmatprep.mubr.msk.f32.mxu1 %vm300_vm0, %v231_v24  ;;  %v204_v17 = vld [vmem:[%s3268_s6 + $0x108] sm:$0xff]  ;;  %v205_v19 = vld [vmem:[%s3268_s6 + $0x110] sm:$0xff]  ;;  %v206_v21 = vld [vmem:[%s3268_s6 + $0x118] sm:$0xff] }
  0x2a   : > { %v260_v18 = vld [vmem:[%s3268_s6 + $0x2c8] sm:$0xff]  ;;  %v261_v20 = vld [vmem:[%s3268_s6 + $0x2d0] sm:$0xff]  ;;  %v262_v22 = vld [vmem:[%s3268_s6 + $0x2d8] sm:$0xff] }
  0x2b   : > { %v207_v23 = vld [vmem:[%s3268_s6 + $0x120] sm:$0xff] }
  0x2c   : > { %2996 = vmatmul.mubr.msk.f32.gmra.mrb[4].mxu0 %vm300_vm0, %v176_v25  ;;  %3080 = vmatmul.mubr.msk.f32.gmra.mrb[4].mxu1 %vm300_vm0, %v232_v26  ;;  %v263_v24 = vld [vmem:[%s3268_s6 + $0x2e0] sm:$0xff]  ;;  %v208_v25 = vld [vmem:[%s3268_s6 + $0x128] sm:$0xff] }
  0x2d   : > { %2998 = vmatprep.mubr.msk.f32.mxu0 %vm300_vm0, %v177_v27  ;;  %3082 = vmatprep.mubr.msk.f32.mxu1 %vm300_vm0, %v233_v28  ;;  %v264_v26 = vld [vmem:[%s3268_s6 + $0x2e8] sm:$0xff]  ;;  %v209_v27 = vld [vmem:[%s3268_s6 + $0x130] sm:$0xff] }
  0x2e   : > { %v265_v28 = vld [vmem:[%s3268_s6 + $0x2f0] sm:$0xff] }
  0x30   : > { %2999 = vmatmul.mubr.msk.f32.gmra.mrb[6].mxu0 %vm300_vm0, %v178_v29  ;;  %3083 = vmatmul.mubr.msk.f32.gmra.mrb[6].mxu1 %vm300_vm0, %v234_v30  ;;  %v210_v29 = vld [vmem:[%s3268_s6 + $0x138] sm:$0xff] }
  0x31   : > { %3001 = vmatprep.mubr.msk.f32.mxu0 %vm300_vm0, %v179_v31  ;;  %3085 = vmatprep.mubr.msk.f32.mxu1 %vm300_vm0, %v235_v32  ;;  %v266_v30 = vld [vmem:[%s3268_s6 + $0x2f8] sm:$0xff]  ;;  %v211_v31 = vld [vmem:[%s3268_s6 + $0x140] sm:$0xff] }
  0x32   : > { %v267_v32 = vld [vmem:[%s3268_s6 + $0x300] sm:$0xff] }
  0x34   : > { %3002 = vmatmul.mubr.msk.f32.gmra.mrb[8].mxu0 %vm300_vm0, %v180_v33  ;;  %3086 = vmatmul.mubr.msk.f32.gmra.mrb[8].mxu1 %vm300_vm0, %v236_v34  ;;  %v212_v33 = vld [vmem:[%s3268_s6 + $0x148] sm:$0xff] }
  0x35   : > { %3004 = vmatprep.mubr.msk.f32.mxu0 %vm300_vm0, %v181_v35  ;;  %3088 = vmatprep.mubr.msk.f32.mxu1 %vm300_vm0, %v237_v36  ;;  %v268_v34 = vld [vmem:[%s3268_s6 + $0x308] sm:$0xff]  ;;  %v213_v35 = vld [vmem:[%s3268_s6 + $0x150] sm:$0xff] }
  0x36   : > { %v269_v36 = vld [vmem:[%s3268_s6 + $0x310] sm:$0xff] }
  0x38   : > { %3005 = vmatmul.mubr.msk.f32.gmra.mrb[10].mxu0 %vm300_vm0, %v182_v37  ;;  %3089 = vmatmul.mubr.msk.f32.gmra.mrb[10].mxu1 %vm300_vm0, %v238_v38  ;;  %v214_v37 = vld [vmem:[%s3268_s6 + $0x158] sm:$0xff] }
  0x39   : > { %3007 = vmatprep.mubr.msk.f32.mxu0 %vm300_vm0, %v183_v39  ;;  %3091 = vmatprep.mubr.msk.f32.mxu1 %vm300_vm0, %v239_v40  ;;  %v270_v38 = vld [vmem:[%s3268_s6 + $0x318] sm:$0xff]  ;;  %v215_v39 = vld [vmem:[%s3268_s6 + $0x160] sm:$0xff] }
  0x3a   : > { %v271_v40 = vld [vmem:[%s3268_s6 + $0x320] sm:$0xff] }
  0x3c   : > { %3008 = vmatmul.mubr.msk.f32.gmra.mrb[12].mxu0 %vm300_vm0, %v184_v41  ;;  %3092 = vmatmul.mubr.msk.f32.gmra.mrb[12].mxu1 %vm300_vm0, %v240_v42  ;;  %v216_v41 = vld [vmem:[%s3268_s6 + $0x168] sm:$0xff] }
  0x3d   : > { %3010 = vmatprep.mubr.msk.f32.mxu0 %vm300_vm0, %v185_v43  ;;  %3094 = vmatprep.mubr.msk.f32.mxu1 %vm300_vm0, %v241_v44  ;;  %v272_v42 = vld [vmem:[%s3268_s6 + $0x328] sm:$0xff]  ;;  %v217_v43 = vld [vmem:[%s3268_s6 + $0x170] sm:$0xff] }
  0x3e   : > { %v273_v44 = vld [vmem:[%s3268_s6 + $0x330] sm:$0xff] }
  0x40   : > { %3011 = vmatmul.mubr.msk.f32.gmra.mrb[14].mxu0 %vm300_vm0, %v186_v45  ;;  %3095 = vmatmul.mubr.msk.f32.gmra.mrb[14].mxu1 %vm300_vm0, %v242_v46  ;;  %v218_v45 = vld [vmem:[%s3268_s6 + $0x178] sm:$0xff] }
  0x41   : > { %3013 = vmatprep.mubr.msk.f32.mxu0 %vm300_vm0, %v187_v47  ;;  %3097 = vmatprep.mubr.msk.f32.mxu1 %vm300_vm0, %v243_v48  ;;  %v274_v46 = vld [vmem:[%s3268_s6 + $0x338] sm:$0xff]  ;;  %v219_v47 = vld [vmem:[%s3268_s6 + $0x180] sm:$0xff] }
  0x42   : > { %v275_v48 = vld [vmem:[%s3268_s6 + $0x340] sm:$0xff] }
  0x44   : > { %3014 = vmatmul.mubr.msk.f32.gmra.mrb[16].mxu0 %vm300_vm0, %v188_v49  ;;  %3098 = vmatmul.mubr.msk.f32.gmra.mrb[16].mxu1 %vm300_vm0, %v244_v50  ;;  %v220_v49 = vld [vmem:[%s3268_s6 + $0x188] sm:$0xff] }
  0x45   : > { %3016 = vmatprep.mubr.msk.f32.mxu0 %vm300_vm0, %v189_v51  ;;  %3100 = vmatprep.mubr.msk.f32.mxu1 %vm300_vm0, %v245_v52  ;;  %v276_v50 = vld [vmem:[%s3268_s6 + $0x348] sm:$0xff]  ;;  %v221_v51 = vld [vmem:[%s3268_s6 + $0x190] sm:$0xff] }
  0x46   : > { %v277_v52 = vld [vmem:[%s3268_s6 + $0x350] sm:$0xff] }
  0x48   : > { %3017 = vmatmul.mubr.msk.f32.gmra.mrb[18].mxu0 %vm300_vm0, %v190_v53  ;;  %3101 = vmatmul.mubr.msk.f32.gmra.mrb[18].mxu1 %vm300_vm0, %v246_v54  ;;  %v222_v53 = vld [vmem:[%s3268_s6 + $0x198] sm:$0xff] }
  0x49   : > { %3019 = vmatprep.mubr.msk.f32.mxu0 %vm300_vm0, %v191_v55  ;;  %3103 = vmatprep.mubr.msk.f32.mxu1 %vm300_vm0, %v247_v56  ;;  %v278_v54 = vld [vmem:[%s3268_s6 + $0x358] sm:$0xff]  ;;  %v223_v55 = vld [vmem:[%s3268_s6 + $0x1a0] sm:$0xff] }
  0x4a   : > { %v279_v56 = vld [vmem:[%s3268_s6 + $0x360] sm:$0xff] }
  0x4c   : > { %3020 = vmatmul.mubr.msk.f32.gmra.mrb[20].mxu0 %vm300_vm0, %v192_v57  ;;  %3104 = vmatmul.mubr.msk.f32.gmra.mrb[20].mxu1 %vm300_vm0, %v248_v58  ;;  %v224_v57 = vld [vmem:[%s3268_s6 + $0x1a8] sm:$0xff] }
  0x4d   : > { %3022 = vmatprep.mubr.msk.f32.mxu0 %vm300_vm0, %v193_v59  ;;  %3106 = vmatprep.mubr.msk.f32.mxu1 %vm300_vm0, %v249_v60  ;;  %v280_v58 = vld [vmem:[%s3268_s6 + $0x368] sm:$0xff]  ;;  %v225_v59 = vld [vmem:[%s3268_s6 + $0x1b0] sm:$0xff] }
  0x4e   : > { %v281_v60 = vld [vmem:[%s3268_s6 + $0x370] sm:$0xff] }
  0x50   : > { %3023 = vmatmul.mubr.msk.f32.gmra.mrb[22].mxu0 %vm300_vm0, %v194_v61  ;;  %3107 = vmatmul.mubr.msk.f32.gmra.mrb[22].mxu1 %vm300_vm0, %v250_v62  ;;  %v226_v61 = vld [vmem:[%s3268_s6 + $0x1b8] sm:$0xff] }
  0x51   : > { %3025 = vmatprep.mubr.msk.f32.mxu0 %vm300_vm0, %v195_v63  ;;  %3109 = vmatprep.mubr.msk.f32.mxu1 %vm300_vm0, %v251_v0  ;;  %v282_v62 = vld [vmem:[%s3268_s6 + $0x378] sm:$0xff] }
  0x54   : > { %3026 = vmatmul.mubr.msk.f32.gmra.mrb[24].mxu0 %vm300_vm0, %v196_v1  ;;  %3110 = vmatmul.mubr.msk.f32.gmra.mrb[24].mxu1 %vm300_vm0, %v252_v2 }
  0x55   : > { %3028 = vmatprep.mubr.msk.f32.mxu0 %vm300_vm0, %v197_v3  ;;  %3112 = vmatprep.mubr.msk.f32.mxu1 %vm300_vm0, %v253_v4  ;;  %v3504_v3 = vld [vmem:[%s5127_s2] ss:$0 sm:$0xff] }
  0x58   : > { %3029 = vmatmul.mubr.msk.f32.gmra.mrb[26].mxu0 %vm300_vm0, %v198_v5  ;;  %3113 = vmatmul.mubr.msk.f32.gmra.mrb[26].mxu1 %vm300_vm0, %v254_v6 }
  0x59   : > { %3031 = vmatprep.mubr.msk.f32.mxu0 %vm300_vm0, %v199_v7  ;;  %3115 = vmatprep.mubr.msk.f32.mxu1 %vm300_vm0, %v255_v8 }
  0x5c   : > { %3032 = vmatmul.mubr.msk.f32.gmra.mrb[28].mxu0 %vm300_vm0, %v200_v9  ;;  %3116 = vmatmul.mubr.msk.f32.gmra.mrb[28].mxu1 %vm300_vm0, %v256_v10 }
  0x5d   : > { %3034 = vmatprep.mubr.msk.f32.mxu0 %vm300_vm0, %v201_v11  ;;  %3118 = vmatprep.mubr.msk.f32.mxu1 %vm300_vm0, %v257_v12 }
  0x60   : > { %3035 = vmatmul.mubr.msk.f32.gmra.mrb[30].mxu0 %vm300_vm0, %v202_v13  ;;  %3119 = vmatmul.mubr.msk.f32.gmra.mrb[30].mxu1 %vm300_vm0, %v258_v14 }
  0x61   : > { %3037 = vmatprep.mubr.msk.f32.mxu0 %vm300_vm0, %v203_v15  ;;  %3121 = vmatprep.mubr.msk.f32.mxu1 %vm300_vm0, %v259_v16 }
  0x64   : > { %3038 = vmatmul.mubr.msk.f32.gmra.mrb[32].mxu0 %vm300_vm0, %v204_v17  ;;  %3122 = vmatmul.mubr.msk.f32.gmra.mrb[32].mxu1 %vm300_vm0, %v260_v18 }
  0x65   : > { %3040 = vmatprep.mubr.msk.f32.mxu0 %vm300_vm0, %v205_v19  ;;  %3124 = vmatprep.mubr.msk.f32.mxu1 %vm300_vm0, %v261_v20 }
  0x68   : > { %3041 = vmatmul.mubr.msk.f32.gmra.mrb[34].mxu0 %vm300_vm0, %v206_v21  ;;  %3125 = vmatmul.mubr.msk.f32.gmra.mrb[34].mxu1 %vm300_vm0, %v262_v22 }
  0x69   : > { %3043 = vmatprep.mubr.msk.f32.mxu0 %vm300_vm0, %v207_v23  ;;  %3127 = vmatprep.mubr.msk.f32.mxu1 %vm300_vm0, %v263_v24 }
  0x6c   : > { %3044 = vmatmul.mubr.msk.f32.gmra.mrb[36].mxu0 %vm300_vm0, %v208_v25  ;;  %3128 = vmatmul.mubr.msk.f32.gmra.mrb[36].mxu1 %vm300_vm0, %v264_v26 }
  0x6d   : > { %3046 = vmatprep.mubr.msk.f32.mxu0 %vm300_vm0, %v209_v27  ;;  %3130 = vmatprep.mubr.msk.f32.mxu1 %vm300_vm0, %v265_v28 }
  0x70   : > { %3047 = vmatmul.mubr.msk.f32.gmra.mrb[38].mxu0 %vm300_vm0, %v210_v29  ;;  %3131 = vmatmul.mubr.msk.f32.gmra.mrb[38].mxu1 %vm300_vm0, %v266_v30 }
  0x71   : > { %3049 = vmatprep.mubr.msk.f32.mxu0 %vm300_vm0, %v211_v31  ;;  %3133 = vmatprep.mubr.msk.f32.mxu1 %vm300_vm0, %v267_v32 }
  0x74   : > { %3050 = vmatmul.mubr.msk.f32.gmra.mrb[40].mxu0 %vm300_vm0, %v212_v33  ;;  %3134 = vmatmul.mubr.msk.f32.gmra.mrb[40].mxu1 %vm300_vm0, %v268_v34 }
  0x75   : > { %3052 = vmatprep.mubr.msk.f32.mxu0 %vm300_vm0, %v213_v35  ;;  %3136 = vmatprep.mubr.msk.f32.mxu1 %vm300_vm0, %v269_v36 }
  0x78   : > { %3053 = vmatmul.mubr.msk.f32.gmra.mrb[42].mxu0 %vm300_vm0, %v214_v37  ;;  %3137 = vmatmul.mubr.msk.f32.gmra.mrb[42].mxu1 %vm300_vm0, %v270_v38 }
  0x79   : > { %3055 = vmatprep.mubr.msk.f32.mxu0 %vm300_vm0, %v215_v39  ;;  %3139 = vmatprep.mubr.msk.f32.mxu1 %vm300_vm0, %v271_v40 }
  0x7c   : > { %3056 = vmatmul.mubr.msk.f32.gmra.mrb[44].mxu0 %vm300_vm0, %v216_v41  ;;  %3140 = vmatmul.mubr.msk.f32.gmra.mrb[44].mxu1 %vm300_vm0, %v272_v42 }
  0x7d   : > { %3058 = vmatprep.mubr.msk.f32.mxu0 %vm300_vm0, %v217_v43  ;;  %3142 = vmatprep.mubr.msk.f32.mxu1 %vm300_vm0, %v273_v44 }
  0x80   : > { %3059 = vmatmul.mubr.msk.f32.gmra.mrb[46].mxu0 %vm300_vm0, %v218_v45  ;;  %3143 = vmatmul.mubr.msk.f32.gmra.mrb[46].mxu1 %vm300_vm0, %v274_v46 }
  0x81   : > { %3061 = vmatprep.mubr.msk.f32.mxu0 %vm300_vm0, %v219_v47  ;;  %3145 = vmatprep.mubr.msk.f32.mxu1 %vm300_vm0, %v275_v48 }
  0x84   : > { %3062 = vmatmul.mubr.msk.f32.gmra.mrb[48].mxu0 %vm300_vm0, %v220_v49  ;;  %3146 = vmatmul.mubr.msk.f32.gmra.mrb[48].mxu1 %vm300_vm0, %v276_v50 }
  0x85   : > { %3064 = vmatprep.mubr.msk.f32.mxu0 %vm300_vm0, %v221_v51  ;;  %3148 = vmatprep.mubr.msk.f32.mxu1 %vm300_vm0, %v277_v52 }
  0x88   : > { %3065 = vmatmul.mubr.msk.f32.gmra.mrb[50].mxu0 %vm300_vm0, %v222_v53  ;;  %3149 = vmatmul.mubr.msk.f32.gmra.mrb[50].mxu1 %vm300_vm0, %v278_v54 }
  0x89   : > { %3067 = vmatprep.mubr.msk.f32.mxu0 %vm300_vm0, %v223_v55  ;;  %3151 = vmatprep.mubr.msk.f32.mxu1 %vm300_vm0, %v279_v56 }
  0x8c   : > { %3068 = vmatmul.mubr.msk.f32.gmra.mrb[52].mxu0 %vm300_vm0, %v224_v57  ;;  %3152 = vmatmul.mubr.msk.f32.gmra.mrb[52].mxu1 %vm300_vm0, %v280_v58 }
  0x8d   : > { %3070 = vmatprep.mubr.msk.f32.mxu0 %vm300_vm0, %v225_v59  ;;  %3154 = vmatprep.mubr.msk.f32.mxu1 %vm300_vm0, %v281_v60 }
  0x90   : > { %3071 = vmatmul.mubr.msk.f32.gmra.mrb[54].mxu0 %vm300_vm0, %v226_v61  ;;  %3155 = vmatmul.mubr.msk.f32.gmra.mrb[54].mxu1 %vm300_vm0, %v282_v62 }
  0xf7   : > { %v2991_v63 = vpop.f32.mrb[0].mxu0  ;;  %v3075_v0 = vpop.f32.mrb[0].mxu1 }
  0xf8   : > { %v707_v1 = vpop.f32.mrb[1].mxu0  ;;  %v987_v2 = vpop.f32.mrb[1].mxu1  ;;  %v713_v6 = vadd.f32 %v2991_v63, %v3504_v3  ;;  %v993_v8 = vadd.f32 %v3075_v0, %v3504_v3 }
  0xf9   : > { %v708_v10 = vadd.f32 %v3504_v3, %v707_v1  ;;  %v988_v11 = vadd.f32 %v3504_v3, %v987_v2 }
  0xfa   : > { %v1267_v18 = vmax.f32 %v713_v6, 0.0  ;;  %v3515_v21 = vmax.f32 %v993_v8, 0.0 }
  0xfb   : > { %v2994_v4 = vpop.f32.mrb[2].mxu0  ;;  %v3078_v5 = vpop.f32.mrb[2].mxu1  ;;  %v1266_v24 = vmax.f32 %v708_v10, 0.0  ;;  %v3519_v26 = vmax.f32 %v988_v11, 0.0 }
  0xfc   : > { %v717_v7 = vpop.f32.mrb[3].mxu0  ;;  %v997_v9 = vpop.f32.mrb[3].mxu1  ;;  %v723_v12 = vadd.f32 %v2994_v4, %v3504_v3  ;;  %v1003_v13 = vadd.f32 %v3078_v5, %v3504_v3  ;;  %5196 = vst [vmem:[#allocation3_spill] sm:$0xff] %v3515_v21 }
  0xfd   : > { %v718_v14 = vadd.f32 %v3504_v3, %v717_v7  ;;  %v998_v16 = vadd.f32 %v3504_v3, %v997_v9  ;;  %5197 = vst [vmem:[#allocation4_spill] sm:$0xff] %v3519_v26 }
  0xfe   : > { %v1269_v28 = vmax.f32 %v723_v12, 0.0  ;;  %v3522_v30 = vmax.f32 %v1003_v13, 0.0 }
  0xff   : > { %v2997_v15 = vpop.f32.mrb[4].mxu0  ;;  %v3081_v17 = vpop.f32.mrb[4].mxu1  ;;  %v1268_v32 = vmax.f32 %v718_v14, 0.0  ;;  %v3526_v35 = vmax.f32 %v998_v16, 0.0 }
 0x100   : > { %v733_v19 = vadd.f32 %v2997_v15, %v3504_v3  ;;  %v727_v20 = vpop.f32.mrb[5].mxu0  ;;  %v1013_v22 = vadd.f32 %v3081_v17, %v3504_v3  ;;  %v1007_v23 = vpop.f32.mrb[5].mxu1  ;;  %5198 = vst [vmem:[#allocation5_spill] sm:$0xff] %v3522_v30 }
 0x101   : > { %v728_v25 = vadd.f32 %v3504_v3, %v727_v20  ;;  %v1008_v27 = vadd.f32 %v3504_v3, %v1007_v23  ;;  %5200 = vst [vmem:[#allocation7_spill] sm:$0xff] %v3526_v35 }
 0x102   : > { %v1271_v29 = vmax.f32 %v733_v19, 0.0  ;;  %v3524_v31 = vmax.f32 %v1013_v22, 0.0 }
 0x103   : > { %v1270_v33 = vmax.f32 %v728_v25, 0.0  ;;  %v3000_v34 = vpop.f32.mrb[6].mxu0  ;;  %v3528_v36 = vmax.f32 %v1008_v27, 0.0  ;;  %v3084_v37 = vpop.f32.mrb[6].mxu1 }
 0x104   : > { %5199 = vst [vmem:[#allocation6_spill] sm:$0xff] %v3524_v31  ;;  %v1499_v38 = vmax.f32 %v1267_v18, %v1271_v29  ;;  %v743_v39 = vadd.f32 %v3000_v34, %v3504_v3  ;;  %v737_v40 = vpop.f32.mrb[7].mxu0  ;;  %v2386_v41 = vmax.f32 %v3524_v31, %v3515_v21  ;;  %v1017_v42 = vpop.f32.mrb[7].mxu1  ;;  %v1023_v47 = vadd.f32 %v3084_v37, %v3504_v3 }
 0x105   : > { %5201 = vst [vmem:[#allocation8_spill] sm:$0xff] %v3528_v36  ;;  %v1498_v43 = vmax.f32 %v1266_v24, %v1270_v33  ;;  %v738_v44 = vadd.f32 %v3504_v3, %v737_v40  ;;  %v2381_v45 = vmax.f32 %v3528_v36, %v3519_v26  ;;  %v1018_v50 = vadd.f32 %v3504_v3, %v1017_v42 }
 0x106   : > { %v1273_v46 = vmax.f32 %v743_v39, 0.0  ;;  %v2521_v52 = vmax.f32 %v3515_v21, %v3524_v31  ;;  %v2520_v53 = vmax.f32 %v3519_v26, %v3528_v36  ;;  %v3543_v57 = vmax.f32 %v1023_v47, 0.0 }
 0x107   : > { %v1272_v48 = vmax.f32 %v738_v44, 0.0  ;;  %v3003_v49 = vpop.f32.mrb[8].mxu0  ;;  %v3087_v51 = vpop.f32.mrb[8].mxu1  ;;  %v3547_v62 = vmax.f32 %v1018_v50, 0.0 }
 0x108   : > { %v1501_v54 = vmax.f32 %v1269_v28, %v1273_v46  ;;  %v753_v55 = vadd.f32 %v3003_v49, %v3504_v3  ;;  %v747_v56 = vpop.f32.mrb[9].mxu0  ;;  %5202 = vst [vmem:[#allocation9_spill] sm:$0xff] %v3543_v57  ;;  %v1033_v58 = vadd.f32 %v3087_v51, %v3504_v3  ;;  %v1027_v59 = vpop.f32.mrb[9].mxu1  ;;  %v2384_v1 = vmax.f32 %v3543_v57, %v3522_v30 }
 0x109   : > { %v1500_v60 = vmax.f32 %v1268_v32, %v1272_v48  ;;  %v748_v61 = vadd.f32 %v3504_v3, %v747_v56  ;;  %5203 = vst [vmem:[#allocation10_spill] sm:$0xff] %v3547_v62  ;;  %v1028_v63 = vadd.f32 %v3504_v3, %v1027_v59  ;;  %v2383_v5 = vmax.f32 %v3547_v62, %v3526_v35 }
 0x10a   : > { %v1275_v0 = vmax.f32 %v753_v55, 0.0  ;;  %v3555_v10 = vmax.f32 %v1033_v58, 0.0 }
 0x10b   : > { %v1274_v2 = vmax.f32 %v748_v61, 0.0  ;;  %v3006_v4 = vpop.f32.mrb[10].mxu0  ;;  %v3090_v6 = vpop.f32.mrb[10].mxu1  ;;  %v3557_v11 = vmax.f32 %v1028_v63, 0.0 }
 0x10c   : > { %v1507_v7 = vmax.f32 %v1499_v38, %v1275_v0  ;;  %v763_v8 = vadd.f32 %v3006_v4, %v3504_v3  ;;  %v757_v9 = vpop.f32.mrb[11].mxu0  ;;  %5204 = vst [vmem:[#allocation11_spill] sm:$0xff] %v3555_v10  ;;  %v1037_v12 = vpop.f32.mrb[11].mxu1  ;;  %v1043_v15 = vadd.f32 %v3090_v6, %v3504_v3  ;;  %v3563_v18 = vmax.f32 %v2386_v41, %v3555_v10 }
 0x10d   : > { %5205 = vst [vmem:[#allocation12_spill] sm:$0xff] %v3557_v11  ;;  %v1506_v13 = vmax.f32 %v1498_v43, %v1274_v2  ;;  %v758_v14 = vadd.f32 %v3504_v3, %v757_v9  ;;  %v1038_v16 = vadd.f32 %v3504_v3, %v1037_v12  ;;  %v3566_v22 = vmax.f32 %v2381_v45, %v3557_v11 }
 0x10e   : > { %v1277_v17 = vmax.f32 %v763_v8, 0.0  ;;  %v3569_v28 = vmax.f32 %v1043_v15, 0.0 }
 0x10f   : > { %v1276_v19 = vmax.f32 %v758_v14, 0.0  ;;  %v3009_v20 = vpop.f32.mrb[12].mxu0  ;;  %v3093_v23 = vpop.f32.mrb[12].mxu1  ;;  %v3571_v29 = vmax.f32 %v1038_v16, 0.0 }
 0x110   : > { %v1509_v24 = vmax.f32 %v1501_v54, %v1277_v17  ;;  %v773_v25 = vadd.f32 %v3009_v20, %v3504_v3  ;;  %v767_v27 = vpop.f32.mrb[13].mxu0  ;;  %5206 = vst [vmem:[#allocation13_spill] sm:$0xff] %v3569_v28  ;;  %v1047_v32 = vpop.f32.mrb[13].mxu1  ;;  %v1053_v37 = vadd.f32 %v3093_v23, %v3504_v3  ;;  %v3577_v40 = vmax.f32 %v2384_v1, %v3569_v28 }
 0x111   : > { %5207 = vst [vmem:[#allocation14_spill] sm:$0xff] %v3571_v29  ;;  %v1508_v33 = vmax.f32 %v1500_v60, %v1276_v19  ;;  %v768_v34 = vadd.f32 %v3504_v3, %v767_v27  ;;  %v1048_v38 = vadd.f32 %v3504_v3, %v1047_v32  ;;  %v3580_v42 = vmax.f32 %v2383_v5, %v3571_v29 }
 0x112   : > { %v1279_v39 = vmax.f32 %v773_v25, 0.0  ;;  %v3586_v47 = vmax.f32 %v1053_v37, 0.0 }
 0x113   : > { %v1278_v41 = vmax.f32 %v768_v34, 0.0  ;;  %v3012_v43 = vpop.f32.mrb[14].mxu0  ;;  %v3096_v44 = vpop.f32.mrb[14].mxu1  ;;  %v3593_v55 = vmax.f32 %v1048_v38, 0.0 }
 0x114   : > { %v3582_v45 = vmax.f32 %v1507_v7, %v1279_v39  ;;  %v3584_v46 = vmax.f32 %v1275_v0, %v1279_v39  ;;  %5208 = vst [vmem:[#allocation15_spill] sm:$0xff] %v3586_v47  ;;  %v783_v48 = vadd.f32 %v3012_v43, %v3504_v3  ;;  %v777_v49 = vpop.f32.mrb[15].mxu0  ;;  %v1057_v50 = vpop.f32.mrb[15].mxu1  ;;  %v2394_v58 = vmax.f32 %v3563_v18, %v3586_v47 }
 0x115   : > { %v3589_v51 = vmax.f32 %v1506_v13, %v1278_v41  ;;  %v3591_v54 = vmax.f32 %v1274_v2, %v1278_v41  ;;  %5209 = vst [vmem:[#allocation16_spill] sm:$0xff] %v3593_v55  ;;  %v778_v56 = vadd.f32 %v3504_v3, %v777_v49  ;;  %v2389_v60 = vmax.f32 %v3566_v22, %v3593_v55 }
 0x116   : > { %v1281_v59 = vmax.f32 %v783_v48, 0.0  ;;  %v1063_v2 = vadd.f32 %v3096_v44, %v3504_v3  ;;  %v1058_v5 = vadd.f32 %v3504_v3, %v1057_v50 }
 0x117   : > { %v1280_v61 = vmax.f32 %v778_v56, 0.0  ;;  %v3015_v63 = vpop.f32.mrb[16].mxu0  ;;  %v3099_v0 = vpop.f32.mrb[16].mxu1 }
 0x118   : > { %v3600_v1 = vmax.f32 %v1509_v24, %v1281_v59  ;;  %v3602_v4 = vmax.f32 %v1277_v17, %v1281_v59  ;;  %v787_v6 = vpop.f32.mrb[17].mxu0  ;;  %v1067_v7 = vpop.f32.mrb[17].mxu1  ;;  %v793_v12 = vadd.f32 %v3015_v63, %v3504_v3  ;;  %v1073_v13 = vadd.f32 %v3099_v0, %v3504_v3 }
 0x119   : > { %v3606_v8 = vmax.f32 %v1508_v33, %v1280_v61  ;;  %v3608_v9 = vmax.f32 %v1276_v19, %v1280_v61  ;;  %v3612_v14 = vmax.f32 %v1063_v2, 0.0  ;;  %v3614_v15 = vmax.f32 %v1058_v5, 0.0 }
 0x11a   : > { %v788_v16 = vadd.f32 %v3504_v3, %v787_v6  ;;  %v1068_v17 = vadd.f32 %v3504_v3, %v1067_v7  ;;  %v3618_v18 = vmax.f32 %v793_v12, 0.0  ;;  %v3620_v20 = vmax.f32 %v1073_v13, 0.0 }
 0x11b   : > { %5210 = vst [vmem:[#allocation17_spill] sm:$0xff] %v3612_v14  ;;  %5211 = vst [vmem:[#allocation18_spill] sm:$0xff] %v3614_v15  ;;  %v3018_v22 = vpop.f32.mrb[18].mxu0  ;;  %v3102_v23 = vpop.f32.mrb[18].mxu1  ;;  %v3626_v19 = vmax.f32 %v2521_v52, %v3555_v10  ;;  %v3632_v24 = vmax.f32 %v2520_v53, %v3557_v11  ;;  %v2392_v25 = vmax.f32 %v3577_v40, %v3612_v14 }
 0x11c   : > { %5212 = vst [vmem:[#allocation19_spill] sm:$0xff] %v3620_v20  ;;  %v2391_v27 = vmax.f32 %v3580_v42, %v3614_v15  ;;  %v797_v32 = vpop.f32.mrb[19].mxu0  ;;  %v1077_v33 = vpop.f32.mrb[19].mxu1  ;;  %v1523_v34 = vmax.f32 %v3582_v45, %v3618_v18  ;;  %v1691_v52 = vmax.f32 %v3584_v46, %v3618_v18  ;;  %v3643_v37 = vmax.f32 %v2394_v58, %v3620_v20 }
 0x11d   : > { %v3645_v38 = vmax.f32 %v788_v16, 0.0  ;;  %v3647_v53 = vmax.f32 %v1068_v17, 0.0  ;;  %v803_v39 = vadd.f32 %v3018_v22, %v3504_v3  ;;  %v1083_v40 = vadd.f32 %v3102_v23, %v3504_v3 }
 0x11e   : > { %v798_v41 = vadd.f32 %v3504_v3, %v797_v32  ;;  %v1078_v46 = vadd.f32 %v3504_v3, %v1077_v33 }
 0x11f   : > { %5213 = vst [vmem:[#allocation20_spill] sm:$0xff] %v3647_v53  ;;  %v3021_v42 = vpop.f32.mrb[20].mxu0  ;;  %v3105_v43 = vpop.f32.mrb[20].mxu1  ;;  %v1522_v44 = vmax.f32 %v3589_v51, %v3645_v38  ;;  %v1690_v45 = vmax.f32 %v3591_v54, %v3645_v38  ;;  %v3659_v56 = vmax.f32 %v2389_v60, %v3647_v53  ;;  %v3661_v58 = vmax.f32 %v803_v39, 0.0 }
 0x120   : > { %v813_v48 = vadd.f32 %v3021_v42, %v3504_v3  ;;  %v807_v49 = vpop.f32.mrb[21].mxu0  ;;  %v1087_v50 = vpop.f32.mrb[21].mxu1  ;;  %v3663_v59 = vmax.f32 %v1083_v40, 0.0  ;;  %v3665_v61 = vmax.f32 %v798_v41, 0.0  ;;  %v3667_v63 = vmax.f32 %v1078_v46, 0.0 }
 0x121   : > { %v1525_v54 = vmax.f32 %v3600_v1, %v3661_v58  ;;  %v1693_v0 = vmax.f32 %v3602_v4, %v3661_v58  ;;  %v1093_v2 = vadd.f32 %v3105_v43, %v3504_v3  ;;  %v808_v60 = vadd.f32 %v3504_v3, %v807_v49 }
 0x122   : > { %5214 = vst [vmem:[#allocation21_spill] sm:$0xff] %v3663_v59  ;;  %5215 = vst [vmem:[#allocation22_spill] sm:$0xff] %v3667_v63  ;;  %v3669_v51 = vmax.f32 %v813_v48, 0.0  ;;  %v3678_v7 = vmax.f32 %v2392_v25, %v3663_v59  ;;  %v1524_v12 = vmax.f32 %v3606_v8, %v3665_v61  ;;  %v1692_v1 = vmax.f32 %v3608_v9, %v3665_v61 }
 0x123   : > { %v3024_v5 = vpop.f32.mrb[22].mxu0  ;;  %v3108_v6 = vpop.f32.mrb[22].mxu1  ;;  %v3685_v17 = vmax.f32 %v2391_v27, %v3667_v63  ;;  %v3695_v25 = vmax.f32 %v1093_v2, 0.0  ;;  %v1286_v8 = vmax.f32 %v808_v60, 0.0  ;;  %v1088_v32 = vadd.f32 %v3504_v3, %v1087_v50 }
 0x124   : > { %v817_v13 = vpop.f32.mrb[23].mxu0  ;;  %v1097_v16 = vpop.f32.mrb[23].mxu1  ;;  %v3688_v4 = vmax.f32 %v1523_v34, %v3669_v51  ;;  %v3691_v22 = vmax.f32 %v1691_v52, %v3669_v51  ;;  %v1826_v23 = vmax.f32 %v3618_v18, %v3669_v51  ;;  %v823_v33 = vadd.f32 %v3024_v5, %v3504_v3 }
 0x125   : > { %5216 = vst [vmem:[#allocation23_spill] sm:$0xff] %v3695_v25  ;;  %v1103_v9 = vadd.f32 %v3108_v6, %v3504_v3  ;;  %v2402_v34 = vmax.f32 %v3643_v37, %v3695_v25  ;;  %v818_v52 = vadd.f32 %v3504_v3, %v817_v13  ;;  %v3703_v42 = vmax.f32 %v1522_v44, %v1286_v8 }
 0x126   : > { %v3705_v18 = vmax.f32 %v1690_v45, %v1286_v8  ;;  %v1825_v43 = vmax.f32 %v3645_v38, %v1286_v8  ;;  %v3708_v46 = vmax.f32 %v1088_v32, 0.0  ;;  %v3710_v48 = vmax.f32 %v823_v33, 0.0 }
 0x127   : > { %v3027_v27 = vpop.f32.mrb[24].mxu0  ;;  %v3111_v39 = vpop.f32.mrb[24].mxu1  ;;  %v3712_v49 = vmax.f32 %v1103_v9, 0.0  ;;  %v3714_v50 = vmax.f32 %v818_v52, 0.0  ;;  %v1098_v37 = vadd.f32 %v3504_v3, %v1097_v16 }
 0x128   : > { %v827_v40 = vpop.f32.mrb[25].mxu0  ;;  %v1107_v41 = vpop.f32.mrb[25].mxu1  ;;  %5217 = vst [vmem:[#allocation24_spill] sm:$0xff] %v3708_v46  ;;  %v2397_v51 = vmax.f32 %v3659_v56, %v3708_v46  ;;  %v833_v44 = vadd.f32 %v3027_v27, %v3504_v3  ;;  %v3721_v60 = vmax.f32 %v1525_v54, %v3710_v48  ;;  %v3724_v38 = vmax.f32 %v1693_v0, %v3710_v48 }
 0x129   : > { %5218 = vst [vmem:[#allocation25_spill] sm:$0xff] %v3712_v49  ;;  %v1828_v5 = vmax.f32 %v3661_v58, %v3710_v48  ;;  %v2400_v6 = vmax.f32 %v3678_v7, %v3712_v49  ;;  %v3731_v56 = vmax.f32 %v1524_v12, %v3714_v50  ;;  %v3734_v8 = vmax.f32 %v1692_v1, %v3714_v50 }
 0x12a   : > { %v1827_v54 = vmax.f32 %v3665_v61, %v3714_v50  ;;  %v3738_v32 = vmax.f32 %v1098_v37, 0.0  ;;  %v3740_v0 = vmax.f32 %v833_v44, 0.0  ;;  %v1113_v58 = vadd.f32 %v3111_v39, %v3504_v3 }
 0x12b   : > { %v3030_v2 = vpop.f32.mrb[26].mxu0  ;;  %v3114_v45 = vpop.f32.mrb[26].mxu1  ;;  %v2529_v7 = vmax.f32 %v3626_v19, %v3586_v47  ;;  %v828_v33 = vadd.f32 %v3504_v3, %v827_v40  ;;  %v1108_v12 = vadd.f32 %v3504_v3, %v1107_v41  ;;  %v2528_v1 = vmax.f32 %v3632_v24, %v3593_v55 }
 0x12c   : > { %v837_v13 = vpop.f32.mrb[27].mxu0  ;;  %v1117_v16 = vpop.f32.mrb[27].mxu1  ;;  %5219 = vst [vmem:[#allocation26_spill] sm:$0xff] %v3738_v32  ;;  %v2399_v61 = vmax.f32 %v3685_v17, %v3738_v32  ;;  %v1539_v52 = vmax.f32 %v3688_v4, %v3740_v0  ;;  %v1699_v19 = vmax.f32 %v3691_v22, %v3740_v0  ;;  %v3758_v40 = vmax.f32 %v1826_v23, %v3740_v0 }
 0x12d   : > { %v1347_v41 = vmax.f32 %v1113_v58, 0.0  ;;  %v2533_v24 = vmax.f32 %v2529_v7, %v3620_v20  ;;  %v3761_v50 = vmax.f32 %v828_v33, 0.0  ;;  %v1346_v37 = vmax.f32 %v1108_v12, 0.0 }
 0x12e   : > { %v2532_v44 = vmax.f32 %v2528_v1, %v3647_v53  ;;  %v843_v17 = vadd.f32 %v3030_v2, %v3504_v3  ;;  %v2523_v22 = vmax.f32 %v3522_v30, %v3543_v57  ;;  %v838_v23 = vadd.f32 %v3504_v3, %v837_v13 }
 0x12f   : > { %v3033_v9 = vpop.f32.mrb[28].mxu0  ;;  %v3749_v27 = vpop.f32.mrb[28].mxu1  ;;  %v3765_v55 = vmax.f32 %v2402_v34, %v1347_v41  ;;  %v2537_v4 = vmax.f32 %v2533_v24, %v3695_v25  ;;  %v3773_v58 = vmax.f32 %v1825_v43, %v3761_v50  ;;  %v3775_v7 = vmax.f32 %v2397_v51, %v1346_v37 }
 0x130   : > { %v847_v39 = vpop.f32.mrb[29].mxu0  ;;  %v1127_v48 = vpop.f32.mrb[29].mxu1  ;;  %v2536_v2 = vmax.f32 %v2532_v44, %v3708_v46  ;;  %v3782_v1 = vmax.f32 %v843_v17, 0.0  ;;  %v1123_v24 = vadd.f32 %v3114_v45, %v3504_v3  ;;  %v1118_v51 = vadd.f32 %v3504_v3, %v1117_v16 }
 0x131   : > { %v3779_v34 = vmax.f32 %v2537_v4, %v1347_v41  ;;  %v2522_v53 = vmax.f32 %v3526_v35, %v3547_v62  ;;  %v853_v41 = vadd.f32 %v3033_v9, %v3504_v3  ;;  %v2527_v9 = vmax.f32 %v2523_v22, %v3569_v28 }
 0x132   : > { %v3788_v43 = vmax.f32 %v2536_v2, %v1346_v37  ;;  %v1541_v45 = vmax.f32 %v3721_v60, %v3782_v1  ;;  %v1701_v17 = vmax.f32 %v3724_v38, %v3782_v1  ;;  %v3803_v13 = vmax.f32 %v1828_v5, %v3782_v1 }
 0x133   : > { %v3036_v11 = vpop.f32.mrb[30].mxu0  ;;  %v3120_v36 = vpop.f32.mrb[30].mxu1  ;;  %v1349_v37 = vmax.f32 %v1123_v24, 0.0  ;;  %v3810_v62 = vmax.f32 %v838_v23, 0.0  ;;  %v1348_v35 = vmax.f32 %v1118_v51, 0.0  ;;  %v2526_v57 = vmax.f32 %v2522_v53, %v3571_v29 }
 0x134   : > { %v857_v33 = vpop.f32.mrb[31].mxu0  ;;  %v3777_v12 = vpop.f32.mrb[31].mxu1  ;;  %v3813_v60 = vmax.f32 %v853_v41, 0.0  ;;  %v2531_v38 = vmax.f32 %v2527_v9, %v3612_v14  ;;  %v848_v29 = vadd.f32 %v3504_v3, %v847_v39 }
 0x135   : > { %v2404_v30 = vmax.f32 %v2400_v6, %v1349_v37  ;;  %v1540_v5 = vmax.f32 %v3731_v56, %v3810_v62  ;;  %v1700_v24 = vmax.f32 %v3734_v8, %v3810_v62  ;;  %v3821_v46 = vmax.f32 %v1827_v54, %v3810_v62 }
 0x136   : > { %v3827_v51 = vmax.f32 %v2399_v61, %v1348_v35  ;;  %v2530_v53 = vmax.f32 %v2526_v57, %v3614_v15  ;;  %v2535_v56 = vmax.f32 %v2531_v38, %v3663_v59  ;;  %v3836_v9 = vmax.f32 %v1539_v52, %v3813_v60 }
 0x137   : > { %v3794_v4 = vpop.f32.mrb[32].mxu0  ;;  %v3796_v44 = vpop.f32.mrb[32].mxu1  ;;  %v3839_v8 = vmax.f32 %v1699_v19, %v3813_v60  ;;  %v1133_v15 = vadd.f32 %v3749_v27, %v3504_v3  ;;  %v1128_v52 = vadd.f32 %v3504_v3, %v1127_v48  ;;  %v863_v19 = vadd.f32 %v3036_v11, %v3504_v3 }
 0x138   : > { %v3805_v16 = vpop.f32.mrb[33].mxu0  ;;  %v3807_v2 = vpop.f32.mrb[33].mxu1  ;;  %v2534_v61 = vmax.f32 %v2530_v53, %v3667_v63  ;;  %v2539_v38 = vmax.f32 %v2535_v56, %v3712_v49  ;;  %v3853_v59 = vadd.f32 %v3120_v36, %v3504_v3  ;;  %v1294_v14 = vmax.f32 %v848_v29, 0.0 }
 0x139   : > { %v1351_v63 = vmax.f32 %v1133_v15, 0.0  ;;  %v858_v27 = vadd.f32 %v3504_v3, %v857_v33  ;;  %v1350_v49 = vmax.f32 %v1128_v52, 0.0  ;;  %v3865_v11 = vmax.f32 %v863_v19, 0.0 }
 0x13a   : > { %v2538_v57 = vmax.f32 %v2534_v61, %v3738_v32  ;;  %v2543_v48 = vmax.f32 %v2539_v38, %v1349_v37  ;;  %v1353_v36 = vmax.f32 %v3853_v59, 0.0  ;;  %v5221_v29 = vmax.f32 %v3703_v42, %v3761_v50 }
 0x13b   : > { %v3823_v22 = vpop.f32.mrb[34].mxu0  ;;  %v3825_v23 = vpop.f32.mrb[34].mxu1  ;;  %v3871_v25 = vmax.f32 %v3765_v55, %v1351_v63  ;;  %v5222_v33 = vmax.f32 %v3705_v18, %v3761_v50  ;;  %v1833_v37 = vmax.f32 %v3773_v58, %v1294_v14  ;;  %v1964_v38 = vmax.f32 %v3761_v50, %v1294_v14 }
 0x13c   : > { %v3830_v6 = vpop.f32.mrb[35].mxu0  ;;  %v3832_v41 = vpop.f32.mrb[35].mxu1  ;;  %v3868_v28 = vmax.f32 %v2538_v57, %v1348_v35  ;;  %v3876_v15 = vmax.f32 %v5221_v29, %v1294_v14  ;;  %v3890_v55 = vmax.f32 %v3775_v7, %v1350_v49  ;;  %v3893_v42 = vmax.f32 %v1541_v45, %v3865_v11 }
 0x13d   : > { %5220 = vst [vmem:[#allocation27_spill] sm:$0xff] %v3871_v25  ;;  %v3881_v61 = vmax.f32 %v5222_v33, %v1294_v14  ;;  %v3900_v18 = vmax.f32 %v1701_v17, %v3865_v11  ;;  %v1836_v14 = vmax.f32 %v3803_v13, %v3865_v11  ;;  %v1967_v50 = vmax.f32 %v3782_v1, %v3865_v11 }
 0x13e   : > { %5223 = vst [vmem:[#allocation28_spill] sm:$0xff] %v3890_v55  ;;  %v3906_v58 = vmax.f32 %v2404_v30, %v1353_v36  ;;  %v3908_v7 = vmax.f32 %v858_v27, 0.0  ;;  %v1138_v45 = vadd.f32 %v3504_v3, %v3777_v12  ;;  %v873_v19 = vadd.f32 %v3794_v4, %v3504_v3 }
 0x13f   : > { %v3855_v54 = vpop.f32.mrb[36].mxu0  ;;  %v3857_v53 = vpop.f32.mrb[36].mxu1  ;;  %v1153_v17 = vadd.f32 %v3796_v44, %v3504_v3  ;;  %v2545_v29 = vmax.f32 %v3779_v34, %v1351_v63  ;;  %v868_v13 = vadd.f32 %v3504_v3, %v3805_v16  ;;  %v2547_v47 = vmax.f32 %v2543_v48, %v1353_v36 }
 0x140   : > { %v3861_v39 = vpop.f32.mrb[37].mxu0  ;;  %v3863_v56 = vpop.f32.mrb[37].mxu1  ;;  %5224 = vst [vmem:[#allocation29_spill] sm:$0xff] %v3906_v58  ;;  %v3924_v1 = vmax.f32 %v1540_v5, %v3908_v7  ;;  %v3927_v12 = vmax.f32 %v1700_v24, %v3908_v7  ;;  %v1835_v4 = vmax.f32 %v3821_v46, %v3908_v7  ;;  %v1966_v44 = vmax.f32 %v3810_v62, %v3908_v7 }
 0x141   : > { %v1352_v16 = vmax.f32 %v1138_v45, 0.0  ;;  %v3937_v27 = vmax.f32 %v873_v19, 0.0  ;;  %v1355_v11 = vmax.f32 %v1153_v17, 0.0  ;;  %v3939_v32 = vmax.f32 %v868_v13, 0.0 }
 0x142   : > { %v1148_v5 = vadd.f32 %v3504_v3, %v3807_v2  ;;  %v2544_v24 = vmax.f32 %v3788_v43, %v1350_v49  ;;  %v883_v46 = vadd.f32 %v3823_v22, %v3504_v3  ;;  %v1163_v62 = vadd.f32 %v3825_v23, %v3504_v3 }
 0x143   : > { %v3885_v59 = vpop.f32.mrb[38].mxu0  ;;  %v3887_v35 = vpop.f32.mrb[38].mxu1  ;;  %v3949_v7 = vmax.f32 %v3827_v51, %v1352_v16  ;;  %v1555_v45 = vmax.f32 %v3836_v9, %v3937_v27  ;;  %v1707_v2 = vmax.f32 %v3839_v8, %v3937_v27  ;;  %v5226_v49 = vmax.f32 %v3758_v40, %v3813_v60 }
 0x144   : > { %v3895_v57 = vpop.f32.mrb[39].mxu0  ;;  %v3897_v52 = vpop.f32.mrb[39].mxu1  ;;  %v5227_v22 = vmax.f32 %v3740_v0, %v3813_v60  ;;  %v2414_v51 = vmax.f32 %v3871_v25, %v1355_v11  ;;  %v3976_v20 = vmax.f32 %v2545_v29, %v1355_v11  ;;  %v1554_v8 = vmax.f32 %v3876_v15, %v3939_v32 }
 0x145   : > { %5225 = vst [vmem:[#allocation30_spill] sm:$0xff] %v3949_v7  ;;  %v3963_v43 = vmax.f32 %v5226_v49, %v3937_v27  ;;  %v1706_v40 = vmax.f32 %v3881_v61, %v3939_v32  ;;  %v3983_v49 = vmax.f32 %v1833_v37, %v3939_v32  ;;  %v3986_v0 = vmax.f32 %v1964_v38, %v3939_v32 }
 0x146   : > { %v3969_v23 = vmax.f32 %v5227_v22, %v3937_v27  ;;  %v1354_v60 = vmax.f32 %v1148_v5, 0.0  ;;  %v3988_v22 = vmax.f32 %v883_v46, 0.0  ;;  %v1357_v26 = vmax.f32 %v1163_v62, 0.0 }
 0x147   : > { %v3919_v33 = vpop.f32.mrb[40].mxu0  ;;  %v3921_v30 = vpop.f32.mrb[40].mxu1  ;;  %v878_v29 = vadd.f32 %v3504_v3, %v3830_v6  ;;  %v1158_v15 = vadd.f32 %v3504_v3, %v3832_v41  ;;  %v893_v31 = vadd.f32 %v3855_v54, %v3504_v3 }
 0x148   : > { %v3933_v63 = vpop.f32.mrb[41].mxu0  ;;  %v3935_v34 = vpop.f32.mrb[41].mxu1  ;;  %v2409_v37 = vmax.f32 %v3890_v55, %v1354_v60  ;;  %v3999_v10 = vmax.f32 %v2544_v24, %v1354_v60  ;;  %v1557_v38 = vmax.f32 %v3893_v42, %v3988_v22  ;;  %v1709_v6 = vmax.f32 %v3900_v18, %v3988_v22 }
 0x149   : > { %v4010_v41 = vmax.f32 %v1836_v14, %v3988_v22  ;;  %v4013_v36 = vmax.f32 %v1967_v50, %v3988_v22  ;;  %v2412_v46 = vmax.f32 %v3906_v58, %v1357_v26  ;;  %v4016_v24 = vmax.f32 %v2547_v47, %v1357_v26 }
 0x14a   : > { %v4018_v62 = vmax.f32 %v878_v29, 0.0  ;;  %v1356_v42 = vmax.f32 %v1158_v15, 0.0  ;;  %v2546_v60 = vmax.f32 %v3868_v28, %v1352_v16  ;;  %v1173_v18 = vadd.f32 %v3857_v53, %v3504_v3 }
 0x14b   : > { %v3953_v19 = vpop.f32.mrb[42].mxu0  ;;  %v3955_v17 = vpop.f32.mrb[42].mxu1  ;;  %v888_v14 = vadd.f32 %v3504_v3, %v3861_v39  ;;  %v1303_v15 = vmax.f32 %v893_v31, 0.0 }
 0x14c   : > { %v3972_v9 = vpop.f32.mrb[43].mxu0  ;;  %v3974_v13 = vpop.f32.mrb[43].mxu1  ;;  %v1556_v26 = vmax.f32 %v3924_v1, %v4018_v62  ;;  %v1708_v47 = vmax.f32 %v3927_v12, %v4018_v62  ;;  %v4036_v28 = vmax.f32 %v1835_v4, %v4018_v62  ;;  %v4039_v54 = vmax.f32 %v1966_v44, %v4018_v62 }
 0x14d   : > { %v2411_v39 = vmax.f32 %v3949_v7, %v1356_v42  ;;  %v4046_v29 = vmax.f32 %v2546_v60, %v1356_v42  ;;  %v1359_v21 = vmax.f32 %v1173_v18, 0.0  ;;  %v4048_v1 = vmax.f32 %v888_v14, 0.0 }
 0x14e   : > { %v4052_v12 = vadd.f32 %v3504_v3, %v3863_v56  ;;  %v903_v4 = vadd.f32 %v3885_v59, %v3504_v3  ;;  %v4056_v44 = vmax.f32 %v1555_v45, %v1303_v15  ;;  %v4058_v58 = vmax.f32 %v1707_v2, %v1303_v15 }
 0x14f   : > { %v3994_v11 = vpop.f32.mrb[44].mxu0  ;;  %v3996_v61 = vpop.f32.mrb[44].mxu1  ;;  %v1842_v55 = vmax.f32 %v3963_v43, %v1303_v15  ;;  %v1973_v42 = vmax.f32 %v3969_v23, %v1303_v15  ;;  %v2104_v18 = vmax.f32 %v3937_v27, %v1303_v15  ;;  %v4067_v14 = vmax.f32 %v2414_v51, %v1359_v21 }
 0x150   : > { %v4003_v5 = vpop.f32.mrb[45].mxu0  ;;  %v4005_v48 = vpop.f32.mrb[45].mxu1  ;;  %v4070_v56 = vmax.f32 %v1554_v8, %v4048_v1  ;;  %v4077_v2 = vmax.f32 %v1706_v40, %v4048_v1  ;;  %v1841_v43 = vmax.f32 %v3983_v49, %v4048_v1  ;;  %v1972_v23 = vmax.f32 %v3986_v0, %v4048_v1 }
 0x151   : > { %v2103_v27 = vmax.f32 %v3939_v32, %v4048_v1  ;;  %v1358_v51 = vmax.f32 %v4052_v12, 0.0  ;;  %v4086_v8 = vmax.f32 %v903_v4, 0.0  ;;  %v1183_v15 = vadd.f32 %v3887_v35, %v3504_v3 }
 0x152   : > { %v898_v40 = vadd.f32 %v3504_v3, %v3895_v57  ;;  %v1178_v7 = vadd.f32 %v3504_v3, %v3897_v52  ;;  %v913_v49 = vadd.f32 %v3919_v33, %v3504_v3  ;;  %v1193_v0 = vadd.f32 %v3921_v30, %v3504_v3 }
 0x153   : > { %v4027_v50 = vpop.f32.mrb[46].mxu0  ;;  %v4029_v25 = vpop.f32.mrb[46].mxu1  ;;  %v2553_v32 = vmax.f32 %v3976_v20, %v1359_v21  ;;  %v4103_v4 = vmax.f32 %v2409_v37, %v1358_v51  ;;  %v4106_v35 = vmax.f32 %v1557_v38, %v4086_v8  ;;  %v4109_v57 = vmax.f32 %v1709_v6, %v4086_v8 }
 0x154   : > { %v4041_v53 = vpop.f32.mrb[47].mxu0  ;;  %v4043_v16 = vpop.f32.mrb[47].mxu1  ;;  %v1844_v30 = vmax.f32 %v4010_v41, %v4086_v8  ;;  %v1975_v21 = vmax.f32 %v4013_v36, %v4086_v8  ;;  %v2106_v20 = vmax.f32 %v3988_v22, %v4086_v8  ;;  %v1361_v37 = vmax.f32 %v1183_v15, 0.0 }
 0x155   : > { %v1360_v38 = vmax.f32 %v1178_v7, 0.0  ;;  %v1363_v6 = vmax.f32 %v1193_v0, 0.0  ;;  %v1188_v41 = vadd.f32 %v3504_v3, %v3935_v34 }
 0x157   : > { %v4062_v60 = vpop.f32.mrb[48].mxu0  ;;  %v4064_v31 = vpop.f32.mrb[48].mxu1  ;;  %v4151_v34 = vmax.f32 %v2411_v39, %v1360_v38  ;;  %v1362_v0 = vmax.f32 %v1188_v41, 0.0 }
 0x158   : > { %v4072_v59 = vpop.f32.mrb[49].mxu0  ;;  %v4074_v45 = vpop.f32.mrb[49].mxu1 }
 0x159   : > { %5228 = vst [vmem:[#allocation31_spill] sm:$0xff] %v4074_v45  ;;  %v4125_v45 = vmax.f32 %v2412_v46, %v1361_v37 }
 0x15b   : > { %v4099_v1 = vpop.f32.mrb[50].mxu0  ;;  %v4101_v12 = vpop.f32.mrb[50].mxu1 }
 0x15c   : > { %5229 = vst [vmem:[#allocation32_spill] sm:$0xff] %v4099_v1  ;;  %5230 = vst [vmem:[#allocation33_spill] sm:$0xff] %v4101_v12  ;;  %v4111_v52 = vpop.f32.mrb[51].mxu0  ;;  %v4113_v33 = vpop.f32.mrb[51].mxu1  ;;  %v4121_v12 = vmax.f32 %v898_v40, 0.0  ;;  %v4123_v1 = vmax.f32 %v913_v49, 0.0  ;;  %v2422_v49 = vmax.f32 %v4067_v14, %v1363_v6 }
 0x15d   : > { %5231 = vst [vmem:[#allocation34_spill] sm:$0xff] %v4111_v52  ;;  %5232 = vst [vmem:[#allocation35_spill] sm:$0xff] %v4113_v33  ;;  %v908_v33 = vadd.f32 %v3504_v3, %v3933_v63 }
 0x15e   : > { %v4136_v22 = vmax.f32 %v1556_v26, %v4121_v12  ;;  %v4139_v7 = vmax.f32 %v1708_v47, %v4121_v12  ;;  %v1843_v46 = vmax.f32 %v4036_v28, %v4121_v12  ;;  %v1974_v8 = vmax.f32 %v4039_v54, %v4121_v12 }
 0x15f   : > { %v4131_v52 = vpop.f32.mrb[52].mxu0  ;;  %v4133_v36 = vpop.f32.mrb[52].mxu1  ;;  %v2105_v3 = vmax.f32 %v4018_v62, %v4121_v12  ;;  %v1571_v26 = vmax.f32 %v4056_v44, %v4123_v1  ;;  %v1715_v47 = vmax.f32 %v4058_v58, %v4123_v1  ;;  %v4158_v28 = vmax.f32 %v1842_v55, %v4123_v1  ;;  %v4177_v55 = vld [vmem:[%s5127_s2] ss:$0 sm:$0xff] }
 0x160   : > { %v4145_v63 = vpop.f32.mrb[53].mxu0  ;;  %v4147_v15 = vpop.f32.mrb[53].mxu1  ;;  %v4161_v54 = vmax.f32 %v1973_v42, %v4123_v1  ;;  %v4164_v40 = vmax.f32 %v2104_v18, %v4123_v1  ;;  %v2557_v62 = vmax.f32 %v2553_v32, %v1363_v6  ;;  %v4167_v39 = vmax.f32 %v908_v33, 0.0 }
 0x161   : > { %v2552_v58 = vmax.f32 %v3999_v10, %v1358_v51  ;;  %v923_v42 = vadd.f32 %v4177_v55, %v3953_v19  ;;  %v1203_v18 = vadd.f32 %v4177_v55, %v3955_v17  ;;  %v2555_v32 = vmax.f32 %v4016_v24, %v1361_v37 }
 0x162   : > { %v1570_v6 = vmax.f32 %v4070_v56, %v4167_v39  ;;  %v1714_v10 = vmax.f32 %v4077_v2, %v4167_v39  ;;  %v4191_v51 = vmax.f32 %v1841_v43, %v4167_v39  ;;  %v4194_v41 = vmax.f32 %v1972_v23, %v4167_v39 }
 0x163   : > { %v4169_v12 = vpop.f32.mrb[54].mxu0  ;;  %v4171_v44 = vpop.f32.mrb[54].mxu1  ;;  %v4197_v19 = vmax.f32 %v2103_v27, %v4167_v39  ;;  %v2417_v17 = vmax.f32 %v4103_v4, %v1362_v0  ;;  %v2556_v24 = vmax.f32 %v2552_v58, %v1362_v0  ;;  %v4200_v37 = vmax.f32 %v923_v42, 0.0 }
 0x164   : > { %5233 = vst [vmem:[#allocation36_spill] sm:$0xff] %v4171_v44  ;;  %v4184_v33 = vpop.f32.mrb[55].mxu0  ;;  %v918_v56 = vadd.f32 %v4177_v55, %v3972_v9  ;;  %v1198_v2 = vadd.f32 %v4177_v55, %v3974_v13  ;;  %v2554_v43 = vmax.f32 %v4046_v29, %v1360_v38 }
 0x165   : > { %5234 = vst [vmem:[#allocation37_spill] sm:$0xff] %v4184_v33  ;;  %v1365_v33 = vmax.f32 %v1203_v18, 0.0  ;;  %v1573_v23 = vmax.f32 %v4106_v35, %v4200_v37  ;;  %v1717_v27 = vmax.f32 %v4109_v57, %v4200_v37  ;;  %v4212_v44 = vmax.f32 %v1844_v30, %v4200_v37 }
 0x166   : > { %v4215_v0 = vmax.f32 %v1975_v21, %v4200_v37  ;;  %v4218_v58 = vmax.f32 %v2106_v20, %v4200_v37  ;;  %v4221_v42 = vmax.f32 %v918_v56, 0.0  ;;  %v1364_v29 = vmax.f32 %v1198_v2, 0.0 }
 0x167   : > { %v2420_v9 = vmax.f32 %v4125_v45, %v1365_v33  ;;  %v2559_v13 = vmax.f32 %v2555_v32, %v1365_v33  ;;  %v933_v35 = vadd.f32 %v4177_v55, %v3994_v11  ;;  %v1213_v57 = vadd.f32 %v4177_v55, %v3996_v61 }
 0x168   : > { %v928_v30 = vadd.f32 %v4177_v55, %v4003_v5  ;;  %v1572_v21 = vmax.f32 %v4136_v22, %v4221_v42  ;;  %v1716_v20 = vmax.f32 %v4139_v7, %v4221_v42  ;;  %v4234_v38 = vmax.f32 %v1843_v46, %v4221_v42 }
 0x169   : > { %v4237_v18 = vmax.f32 %v1974_v8, %v4221_v42  ;;  %v4240_v11 = vmax.f32 %v2105_v3, %v4221_v42  ;;  %v2419_v61 = vmax.f32 %v4151_v34, %v1364_v29  ;;  %v2558_v32 = vmax.f32 %v2554_v43, %v1364_v29 }
 0x16a   : > { %v1311_v33 = vmax.f32 %v933_v35, 0.0  ;;  %v1367_v5 = vmax.f32 %v1213_v57, 0.0  ;;  %v4243_v56 = vmax.f32 %v928_v30, 0.0  ;;  %v1208_v22 = vadd.f32 %v4177_v55, %v4005_v48 }
 0x16b   : > { %v943_v7 = vadd.f32 %v4177_v55, %v4027_v50 }
 0x16c   : > { %v4249_v46 = vmax.f32 %v1571_v26, %v1311_v33  ;;  %v4251_v8 = vmax.f32 %v1715_v47, %v1311_v33  ;;  %v1850_v3 = vmax.f32 %v4158_v28, %v1311_v33  ;;  %v1981_v2 = vmax.f32 %v4161_v54, %v1311_v33 }
 0x16d   : > { %v2112_v43 = vmax.f32 %v4164_v40, %v1311_v33  ;;  %v2243_v29 = vmax.f32 %v4123_v1, %v1311_v33  ;;  %v4257_v35 = vmax.f32 %v2422_v49, %v1367_v5  ;;  %v2561_v57 = vmax.f32 %v2557_v62, %v1367_v5  ;;  %v5235_v33 = vld [vmem:[#allocation31_spill] sm:$0xff]  ;;  %v5236_v5 = vld [vmem:[#allocation32_spill] sm:$0xff] }
 0x16e   : > { %v4260_v48 = vmax.f32 %v1570_v6, %v4243_v56  ;;  %v4263_v50 = vmax.f32 %v1714_v10, %v4243_v56  ;;  %v1849_v26 = vmax.f32 %v4191_v51, %v4243_v56  ;;  %v1980_v47 = vmax.f32 %v4194_v41, %v4243_v56 }
 0x16f   : > { %v2111_v28 = vmax.f32 %v4197_v19, %v4243_v56  ;;  %v2242_v1 = vmax.f32 %v4167_v39, %v4243_v56  ;;  %v1366_v54 = vmax.f32 %v1208_v22, 0.0  ;;  %v4273_v40 = vmax.f32 %v943_v7, 0.0 }
 0x170   : > { %v1223_v49 = vadd.f32 %v4177_v55, %v4029_v25  ;;  %v938_v62 = vadd.f32 %v4177_v55, %v4041_v53  ;;  %v1218_v6 = vadd.f32 %v4177_v55, %v4043_v16  ;;  %v953_v10 = vadd.f32 %v4177_v55, %v4062_v60 }
 0x171   : > { %v4283_v51 = vmax.f32 %v2417_v17, %v1366_v54  ;;  %v2560_v41 = vmax.f32 %v2556_v24, %v1366_v54  ;;  %v4286_v39 = vmax.f32 %v1573_v23, %v4273_v40  ;;  %v4289_v19 = vmax.f32 %v1717_v27, %v4273_v40 }
 0x172   : > { %v1852_v25 = vmax.f32 %v4212_v44, %v4273_v40  ;;  %v1983_v53 = vmax.f32 %v4215_v0, %v4273_v40  ;;  %v2114_v16 = vmax.f32 %v4218_v58, %v4273_v40  ;;  %v2245_v60 = vmax.f32 %v4200_v37, %v4273_v40 }
 0x173   : > { %v1369_v17 = vmax.f32 %v1223_v49, 0.0  ;;  %v4299_v24 = vmax.f32 %v938_v62, 0.0  ;;  %v1368_v23 = vmax.f32 %v1218_v6, 0.0  ;;  %v4301_v30 = vmax.f32 %v953_v10, 0.0  ;;  %v5238_v10 = vld [vmem:[#allocation34_spill] sm:$0xff] }
 0x174   : > { %v1233_v27 = vadd.f32 %v4177_v55, %v4064_v31  ;;  %v948_v44 = vadd.f32 %v4177_v55, %v4072_v59  ;;  %v1228_v0 = vadd.f32 %v4177_v55, %v5235_v33  ;;  %v963_v58 = vadd.f32 %v4177_v55, %v5236_v5 }
 0x175   : > { %v4311_v56 = vmax.f32 %v2420_v9, %v1369_v17  ;;  %v2563_v37 = vmax.f32 %v2559_v13, %v1369_v17  ;;  %v4314_v22 = vmax.f32 %v1572_v21, %v4299_v24  ;;  %v4317_v7 = vmax.f32 %v1716_v20, %v4299_v24  ;;  %v5239_v17 = vld [vmem:[#allocation35_spill] sm:$0xff] }
 0x176   : > { %v1851_v31 = vmax.f32 %v4234_v38, %v4299_v24  ;;  %v1982_v59 = vmax.f32 %v4237_v18, %v4299_v24  ;;  %v2113_v54 = vmax.f32 %v4240_v11, %v4299_v24  ;;  %v2244_v9 = vmax.f32 %v4221_v42, %v4299_v24 }
 0x177   : > { %v4327_v40 = vmax.f32 %v2419_v61, %v1368_v23  ;;  %v2562_v13 = vmax.f32 %v2558_v32, %v1368_v23  ;;  %v1587_v21 = vmax.f32 %v4249_v46, %v4301_v30  ;;  %v1723_v20 = vmax.f32 %v4251_v8, %v4301_v30  ;;  %v5237_v32 = vld [vmem:[#allocation33_spill] sm:$0xff] }
 0x178   : > { %v1854_v38 = vmax.f32 %v1850_v3, %v4301_v30  ;;  %v1985_v49 = vmax.f32 %v1981_v2, %v4301_v30  ;;  %v2116_v18 = vmax.f32 %v2112_v43, %v4301_v30  ;;  %v2247_v11 = vmax.f32 %v2243_v29, %v4301_v30 }
 0x179   : > { %v1371_v62 = vmax.f32 %v1233_v27, 0.0  ;;  %v4337_v6 = vmax.f32 %v948_v44, 0.0  ;;  %v1370_v42 = vmax.f32 %v1228_v0, 0.0  ;;  %v4339_v61 = vmax.f32 %v963_v58, 0.0 }
 0x17a   : > { %v1243_v46 = vadd.f32 %v4177_v55, %v5237_v32  ;;  %v958_v8 = vadd.f32 %v4177_v55, %v5238_v10  ;;  %v1238_v3 = vadd.f32 %v4177_v55, %v5239_v17  ;;  %v973_v2 = vadd.f32 %v4177_v55, %v4131_v52 }
 0x17b   : > { %v2569_v43 = vmax.f32 %v2561_v57, %v1371_v62  ;;  %v2429_v29 = vmax.f32 %v4283_v51, %v4337_v6  ;;  %v1586_v24 = vmax.f32 %v4260_v48, %v4337_v6  ;;  %v1722_v23 = vmax.f32 %v4263_v50, %v4337_v6  ;;  %v5245_v48 = vld [vmem:[#allocation3_spill] sm:$0xff]  ;;  %v4503_v51 = vpop.f32.mrb[55].mxu1 }
 0x17c   : > { %v4356_v27 = vmax.f32 %v1849_v26, %v4337_v6  ;;  %v4359_v44 = vmax.f32 %v1980_v47, %v4337_v6  ;;  %v2115_v33 = vmax.f32 %v2111_v28, %v4337_v6  ;;  %v2246_v52 = vmax.f32 %v2242_v1, %v4337_v6  ;;  %v5240_v26 = vld [vmem:[#allocation28_spill] sm:$0xff]  ;;  %v5256_v50 = vld [vmem:[#allocation19_spill] sm:$0xff] }
 0x17d   : > { %v4363_v57 = vmax.f32 %v2560_v41, %v1370_v42  ;;  %v4374_v58 = vmax.f32 %v1852_v25, %v4339_v61  ;;  %v4377_v28 = vmax.f32 %v1983_v53, %v4339_v61  ;;  %v4380_v1 = vmax.f32 %v2114_v16, %v4339_v61  ;;  %v5241_v53 = vld [vmem:[#allocation29_spill] sm:$0xff] }
 0x17e   : > { %v2151_v5 = vmax.f32 %v5240_v26, %v2115_v33  ;;  %v2290_v47 = vmax.f32 %v4103_v4, %v2246_v52  ;;  %v4383_v41 = vmax.f32 %v2245_v60, %v4339_v61  ;;  %v1373_v62 = vmax.f32 %v1243_v46, 0.0 }
 0x17f   : > { %v4385_v42 = vmax.f32 %v958_v8, 0.0  ;;  %v1372_v32 = vmax.f32 %v1238_v3, 0.0  ;;  %v1319_v10 = vmax.f32 %v973_v2, 0.0  ;;  %v1253_v4 = vadd.f32 %v4177_v55, %v4133_v36 }
 0x180   : > { %v968_v25 = vadd.f32 %v4177_v55, %v4145_v63  ;;  %v4395_v33 = vmax.f32 %v2563_v37, %v1373_v62 }
 0x181   : > { %v4404_v8 = vmax.f32 %v1851_v31, %v4385_v42  ;;  %v4407_v63 = vmax.f32 %v1982_v59, %v4385_v42  ;;  %v4410_v3 = vmax.f32 %v2113_v54, %v4385_v42  ;;  %v4413_v37 = vmax.f32 %v2244_v9, %v4385_v42  ;;  %v5244_v31 = vld [vmem:[#allocation30_spill] sm:$0xff] }
 0x182   : > { %v4415_v2 = vmax.f32 %v2562_v13, %v1372_v32  ;;  %v4417_v52 = vmax.f32 %v1587_v21, %v1319_v10  ;;  %v1727_v26 = vmax.f32 %v1723_v20, %v1319_v10  ;;  %v1858_v62 = vmax.f32 %v1854_v38, %v1319_v10  ;;  %v5246_v32 = vld [vmem:[#allocation27_spill] sm:$0xff] }
 0x183   : > { %5242 = vst [vmem:[#allocation31_spill] sm:$0xff] %v4407_v63  ;;  %v1989_v46 = vmax.f32 %v1985_v49, %v1319_v10  ;;  %v2120_v36 = vmax.f32 %v2116_v18, %v1319_v10  ;;  %v2251_v0 = vmax.f32 %v2247_v11, %v1319_v10  ;;  %v2382_v54 = vmax.f32 %v4301_v30, %v1319_v10  ;;  %v5249_v11 = vld [vmem:[#allocation6_spill] sm:$0xff] }
 0x184   : > { %5243 = vst [vmem:[#allocation32_spill] sm:$0xff] %v4415_v2  ;;  %v1735_v9 = vmax.f32 %v1727_v26, %v5245_v48  ;;  %v1862_v13 = vmax.f32 %v1858_v62, %v5245_v48  ;;  %v1375_v18 = vmax.f32 %v1253_v4, 0.0  ;;  %v1318_v60 = vmax.f32 %v968_v25, 0.0  ;;  %5262 = vst [vmem:[#allocation6_spill] sm:$0xff] %v4503_v51 }
 0x185   : > { %v1993_v21 = vmax.f32 %v1989_v46, %v5245_v48  ;;  %v4428_v20 = vmax.f32 %v5246_v32, %v2120_v36  ;;  %v4431_v38 = vmax.f32 %v4067_v14, %v2251_v0  ;;  %v4434_v49 = vmax.f32 %v4257_v35, %v2382_v54  ;;  %v5251_v35 = vld [vmem:[#allocation11_spill] sm:$0xff] }
 0x186   : > { %v4437_v59 = vmax.f32 %v1735_v9, %v5249_v11  ;;  %v1866_v30 = vmax.f32 %v1862_v13, %v5249_v11  ;;  %v4441_v48 = vmax.f32 %v2569_v43, %v1375_v18  ;;  %v4443_v46 = vmax.f32 %v2429_v29, %v1318_v60  ;;  %v5252_v29 = vld [vmem:[#allocation15_spill] sm:$0xff] }
 0x187   : > { %5247 = vst [vmem:[#allocation33_spill] sm:$0xff] %v4428_v20  ;;  %5248 = vst [vmem:[#allocation34_spill] sm:$0xff] %v4434_v49  ;;  %v1997_v10 = vmax.f32 %v1993_v21, %v5249_v11  ;;  %v4445_v36 = vmax.f32 %v2290_v47, %v1318_v60  ;;  %v4447_v14 = vmax.f32 %v2151_v5, %v1318_v60  ;;  %v1599_v26 = vsel %vm1598_vm4, %v4417_v52, -inf  ;;  %v5255_v21 = vld [vmem:[#allocation4_spill] sm:$0xff] }
 0x188   : > { %5250 = vst [vmem:[#allocation35_spill] sm:$0xff] %v4441_v48  ;;  %v1874_v0 = vmax.f32 %v1866_v30, %v5251_v35  ;;  %v1594_v25 = vmax.f32 %v1586_v24, %v1318_v60  ;;  %v1726_v43 = vmax.f32 %v1722_v23, %v1318_v60 }
 0x189   : > { %v2001_v4 = vmax.f32 %v1997_v10, %v5251_v35  ;;  %v5257_v10 = vld [vmem:[#allocation8_spill] sm:$0xff] }
 0x18a   : > { %v4457_v47 = vmax.f32 %v1874_v0, %v5252_v29  ;;  %v1600_v62 = vmax.f32 %v1594_v25, %v1599_v26  ;;  %v1608_v54 = vsel %vm1607_vm5, %v1594_v25, -inf  ;;  %v4463_v9 = vsel %vm1616_vm6, %v1594_v25, -inf }
 0x18b   : > { %v2005_v5 = vmax.f32 %v2001_v4, %v5252_v29  ;;  %v1609_v24 = vmax.f32 %v1608_v54, %v4417_v52  ;;  %5253 = vst [vmem:[#allocation28_spill] sm:$0xff] %v4463_v9  ;;  %v4466_v13 = vsel %vm1628_vm7, %v1594_v25, -inf  ;;  %v1734_v32 = vmax.f32 %v1726_v43, %v5255_v21  ;;  %v5258_v25 = vld [vmem:[#allocation23_spill] sm:$0xff] }
 0x18c   : > { %5254 = vst [vmem:[#allocation29_spill] sm:$0xff] %v4466_v13  ;;  %v1601_v23 = vrot.slane %v1600_v62, 4  ;;  %v1746_v0 = vsel %vm1598_vm4, %v4437_v59, -inf  ;;  %v1857_v4 = vmax.f32 %v4356_v27, %v1318_v60  ;;  %v1885_v29 = vsel %vm1598_vm4, %v4457_v47, -inf  ;;  %v5267_v13 = vld [vmem:[#allocation24_spill] sm:$0xff] }
 0x18d   : > { %v2013_v6 = vmax.f32 %v2005_v5, %v5256_v50  ;;  %v1610_v30 = vrot.slane %v1609_v24, 4  ;;  %v1742_v35 = vmax.f32 %v1734_v32, %v5257_v10  ;;  %v1988_v5 = vmax.f32 %v4359_v44, %v1318_v60 }
 0x18e   : > { %v1602_v43 = vmax.f32 %v1600_v62, %v1601_v23  ;;  %v1861_v60 = vmax.f32 %v1857_v4, %v5255_v21 }
 0x18f   : > { %v4479_v26 = vmax.f32 %v2013_v6, %v5258_v25  ;;  %v1611_v54 = vmax.f32 %v1609_v24, %v1610_v30  ;;  %v1747_v50 = vmax.f32 %v1742_v35, %v1746_v0  ;;  %v1754_v11 = vsel %vm1607_vm5, %v1742_v35, -inf }
 0x190   : > { %v4486_v32 = vsel %vm1616_vm6, %v1742_v35, -inf  ;;  %v1603_v18 = vrot.slane %v1602_v43, 2  ;;  %v1755_v17 = vmax.f32 %v1754_v11, %v4437_v59  ;;  %v4492_v62 = vsel %vm1628_vm7, %v1742_v35, -inf }
 0x191   : > { %5259 = vst [vmem:[#allocation30_spill] sm:$0xff] %v4479_v26  ;;  %5260 = vst [vmem:[#allocation3_spill] sm:$0xff] %v4486_v32  ;;  %v1612_v6 = vrot.slane %v1611_v54, 2  ;;  %v1748_v23 = vrot.slane %v1747_v50, 4  ;;  %v1992_v0 = vmax.f32 %v1988_v5, %v5255_v21  ;;  %v2024_v11 = vsel %vm1598_vm4, %v4479_v26, -inf  ;;  %v5263_v5 = vld [vmem:[#allocation12_spill] sm:$0xff] }
 0x192   : > { %5261 = vst [vmem:[#allocation27_spill] sm:$0xff] %v4492_v62  ;;  %v1604_v24 = vmax.f32 %v1602_v43, %v1603_v18  ;;  %v1756_v30 = vrot.slane %v1755_v17, 4  ;;  %v1865_v27 = vmax.f32 %v1861_v60, %v5257_v10  ;;  %v2163_v35 = vsel %vm1598_vm4, %v4428_v20, -inf }
 0x193   : > { %v1613_v25 = vmax.f32 %v1611_v54, %v1612_v6  ;;  %v1749_v16 = vmax.f32 %v1747_v50, %v1748_v23  ;;  %v1996_v4 = vmax.f32 %v1992_v0, %v5257_v10  ;;  %v2164_v18 = vmax.f32 %v4447_v14, %v2163_v35 }
 0x194   : > { %v1605_v2 = vrot.slane %v1604_v24, 1  ;;  %v1757_v44 = vmax.f32 %v1755_v17, %v1756_v30  ;;  %v1873_v63 = vmax.f32 %v1865_v27, %v5263_v5  ;;  %v2171_v54 = vsel %vm1607_vm5, %v4447_v14, -inf  ;;  %v5264_v30 = vld [vmem:[#allocation16_spill] sm:$0xff] }
 0x195   : > { %v1614_v43 = vrot.slane %v1613_v25, 1  ;;  %v1750_v21 = vrot.slane %v1749_v16, 2  ;;  %v2000_v23 = vmax.f32 %v1996_v4, %v5263_v5  ;;  %v2165_v60 = vrot.slane %v2164_v18, 4  ;;  %v5266_v5 = vld [vmem:[#allocation20_spill] sm:$0xff] }
 0x196   : > { %v4510_v50 = vmax.f32 %v1604_v24, %v1605_v2  ;;  %v1758_v6 = vrot.slane %v1757_v44, 2  ;;  %v1881_v10 = vmax.f32 %v1873_v63, %v5264_v30  ;;  %v2172_v0 = vmax.f32 %v2171_v54, %v4428_v20 }
 0x197   : > { %v4513_v51 = vmax.f32 %v1613_v25, %v1614_v43  ;;  %v1751_v17 = vmax.f32 %v1749_v16, %v1750_v21  ;;  %v2004_v62 = vmax.f32 %v2000_v23, %v5264_v30  ;;  %v2166_v27 = vmax.f32 %v2164_v18, %v2165_v60 }
 0x198   : > { %v1759_v35 = vmax.f32 %v1757_v44, %v1758_v6  ;;  %v4520_v32 = vsel %vm1616_vm6, %v4447_v14, -inf  ;;  %v1886_v24 = vmax.f32 %v1881_v10, %v1885_v29  ;;  %v1893_v4 = vsel %vm1607_vm5, %v1881_v10, -inf }
 0x199   : > { %5265 = vst [vmem:[#allocation11_spill] sm:$0xff] %v4520_v32  ;;  %v1752_v2 = vrot.slane %v1751_v17, 1  ;;  %v4524_v25 = vsel %vm1616_vm6, %v1881_v10, -inf  ;;  %v1894_v63 = vmax.f32 %v1893_v4, %v4457_v47  ;;  %v4530_v43 = vsel %vm1628_vm7, %v1881_v10, -inf }
 0x19a   : > { %v1760_v16 = vrot.slane %v1759_v35, 1  ;;  %v1887_v21 = vrot.slane %v1886_v24, 4  ;;  %v2012_v54 = vmax.f32 %v2004_v62, %v5266_v5  ;;  %v2167_v60 = vrot.slane %v2166_v27, 2 }
 0x19b   : > { %v4532_v18 = vmax.f32 %v1751_v17, %v1752_v2  ;;  %v1895_v23 = vrot.slane %v1894_v63, 4  ;;  %v2173_v30 = vrot.slane %v2172_v0, 4  ;;  %v4544_v17 = vsel %vm1628_vm7, %v4447_v14, -inf }
 0x19c   : > { %v4537_v6 = vmax.f32 %v1759_v35, %v1760_v16  ;;  %v1888_v4 = vmax.f32 %v1886_v24, %v1887_v21  ;;  %v2020_v9 = vmax.f32 %v2012_v54, %v5267_v13  ;;  %5268 = vst [vmem:[#allocation15_spill] sm:$0xff] %v4544_v17  ;;  %v2168_v44 = vmax.f32 %v2166_v27, %v2167_v60 }
 0x19d   : > { %v1896_v2 = vmax.f32 %v1894_v63, %v1895_v23  ;;  %v2174_v29 = vmax.f32 %v2172_v0, %v2173_v30  ;;  %v2302_v62 = vsel %vm1598_vm4, %v4431_v38, -inf }
 0x19e   : > { %v1889_v35 = vrot.slane %v1888_v4, 2  ;;  %v2025_v16 = vmax.f32 %v2020_v9, %v2024_v11  ;;  %v2032_v5 = vsel %vm1607_vm5, %v2020_v9, -inf  ;;  %v4550_v24 = vsel %vm1616_vm6, %v2020_v9, -inf }
 0x19f   : > { %5269 = vst [vmem:[#allocation4_spill] sm:$0xff] %v4550_v24  ;;  %v1897_v13 = vrot.slane %v1896_v2, 2  ;;  %v2033_v21 = vmax.f32 %v2032_v5, %v4479_v26  ;;  %v4556_v63 = vsel %vm1628_vm7, %v2020_v9, -inf  ;;  %v2169_v11 = vrot.slane %v2168_v44, 1 }
 0x1a0   : > { %5270 = vst [vmem:[#allocation19_spill] sm:$0xff] %v4556_v63  ;;  %v1890_v0 = vmax.f32 %v1888_v4, %v1889_v35  ;;  %v2026_v27 = vrot.slane %v2025_v16, 4  ;;  %v2175_v30 = vrot.slane %v2174_v29, 2  ;;  %v2303_v14 = vmax.f32 %v4445_v36, %v2302_v62 }
 0x1a1   : > { %v1898_v23 = vmax.f32 %v1896_v2, %v1897_v13  ;;  %v2034_v60 = vrot.slane %v2033_v21, 4  ;;  %v2170_v17 = vmax.f32 %v2168_v44, %v2169_v11  ;;  %v2310_v4 = vsel %vm1607_vm5, %v4445_v36, -inf }
 0x1a2   : > { %v1891_v10 = vrot.slane %v1890_v0, 1  ;;  %v2027_v5 = vmax.f32 %v2025_v16, %v2026_v27  ;;  %v2176_v20 = vmax.f32 %v2174_v29, %v2175_v30  ;;  %v2304_v63 = vrot.slane %v2303_v14, 4 }
 0x1a3   : > { %v1899_v24 = vrot.slane %v1898_v23, 1  ;;  %v2035_v9 = vmax.f32 %v2033_v21, %v2034_v60  ;;  %v2311_v2 = vmax.f32 %v2310_v4, %v4431_v38  ;;  %v4568_v16 = vsel %vm1616_vm6, %v4445_v36, -inf }
 0x1a4   : > { %v1892_v35 = vmax.f32 %v1890_v0, %v1891_v10  ;;  %v2028_v54 = vrot.slane %v2027_v5, 2  ;;  %v2177_v26 = vrot.slane %v2176_v20, 1  ;;  %v2305_v62 = vmax.f32 %v2303_v14, %v2304_v63 }
 0x1a5   : > { %v1900_v13 = vmax.f32 %v1898_v23, %v1899_v24  ;;  %v2036_v32 = vrot.slane %v2035_v9, 2  ;;  %v2312_v27 = vrot.slane %v2311_v2, 4  ;;  %v4574_v10 = vsel %vm1628_vm7, %v4445_v36, -inf }
 0x1a6   : > { %v2029_v44 = vmax.f32 %v2027_v5, %v2028_v54  ;;  %v2178_v11 = vmax.f32 %v2176_v20, %v2177_v26  ;;  %5271 = vst [vmem:[#allocation8_spill] sm:$0xff] %v4574_v10  ;;  %v2441_v24 = vsel %vm1598_vm4, %v4434_v49, -inf  ;;  %v2306_v23 = vrot.slane %v2305_v62, 2 }
 0x1a7   : > { %v2037_v21 = vmax.f32 %v2035_v9, %v2036_v32  ;;  %v2313_v60 = vmax.f32 %v2311_v2, %v2312_v27  ;;  %v2442_v63 = vmax.f32 %v4443_v46, %v2441_v24  ;;  %v2449_v32 = vsel %vm1607_vm5, %v4443_v46, -inf  ;;  %v5304_v2 = vld [vmem:[#allocation7_spill] sm:$0xff] }
 0x1a8   : > { %v2030_v0 = vrot.slane %v2029_v44, 1  ;;  %v4585_v20 = vsel %vm1616_vm6, %v4443_v46, -inf  ;;  %v2307_v26 = vmax.f32 %v2305_v62, %v2306_v23  ;;  %v2450_v5 = vmax.f32 %v2449_v32, %v4434_v49 }
 0x1a9   : > { %v2038_v14 = vrot.slane %v2037_v21, 1  ;;  %v2314_v30 = vrot.slane %v2313_v60, 2  ;;  %v2443_v4 = vrot.slane %v2442_v63, 4  ;;  %v4592_v27 = vsel %vm1628_vm7, %v4443_v46, -inf }
 0x1aa   : > { %v2031_v36 = vmax.f32 %v2029_v44, %v2030_v0  ;;  %5272 = vst [vmem:[#allocation23_spill] sm:$0xff] %v4592_v27  ;;  %v2308_v24 = vrot.slane %v2307_v26, 1  ;;  %v2451_v29 = vrot.slane %v2450_v5, 4  ;;  %v1248_v62 = vadd.f32 %v4177_v55, %v4147_v15 }
 0x1ab   : > { %v2039_v9 = vmax.f32 %v2037_v21, %v2038_v14  ;;  %v2315_v54 = vmax.f32 %v2313_v60, %v2314_v30  ;;  %v2444_v44 = vmax.f32 %v2442_v63, %v2443_v4  ;;  %v2580_v21 = vsel %vm1598_vm4, %v4441_v48, -inf }
 0x1ac   : > { %v2452_v0 = vmax.f32 %v2450_v5, %v2451_v29  ;;  %v4603_v46 = vsel %vm1676_vm8, %v4510_v50, %v4513_v51  ;;  %v4608_v23 = vsel %vm1676_vm8, %v4532_v18, %v4537_v6  ;;  %v4611_v60 = vsel %vm1676_vm8, %v1892_v35, %v1900_v13 }
 0x1ad   : > { %v2445_v14 = vrot.slane %v2444_v44, 2  ;;  %v1374_v15 = vmax.f32 %v1248_v62, 0.0  ;;  %v4614_v63 = vsel %vm1676_vm8, %v2031_v36, %v2039_v9  ;;  %v4617_v29 = vsel %vm1676_vm8, %v2170_v17, %v2178_v11 }
 0x1ae   : > { %5273 = vst [vmem:[#allocation12_spill] sm:$0xff] %v4617_v29  ;;  %v2309_v32 = vmax.f32 %v2307_v26, %v2308_v24  ;;  %v2316_v30 = vrot.slane %v2315_v54, 1  ;;  %v2453_v51 = vrot.slane %v2452_v0, 2  ;;  %v983_v50 = vadd.f32 %v4177_v55, %v4169_v12  ;;  %v5306_v29 = vld [vmem:[#allocation3_spill] sm:$0xff] }
 0x1af   : > { %v2446_v5 = vmax.f32 %v2444_v44, %v2445_v14  ;;  %v2576_v18 = vmax.f32 %v4363_v57, %v1374_v15  ;;  %v5277_v62 = vmax.f32 %v4311_v56, %v4339_v61  ;;  %v5281_v56 = vmax.f32 %v4289_v19, %v4339_v61 }
 0x1b0   : > { %v2317_v6 = vmax.f32 %v2315_v54, %v2316_v30  ;;  %v2454_v35 = vmax.f32 %v2452_v0, %v2453_v51  ;;  %v1321_v13 = vmax.f32 %v983_v50, 0.0  ;;  %v5279_v50 = vmax.f32 %v5241_v53, %v4380_v1  ;;  %v5284_v53 = vld [vmem:[#allocation36_spill] sm:$0xff] }
 0x1b1   : > { %v2447_v4 = vrot.slane %v2446_v5, 1  ;;  %v2581_v36 = vmax.f32 %v2576_v18, %v2580_v21  ;;  %v2588_v9 = vsel %vm1607_vm5, %v2576_v18, -inf  ;;  %v4624_v17 = vsel %vm1616_vm6, %v2576_v18, -inf }
 0x1b2   : > { %5274 = vst [vmem:[#allocation16_spill] sm:$0xff] %v4624_v17  ;;  %v4627_v11 = vsel %vm1676_vm8, %v2309_v32, %v2317_v6  ;;  %v2455_v26 = vrot.slane %v2454_v35, 1  ;;  %v2589_v12 = vmax.f32 %v2588_v9, %v4441_v48  ;;  %v4633_v44 = vsel %vm1628_vm7, %v2576_v18, -inf }
 0x1b3   : > { %5275 = vst [vmem:[#allocation20_spill] sm:$0xff] %v4627_v11  ;;  %v2448_v54 = vmax.f32 %v2446_v5, %v2447_v4  ;;  %v2582_v24 = vrot.slane %v2581_v36, 4  ;;  %5276 = vst [vmem:[#allocation24_spill] sm:$0xff] %v4633_v44  ;;  %v2440_v21 = vmax.f32 %v5277_v62, %v1321_v13  ;;  %v5278_v32 = vmax.f32 %v4125_v45, %v4383_v41 }
 0x1b4   : > { %v2456_v0 = vmax.f32 %v2454_v35, %v2455_v26  ;;  %v2590_v14 = vrot.slane %v2589_v12, 4  ;;  %v2162_v5 = vmax.f32 %v5279_v50, %v1321_v13  ;;  %v5280_v18 = vmax.f32 %v4286_v39, %v4339_v61  ;;  %v5283_v26 = vld [vmem:[#allocation5_spill] sm:$0xff] }
 0x1b5   : > { %v2301_v30 = vmax.f32 %v5278_v32, %v1321_v13  ;;  %v2583_v51 = vmax.f32 %v2581_v36, %v2582_v24  ;;  %v1729_v35 = vmax.f32 %v5281_v56, %v1321_v13  ;;  %v1860_v45 = vmax.f32 %v4374_v58, %v1321_v13  ;;  %v5285_v58 = vld [vmem:[#allocation9_spill] sm:$0xff] }
 0x1b6   : > { %v1597_v6 = vmax.f32 %v5280_v18, %v1321_v13  ;;  %v4653_v4 = vsel %vm1676_vm8, %v2448_v54, %v2456_v0  ;;  %v2591_v9 = vmax.f32 %v2589_v12, %v2590_v14  ;;  %v1991_v41 = vmax.f32 %v4377_v28, %v1321_v13 }
 0x1b7   : > { %5282 = vst [vmem:[#allocation38_spill] sm:$0xff] %v4653_v4  ;;  %v2584_v36 = vrot.slane %v2583_v51, 2  ;;  %v1737_v1 = vmax.f32 %v1729_v35, %v5283_v26  ;;  %v1263_v24 = vadd.f32 %v4177_v55, %v5284_v53  ;;  %v1864_v19 = vmax.f32 %v1860_v45, %v5283_v26  ;;  %v5286_v45 = vld [vmem:[#allocation13_spill] sm:$0xff] }
 0x1b8   : > { %v2592_v39 = vrot.slane %v2591_v9, 2  ;;  %v4661_v62 = vsel %vm1618_vm9, %v1597_v6, -inf  ;;  %v1995_v61 = vmax.f32 %v1991_v41, %v5283_v26  ;;  %v1667_v12 = vsel %vm1630_vm10, %v1597_v6, -inf  ;;  %v5288_v53 = vld [vmem:[#allocation37_spill] sm:$0xff] }
 0x1b9   : > { %v2585_v54 = vmax.f32 %v2583_v51, %v2584_v36  ;;  %v1745_v0 = vmax.f32 %v1737_v1, %v5285_v58  ;;  %v4668_v28 = vsel %vm1618_vm9, %v2162_v5, -inf  ;;  %v1868_v14 = vmax.f32 %v1864_v19, %v5285_v58 }
 0x1ba   : > { %v2593_v13 = vmax.f32 %v2591_v9, %v2592_v39  ;;  %v1999_v32 = vmax.f32 %v1995_v61, %v5285_v58  ;;  %v4673_v50 = vsel %vm1630_vm10, %v2162_v5, -inf  ;;  %v4679_v51 = vsel %vm1618_vm9, %v2301_v30, -inf  ;;  %v5289_v61 = vld [vmem:[#allocation17_spill] sm:$0xff] }
 0x1bb   : > { %v2586_v18 = vrot.slane %v2585_v54, 1  ;;  %v4676_v56 = vsel %vm1618_vm9, %v1745_v0, -inf  ;;  %v4682_v6 = vsel %vm1630_vm10, %v2301_v30, -inf  ;;  %v4685_v9 = vsel %vm1630_vm10, %v1745_v0, -inf }
 0x1bc   : > { %v2594_v35 = vrot.slane %v2593_v13, 1  ;;  %v1876_v41 = vmax.f32 %v1868_v14, %v5286_v45  ;;  %v2003_v36 = vmax.f32 %v1999_v32, %v5286_v45  ;;  %v4690_v26 = vsel %vm1618_vm9, %v2440_v21, -inf }
 0x1bd   : > { %v2587_v5 = vmax.f32 %v2585_v54, %v2586_v18  ;;  %5287 = vst [vmem:[#allocation5_spill] sm:$0xff] %v4690_v26  ;;  %v1377_v1 = vmax.f32 %v1263_v24, 0.0  ;;  %v978_v39 = vadd.f32 %v4177_v55, %v5288_v53  ;;  %v4697_v0 = vsel %vm1630_vm10, %v2440_v21, -inf  ;;  %v5296_v53 = vld [vmem:[#allocation25_spill] sm:$0xff] }
 0x1be   : > { %v2595_v19 = vmax.f32 %v2593_v13, %v2594_v35  ;;  %v1884_v30 = vmax.f32 %v1876_v41, %v5289_v61  ;;  %v2007_v58 = vmax.f32 %v2003_v36, %v5289_v61  ;;  %5290 = vst [vmem:[#allocation36_spill] sm:$0xff] %v4697_v0  ;;  %v1648_v54 = vsel %vm1607_vm5, %v4417_v52, -inf  ;;  %v5293_v13 = vld [vmem:[#allocation21_spill] sm:$0xff] }
 0x1bf   : > { %v4700_v14 = vmax.f32 %v4395_v33, %v1377_v1  ;;  %v4702_v32 = vmax.f32 %v978_v39, 0.0  ;;  %v1656_v24 = vsel %vm1616_vm6, %v4417_v52, -inf  ;;  %v1666_v21 = vsel %vm1628_vm7, %v4417_v52, -inf }
 0x1c0   : > { %v4709_v55 = vsel %vm1676_vm8, %v2587_v5, %v2595_v19  ;;  %v2015_v18 = vmax.f32 %v2007_v58, %v5293_v13  ;;  %v4716_v33 = vsel %vm1607_vm5, %v4437_v59, -inf  ;;  %v4719_v35 = vsel %vm1618_vm9, %v1884_v30, -inf }
 0x1c1   : > { %5291 = vst [vmem:[#allocation9_spill] sm:$0xff] %v4700_v14  ;;  %5292 = vst [vmem:[#allocation13_spill] sm:$0xff] %v4709_v55  ;;  %v4722_v45 = vsel %vm1630_vm10, %v1884_v30, -inf  ;;  %v5294_v41 = vmax.f32 %v4327_v40, %v4385_v42  ;;  %v5295_v5 = vmax.f32 %v4151_v34, %v4413_v37  ;;  %v5297_v19 = vmax.f32 %v5244_v31, %v4410_v3 }
 0x1c2   : > { %v2023_v39 = vmax.f32 %v2015_v18, %v5296_v53  ;;  %v5298_v40 = vmax.f32 %v4314_v22, %v4385_v42  ;;  %v5299_v58 = vmax.f32 %v4317_v7, %v4385_v42  ;;  %v4753_v37 = vsel %vm1616_vm6, %v4437_v59, -inf }
 0x1c3   : > { %v4728_v36 = vmax.f32 %v5294_v41, %v4702_v32  ;;  %v4734_v1 = vmax.f32 %v5295_v5, %v4702_v32  ;;  %v4741_v61 = vmax.f32 %v5297_v19, %v4702_v32  ;;  %v4757_v13 = vsel %vm1628_vm7, %v4437_v59, -inf  ;;  %v5300_v41 = vld [vmem:[#allocation28_spill] sm:$0xff]  ;;  %v5302_v19 = vld [vmem:[#allocation29_spill] sm:$0xff] }
 0x1c4   : > { %v1596_v30 = vmax.f32 %v5298_v40, %v4702_v32  ;;  %v1728_v34 = vmax.f32 %v5299_v58, %v4702_v32  ;;  %v1859_v3 = vmax.f32 %v4404_v8, %v4702_v32  ;;  %v4763_v22 = vsel %vm1607_vm5, %v4457_v47, -inf }
 0x1c5   : > { %v4766_v31 = vsel %vm1618_vm9, %v2023_v39, -inf  ;;  %v4769_v7 = vsel %vm1630_vm10, %v2023_v39, -inf  ;;  %v5301_v5 = vmax.f32 %v5300_v41, %v4417_v52  ;;  %v5303_v8 = vmax.f32 %v5302_v19, %v4417_v52  ;;  %v5305_v19 = vld [vmem:[#allocation10_spill] sm:$0xff] }
 0x1c6   : > { %v1619_v42 = vsel %vm1618_vm9, %v1596_v30, -inf  ;;  %v1631_v18 = vsel %vm1630_vm10, %v1596_v30, -inf  ;;  %v1640_v58 = vsel %vm1598_vm4, %v1596_v30, -inf  ;;  %v1649_v15 = vmax.f32 %v1648_v54, %v1596_v30 }
 0x1c7   : > { %v1621_v53 = vmax.f32 %v5301_v5, %v1619_v42  ;;  %v1633_v40 = vmax.f32 %v5303_v8, %v1631_v18  ;;  %v1641_v57 = vmax.f32 %v4417_v52, %v1640_v58  ;;  %v1658_v10 = vmax.f32 %v1656_v24, %v1596_v30 }
 0x1c8   : > { %v1668_v39 = vmax.f32 %v1666_v21, %v1596_v30  ;;  %v1736_v55 = vmax.f32 %v1728_v34, %v5304_v2  ;;  %v1650_v48 = vrot.slane %v1649_v15, 4  ;;  %v1863_v17 = vmax.f32 %v1859_v3, %v5304_v2 }
 0x1c9   : > { %v1622_v14 = vrot.slane %v1621_v53, 4  ;;  %v1634_v44 = vrot.slane %v1633_v40, 4  ;;  %v1642_v41 = vrot.slane %v1641_v57, 4  ;;  %v1659_v42 = vmax.f32 %v1658_v10, %v4661_v62 }
 0x1ca   : > { %v1669_v5 = vmax.f32 %v1668_v39, %v1667_v12  ;;  %v4785_v18 = vmax.f32 %v1736_v55, %v5305_v19  ;;  %v1651_v4 = vmax.f32 %v1649_v15, %v1650_v48  ;;  %v1867_v52 = vmax.f32 %v1863_v17, %v5305_v19 }
 0x1cb   : > { %v1623_v8 = vmax.f32 %v1621_v53, %v1622_v14  ;;  %v1635_v54 = vmax.f32 %v1633_v40, %v1634_v44  ;;  %v1643_v24 = vmax.f32 %v1641_v57, %v1642_v41  ;;  %v1660_v21 = vrot.slane %v1659_v42, 4  ;;  %v5308_v41 = vld [vmem:[#allocation27_spill] sm:$0xff] }
 0x1cc   : > { %v1670_v30 = vrot.slane %v1669_v5, 4  ;;  %v1763_v34 = vsel %vm1618_vm9, %v4785_v18, -inf  ;;  %v1652_v11 = vrot.slane %v1651_v4, 2  ;;  %v5307_v10 = vmax.f32 %v5306_v29, %v4437_v59 }
 0x1cd   : > { %v1624_v58 = vrot.slane %v1623_v8, 2  ;;  %v1636_v3 = vrot.slane %v1635_v54, 2  ;;  %v1644_v12 = vrot.slane %v1643_v24, 2  ;;  %v1661_v55 = vmax.f32 %v1659_v42, %v1660_v21 }
 0x1ce   : > { %v1765_v62 = vmax.f32 %v5307_v10, %v1763_v34  ;;  %v1671_v14 = vmax.f32 %v1669_v5, %v1670_v30  ;;  %v1773_v48 = vsel %vm1630_vm10, %v4785_v18, -inf  ;;  %v1653_v44 = vmax.f32 %v1651_v4, %v1652_v11 }
 0x1cf   : > { %v1625_v17 = vmax.f32 %v1623_v8, %v1624_v58  ;;  %v1637_v57 = vmax.f32 %v1635_v54, %v1636_v3  ;;  %v1645_v53 = vmax.f32 %v1643_v24, %v1644_v12  ;;  %v1662_v40 = vrot.slane %v1661_v55, 2 }
 0x1d0   : > { %v1766_v15 = vrot.slane %v1765_v62, 4  ;;  %v1672_v39 = vrot.slane %v1671_v14, 2  ;;  %v5309_v0 = vmax.f32 %v5308_v41, %v4437_v59  ;;  %v1654_v34 = vrot.slane %v1653_v44, 1 }
 0x1d1   : > { %v1626_v27 = vrot.slane %v1625_v17, 1  ;;  %v1638_v29 = vrot.slane %v1637_v57, 1  ;;  %v1646_v42 = vrot.slane %v1645_v53, 1  ;;  %v1663_v5 = vmax.f32 %v1661_v55, %v1662_v40 }
 0x1d2   : > { %v1775_v26 = vmax.f32 %v5309_v0, %v1773_v48  ;;  %v1767_v10 = vmax.f32 %v1765_v62, %v1766_v15  ;;  %v1673_v21 = vmax.f32 %v1671_v14, %v1672_v39  ;;  %v4798_v54 = vmax.f32 %v1653_v44, %v1654_v34 }
 0x1d3   : > { %v1627_v49 = vmax.f32 %v1625_v17, %v1626_v27  ;;  %v1639_v8 = vmax.f32 %v1637_v57, %v1638_v29  ;;  %v1647_v4 = vmax.f32 %v1645_v53, %v1646_v42  ;;  %v1664_v24 = vrot.slane %v1663_v5, 1  ;;  %v5310_v53 = vld [vmem:[#allocation14_spill] sm:$0xff] }
 0x1d4   : > { %v1776_v30 = vrot.slane %v1775_v26, 4  ;;  %v1768_v11 = vrot.slane %v1767_v10, 2  ;;  %v1674_v58 = vrot.slane %v1673_v21, 1  ;;  %v1782_v62 = vsel %vm1598_vm4, %v4785_v18, -inf }
 0x1d5   : > { %v1678_v0 = vsel %vm1618_vm9, %v4603_v46, %v1627_v49  ;;  %v1791_v55 = vmax.f32 %v4716_v33, %v4785_v18  ;;  %v4806_v14 = vmax.f32 %v1663_v5, %v1664_v24  ;;  %v1783_v49 = vmax.f32 %v4437_v59, %v1782_v62  ;;  %v5311_v5 = vld [vmem:[#allocation18_spill] sm:$0xff] }
 0x1d6   : > { %v1777_v3 = vmax.f32 %v1775_v26, %v1776_v30  ;;  %v1769_v12 = vmax.f32 %v1767_v10, %v1768_v11  ;;  %v4808_v27 = vmax.f32 %v1673_v21, %v1674_v58  ;;  %v1679_v48 = vsel %vm637_vm1, %v1678_v0, %v1639_v8 }
 0x1d7   : > { %v4812_v57 = vsel %vm1630_vm10, %v1679_v48, %v1647_v4  ;;  %v1792_v46 = vrot.slane %v1791_v55, 4  ;;  %v1800_v15 = vmax.f32 %v4753_v37, %v4785_v18  ;;  %v1810_v33 = vmax.f32 %v4757_v13, %v4785_v18 }
 0x1d8   : > { %v1778_v17 = vrot.slane %v1777_v3, 2  ;;  %v1770_v26 = vrot.slane %v1769_v12, 1  ;;  %v1875_v40 = vmax.f32 %v1867_v52, %v5310_v53  ;;  %v1784_v41 = vrot.slane %v1783_v49, 4 }
 0x1d9   : > { %v1793_v29 = vmax.f32 %v1791_v55, %v1792_v46  ;;  %v1937_v34 = vsel %vm1616_vm6, %v4457_v47, -inf  ;;  %v1801_v42 = vmax.f32 %v1800_v15, %v4676_v56  ;;  %v1811_v59 = vmax.f32 %v1810_v33, %v4685_v9 }
 0x1da   : > { %v1779_v44 = vmax.f32 %v1777_v3, %v1778_v17  ;;  %v1771_v39 = vmax.f32 %v1769_v12, %v1770_v26  ;;  %v1883_v21 = vmax.f32 %v1875_v40, %v5311_v5  ;;  %v1785_v30 = vmax.f32 %v1783_v49, %v1784_v41 }
 0x1db   : > { %v1794_v37 = vrot.slane %v1793_v29, 2  ;;  %v1947_v18 = vsel %vm1628_vm7, %v4457_v47, -inf  ;;  %v1802_v8 = vrot.slane %v1801_v42, 4  ;;  %v1812_v11 = vrot.slane %v1811_v59, 4 }
 0x1dc   : > { %v1780_v10 = vrot.slane %v1779_v44, 1  ;;  %v1819_v13 = vsel %vm1618_vm9, %v4608_v23, %v1771_v39  ;;  %v1902_v4 = vsel %vm1618_vm9, %v1883_v21, -inf  ;;  %v1786_v24 = vrot.slane %v1785_v30, 2 }
 0x1dd   : > { %v1795_v58 = vmax.f32 %v1793_v29, %v1794_v37  ;;  %v5312_v56 = vmax.f32 %v4524_v25, %v4457_v47  ;;  %v1912_v3 = vsel %vm1630_vm10, %v1883_v21, -inf  ;;  %v1803_v0 = vmax.f32 %v1801_v42, %v1802_v8 }
 0x1de   : > { %v1781_v52 = vmax.f32 %v1779_v44, %v1780_v10  ;;  %v1813_v12 = vmax.f32 %v1811_v59, %v1812_v11  ;;  %v5313_v62 = vmax.f32 %v4530_v43, %v4457_v47  ;;  %v1787_v48 = vmax.f32 %v1785_v30, %v1786_v24 }
 0x1df   : > { %v1904_v9 = vmax.f32 %v5312_v56, %v1902_v4  ;;  %v1796_v17 = vrot.slane %v1795_v58, 1  ;;  %v1921_v49 = vsel %vm1598_vm4, %v1883_v21, -inf  ;;  %v1804_v46 = vrot.slane %v1803_v0, 2 }
 0x1e0   : > { %v1820_v23 = vsel %vm637_vm1, %v1819_v13, %v1781_v52  ;;  %v1914_v55 = vmax.f32 %v5313_v62, %v1912_v3  ;;  %v1814_v44 = vrot.slane %v1813_v12, 2  ;;  %v1922_v25 = vmax.f32 %v4457_v47, %v1921_v49  ;;  %v5315_v49 = vld [vmem:[#allocation30_spill] sm:$0xff] }
 0x1e1   : > { %v1905_v26 = vrot.slane %v1904_v9, 4  ;;  %v1788_v33 = vrot.slane %v1787_v48, 1  ;;  %v4840_v40 = vmax.f32 %v1795_v58, %v1796_v17  ;;  %v1930_v41 = vmax.f32 %v4763_v22, %v1883_v21 }
 0x1e2   : > { %v1915_v15 = vrot.slane %v1914_v55, 4  ;;  %v1805_v29 = vmax.f32 %v1803_v0, %v1804_v46  ;;  %v1815_v10 = vmax.f32 %v1813_v12, %v1814_v44  ;;  %v1923_v42 = vrot.slane %v1922_v25, 4 }
 0x1e3   : > { %v1906_v39 = vmax.f32 %v1904_v9, %v1905_v26  ;;  %v1789_v59 = vmax.f32 %v1787_v48, %v1788_v33  ;;  %v1931_v37 = vrot.slane %v1930_v41, 4  ;;  %v1939_v13 = vmax.f32 %v1937_v34, %v1883_v21  ;;  %v5314_v26 = vld [vmem:[#allocation31_spill] sm:$0xff] }
 0x1e4   : > { %v1916_v43 = vmax.f32 %v1914_v55, %v1915_v15  ;;  %v1806_v52 = vrot.slane %v1805_v29, 1  ;;  %v1816_v8 = vrot.slane %v1815_v10, 1  ;;  %v1924_v4 = vmax.f32 %v1922_v25, %v1923_v42 }
 0x1e5   : > { %v1907_v30 = vrot.slane %v1906_v39, 2  ;;  %v4844_v47 = vsel %vm1630_vm10, %v1820_v23, %v1789_v59  ;;  %v1932_v58 = vmax.f32 %v1930_v41, %v1931_v37  ;;  %v1940_v56 = vmax.f32 %v1939_v13, %v4719_v35 }
 0x1e6   : > { %v1917_v11 = vrot.slane %v1916_v43, 2  ;;  %v4847_v22 = vmax.f32 %v1805_v29, %v1806_v52  ;;  %v4849_v9 = vmax.f32 %v1815_v10, %v1816_v8  ;;  %v1925_v0 = vrot.slane %v1924_v4, 2  ;;  %v5316_v8 = vld [vmem:[#allocation11_spill] sm:$0xff] }
 0x1e7   : > { %v1908_v24 = vmax.f32 %v1906_v39, %v1907_v30  ;;  %v1933_v62 = vrot.slane %v1932_v58, 2  ;;  %v1941_v34 = vrot.slane %v1940_v56, 4  ;;  %v1949_v55 = vmax.f32 %v1947_v18, %v1883_v21 }
 0x1e8   : > { %v1918_v3 = vmax.f32 %v1916_v43, %v1917_v11  ;;  %v1926_v17 = vmax.f32 %v1924_v4, %v1925_v0  ;;  %v1990_v23 = vmax.f32 %v5314_v26, %v4702_v32  ;;  %v2068_v46 = vsel %vm1607_vm5, %v5315_v49, -inf  ;;  %v5317_v11 = vld [vmem:[#allocation33_spill] sm:$0xff] }
 0x1e9   : > { %v1909_v12 = vrot.slane %v1908_v24, 1  ;;  %v1934_v35 = vmax.f32 %v1932_v58, %v1933_v62  ;;  %v1942_v15 = vmax.f32 %v1940_v56, %v1941_v34  ;;  %v1950_v25 = vmax.f32 %v1949_v55, %v4722_v45 }
 0x1ea   : > { %v1919_v48 = vrot.slane %v1918_v3, 1  ;;  %v1927_v39 = vrot.slane %v1926_v17, 1  ;;  %v1994_v41 = vmax.f32 %v1990_v23, %v5304_v2  ;;  %v2076_v21 = vsel %vm1616_vm6, %v5315_v49, -inf }
 0x1eb   : > { %v1910_v44 = vmax.f32 %v1908_v24, %v1909_v12  ;;  %v1935_v18 = vrot.slane %v1934_v35, 1  ;;  %v1943_v29 = vrot.slane %v1942_v15, 2  ;;  %v1951_v10 = vrot.slane %v1950_v25, 4 }
 0x1ec   : > { %v1920_v33 = vmax.f32 %v1918_v3, %v1919_v48  ;;  %v1928_v43 = vmax.f32 %v1926_v17, %v1927_v39  ;;  %v1998_v59 = vmax.f32 %v1994_v41, %v5305_v19  ;;  %v2086_v45 = vsel %vm1628_vm7, %v5315_v49, -inf  ;;  %v5319_v3 = vld [vmem:[#allocation15_spill] sm:$0xff] }
 0x1ed   : > { %v1958_v32 = vsel %vm1618_vm9, %v4611_v60, %v1910_v44  ;;  %v4865_v30 = vmax.f32 %v1934_v35, %v1935_v18  ;;  %v1944_v2 = vmax.f32 %v1942_v15, %v1943_v29  ;;  %v1952_v37 = vmax.f32 %v1950_v25, %v1951_v10  ;;  %v5321_v35 = vld [vmem:[#allocation22_spill] sm:$0xff] }
 0x1ee   : > { %v1959_v42 = vsel %vm637_vm1, %v1958_v32, %v1920_v33  ;;  %v2180_v13 = vsel %vm1618_vm9, %v4741_v61, -inf  ;;  %v2002_v60 = vmax.f32 %v1998_v59, %v5310_v53  ;;  %v5318_v4 = vmax.f32 %v5316_v8, %v5317_v11  ;;  %v5322_v10 = vld [vmem:[#allocation26_spill] sm:$0xff] }
 0x1ef   : > { %v4870_v52 = vsel %vm1630_vm10, %v1959_v42, %v1928_v43  ;;  %v2190_v19 = vsel %vm1630_vm10, %v4741_v61, -inf  ;;  %v1945_v58 = vrot.slane %v1944_v2, 1  ;;  %v1953_v56 = vrot.slane %v1952_v37, 2 }
 0x1f0   : > { %v2182_v24 = vmax.f32 %v5318_v4, %v2180_v13  ;;  %v5320_v0 = vmax.f32 %v5319_v3, %v5317_v11  ;;  %v2199_v62 = vsel %vm1598_vm4, %v4741_v61, -inf  ;;  %v2006_v34 = vmax.f32 %v2002_v60, %v5311_v5 }
 0x1f1   : > { %v2200_v53 = vmax.f32 %v5317_v11, %v2199_v62  ;;  %v2207_v48 = vsel %vm1607_vm5, %v5317_v11, -inf  ;;  %v4887_v17 = vmax.f32 %v1944_v2, %v1945_v58  ;;  %v1954_v26 = vmax.f32 %v1952_v37, %v1953_v56  ;;  %v5323_v58 = vld [vmem:[#allocation4_spill] sm:$0xff] }
 0x1f2   : > { %v2192_v12 = vmax.f32 %v5320_v0, %v2190_v19  ;;  %v2183_v55 = vrot.slane %v2182_v24, 4  ;;  %v2208_v44 = vmax.f32 %v2207_v48, %v4741_v61  ;;  %v2014_v15 = vmax.f32 %v2006_v34, %v5321_v35 }
 0x1f3   : > { %v2201_v33 = vrot.slane %v2200_v53, 4  ;;  %v2215_v39 = vsel %vm1616_vm6, %v5317_v11, -inf  ;;  %v1955_v5 = vrot.slane %v1954_v26, 1  ;;  %v4897_v59 = vsel %vm1628_vm7, %v5317_v11, -inf  ;;  %v5325_v11 = vld [vmem:[#allocation19_spill] sm:$0xff] }
 0x1f4   : > { %v2193_v23 = vrot.slane %v2192_v12, 4  ;;  %v2184_v25 = vmax.f32 %v2182_v24, %v2183_v55  ;;  %v2209_v18 = vrot.slane %v2208_v44, 4  ;;  %v2217_v29 = vmax.f32 %v2215_v39, %v4741_v61 }
 0x1f5   : > { %v2022_v32 = vmax.f32 %v2014_v15, %v5322_v10  ;;  %v2202_v42 = vmax.f32 %v2200_v53, %v2201_v33  ;;  %v4899_v2 = vmax.f32 %v1954_v26, %v1955_v5  ;;  %v5324_v56 = vmax.f32 %v5323_v58, %v5315_v49 }
 0x1f6   : > { %v2194_v41 = vmax.f32 %v2192_v12, %v2193_v23  ;;  %v2185_v43 = vrot.slane %v2184_v25, 2  ;;  %v2210_v13 = vmax.f32 %v2208_v44, %v2209_v18  ;;  %v4902_v60 = vmax.f32 %v2217_v29, %v4668_v28 }
 0x1f7   : > { %v2041_v8 = vsel %vm1618_vm9, %v2022_v32, -inf  ;;  %v2051_v4 = vsel %vm1630_vm10, %v2022_v32, -inf  ;;  %v2060_v24 = vsel %vm1598_vm4, %v2022_v32, -inf  ;;  %v2069_v19 = vmax.f32 %v2068_v46, %v2022_v32 }
 0x1f8   : > { %v2195_v37 = vrot.slane %v2194_v41, 2  ;;  %v2043_v3 = vmax.f32 %v5324_v56, %v2041_v8  ;;  %v5326_v0 = vmax.f32 %v5325_v11, %v5315_v49  ;;  %v2061_v62 = vmax.f32 %v5315_v49, %v2060_v24 }
 0x1f9   : > { %v2078_v34 = vmax.f32 %v2076_v21, %v2022_v32  ;;  %v2070_v28 = vrot.slane %v2069_v19, 4  ;;  %v2088_v55 = vmax.f32 %v2086_v45, %v2022_v32  ;;  %v2186_v53 = vmax.f32 %v2184_v25, %v2185_v43 }
 0x1fa   : > { %v2053_v12 = vmax.f32 %v5326_v0, %v2051_v4  ;;  %v2196_v48 = vmax.f32 %v2194_v41, %v2195_v37  ;;  %v2044_v26 = vrot.slane %v2043_v3, 4  ;;  %v2062_v44 = vrot.slane %v2061_v62, 4 }
 0x1fb   : > { %v2079_v46 = vmax.f32 %v2078_v34, %v4766_v31  ;;  %v2071_v35 = vmax.f32 %v2069_v19, %v2070_v28  ;;  %v2089_v15 = vmax.f32 %v2088_v55, %v4769_v7  ;;  %v2187_v33 = vrot.slane %v2186_v53, 1 }
 0x1fc   : > { %v2054_v23 = vrot.slane %v2053_v12, 4  ;;  %v2197_v39 = vrot.slane %v2196_v48, 1  ;;  %v2045_v5 = vmax.f32 %v2043_v3, %v2044_v26  ;;  %v2063_v29 = vmax.f32 %v2061_v62, %v2062_v44 }
 0x1fd   : > { %v2080_v10 = vrot.slane %v2079_v46, 4  ;;  %v2072_v49 = vrot.slane %v2071_v35, 2  ;;  %v2090_v21 = vrot.slane %v2089_v15, 4  ;;  %v4916_v8 = vmax.f32 %v2186_v53, %v2187_v33 }
 0x1fe   : > { %v2055_v18 = vmax.f32 %v2053_v12, %v2054_v23  ;;  %v4918_v45 = vmax.f32 %v2196_v48, %v2197_v39  ;;  %v2046_v25 = vrot.slane %v2045_v5, 2  ;;  %v2064_v32 = vrot.slane %v2063_v29, 2 }
 0x1ff   : > { %v2081_v43 = vmax.f32 %v2079_v46, %v2080_v10  ;;  %v2073_v31 = vmax.f32 %v2071_v35, %v2072_v49  ;;  %v2091_v37 = vmax.f32 %v2089_v15, %v2090_v21  ;;  %v2203_v4 = vrot.slane %v2202_v42, 2 }
 0x200   : > { %v2056_v41 = vrot.slane %v2055_v18, 2  ;;  %v2211_v7 = vrot.slane %v2210_v13, 2  ;;  %v2047_v24 = vmax.f32 %v2045_v5, %v2046_v25  ;;  %v2065_v58 = vmax.f32 %v2063_v29, %v2064_v32 }
 0x201   : > { %v2082_v56 = vrot.slane %v2081_v43, 2  ;;  %v2074_v3 = vrot.slane %v2073_v31, 1  ;;  %v2092_v11 = vrot.slane %v2091_v37, 2  ;;  %v2204_v0 = vmax.f32 %v2202_v42, %v2203_v4  ;;  %v5328_v4 = vld [vmem:[#allocation8_spill] sm:$0xff] }
 0x202   : > { %v2057_v19 = vmax.f32 %v2055_v18, %v2056_v41  ;;  %v2212_v12 = vmax.f32 %v2210_v13, %v2211_v7  ;;  %v2048_v62 = vrot.slane %v2047_v24, 1  ;;  %v2066_v28 = vrot.slane %v2065_v58, 1 }
 0x203   : > { %v2083_v55 = vmax.f32 %v2081_v43, %v2082_v56  ;;  %v4920_v53 = vmax.f32 %v2073_v31, %v2074_v3  ;;  %v2093_v48 = vmax.f32 %v2091_v37, %v2092_v11  ;;  %v2205_v26 = vrot.slane %v2204_v0, 1 }
 0x204   : > { %v2058_v34 = vrot.slane %v2057_v19, 1  ;;  %v2213_v23 = vrot.slane %v2212_v12, 1  ;;  %v2049_v44 = vmax.f32 %v2047_v24, %v2048_v62  ;;  %v4922_v35 = vmax.f32 %v2065_v58, %v2066_v28 }
 0x205   : > { %v2084_v15 = vrot.slane %v2083_v55, 1  ;;  %v2094_v33 = vrot.slane %v2093_v48, 1  ;;  %v4924_v39 = vmax.f32 %v2204_v0, %v2205_v26  ;;  %v2219_v42 = vrot.slane %v4902_v60, 4 }
 0x206   : > { %v2059_v46 = vmax.f32 %v2057_v19, %v2058_v34  ;;  %v4926_v5 = vmax.f32 %v2212_v12, %v2213_v23  ;;  %v2097_v18 = vsel %vm1618_vm9, %v4614_v63, %v2049_v44  ;;  %v2227_v29 = vmax.f32 %v4897_v59, %v4741_v61 }
 0x207   : > { %v4929_v13 = vmax.f32 %v2083_v55, %v2084_v15  ;;  %v2319_v10 = vsel %vm1618_vm9, %v4734_v1, -inf  ;;  %v4937_v49 = vmax.f32 %v2093_v48, %v2094_v33  ;;  %v2220_v25 = vmax.f32 %v4902_v60, %v2219_v42 }
 0x208   : > { %v4940_v21 = vsel %vm637_vm1, %v2097_v18, %v2059_v46  ;;  %v5327_v41 = vmax.f32 %v4568_v16, %v4431_v38  ;;  %v2228_v43 = vmax.f32 %v2227_v29, %v4673_v50  ;;  %v2329_v63 = vsel %vm1630_vm10, %v4734_v1, -inf }
 0x209   : > { %v2338_v61 = vsel %vm1598_vm4, %v4734_v1, -inf  ;;  %v2346_v59 = vsel %vm1607_vm5, %v4431_v38, -inf  ;;  %v2221_v31 = vrot.slane %v2220_v25, 2  ;;  %v5329_v60 = vmax.f32 %v5328_v4, %v4431_v38 }
 0x20a   : > { %v2321_v32 = vmax.f32 %v5327_v41, %v2319_v10  ;;  %v2339_v16 = vmax.f32 %v4431_v38, %v2338_v61  ;;  %v2229_v24 = vrot.slane %v2228_v43, 4  ;;  %v2347_v50 = vmax.f32 %v2346_v59, %v4734_v1 }
 0x20b   : > { %v2331_v7 = vmax.f32 %v5329_v60, %v2329_v63  ;;  %v2354_v19 = vsel %vm1616_vm6, %v4431_v38, -inf  ;;  %v2364_v58 = vsel %vm1628_vm7, %v4431_v38, -inf  ;;  %v2222_v56 = vmax.f32 %v2220_v25, %v2221_v31 }
 0x20c   : > { %v2322_v37 = vrot.slane %v2321_v32, 4  ;;  %v2340_v0 = vrot.slane %v2339_v16, 4  ;;  %v2230_v12 = vmax.f32 %v2228_v43, %v2229_v24  ;;  %v2348_v62 = vrot.slane %v2347_v50, 4 }
 0x20d   : > { %v2332_v11 = vrot.slane %v2331_v7, 4  ;;  %v2356_v34 = vmax.f32 %v2354_v19, %v4734_v1  ;;  %v2366_v28 = vmax.f32 %v2364_v58, %v4734_v1  ;;  %v2223_v55 = vrot.slane %v2222_v56, 1 }
 0x20e   : > { %v2323_v3 = vmax.f32 %v2321_v32, %v2322_v37  ;;  %v2341_v23 = vmax.f32 %v2339_v16, %v2340_v0  ;;  %v2231_v44 = vrot.slane %v2230_v12, 2  ;;  %v2349_v46 = vmax.f32 %v2347_v50, %v2348_v62 }
 0x20f   : > { %v2333_v26 = vmax.f32 %v2331_v7, %v2332_v11  ;;  %v2357_v15 = vmax.f32 %v2356_v34, %v4679_v51  ;;  %v2367_v38 = vmax.f32 %v2366_v28, %v4682_v6  ;;  %v4966_v33 = vmax.f32 %v2222_v56, %v2223_v55  ;;  %v5330_v7 = vld [vmem:[#allocation34_spill] sm:$0xff] }
 0x210   : > { %v2324_v48 = vrot.slane %v2323_v3, 2  ;;  %v2342_v29 = vrot.slane %v2341_v23, 2  ;;  %v2232_v10 = vmax.f32 %v2230_v12, %v2231_v44  ;;  %v2350_v25 = vrot.slane %v2349_v46, 2 }
 0x211   : > { %v2334_v18 = vrot.slane %v2333_v26, 2  ;;  %v2358_v41 = vrot.slane %v2357_v15, 4  ;;  %v2368_v32 = vrot.slane %v2367_v38, 4  ;;  %v2458_v61 = vsel %vm1618_vm9, %v4728_v36, -inf }
 0x212   : > { %v2325_v42 = vmax.f32 %v2323_v3, %v2324_v48  ;;  %v4968_v63 = vmax.f32 %v2341_v23, %v2342_v29  ;;  %v2233_v59 = vrot.slane %v2232_v10, 1  ;;  %v4972_v51 = vmax.f32 %v2349_v46, %v2350_v25 }
 0x213   : > { %v2335_v43 = vmax.f32 %v2333_v26, %v2334_v18  ;;  %v2359_v6 = vmax.f32 %v2357_v15, %v2358_v41  ;;  %v2369_v31 = vmax.f32 %v2367_v38, %v2368_v32  ;;  %v5331_v16 = vmax.f32 %v4585_v20, %v5330_v7  ;;  %v5332_v20 = vld [vmem:[#allocation23_spill] sm:$0xff] }
 0x214   : > { %v2326_v1 = vrot.slane %v2325_v42, 1  ;;  %v2344_v60 = vrot.slane %v4968_v63, 1  ;;  %v4980_v50 = vmax.f32 %v2232_v10, %v2233_v59  ;;  %v2352_v19 = vrot.slane %v4972_v51, 1 }
 0x215   : > { %v2336_v4 = vrot.slane %v2335_v43, 1  ;;  %v2460_v24 = vmax.f32 %v5331_v16, %v2458_v61  ;;  %v2360_v58 = vrot.slane %v2359_v6, 2  ;;  %v2370_v56 = vrot.slane %v2369_v31, 2  ;;  %v5334_v61 = vld [vmem:[#allocation6_spill] sm:$0xff]  ;;  %v5336_v16 = vld [vmem:[#allocation36_spill] sm:$0xff] }
 0x216   : > { %v4974_v37 = vmax.f32 %v2325_v42, %v2326_v1  ;;  %v2468_v0 = vsel %vm1630_vm10, %v4728_v36, -inf  ;;  %v2477_v12 = vsel %vm1598_vm4, %v4728_v36, -inf  ;;  %v5333_v28 = vmax.f32 %v5332_v20, %v5330_v7 }
 0x217   : > { %v4983_v3 = vmax.f32 %v2335_v43, %v2336_v4  ;;  %v2461_v11 = vrot.slane %v2460_v24, 4  ;;  %v2361_v62 = vmax.f32 %v2359_v6, %v2360_v58  ;;  %v4989_v34 = vmax.f32 %v2369_v31, %v2370_v56  ;;  %v3200_v43 = vld [vmem:[%s5127_s2] ss:$0 sm:$0xff]  ;;  %v5335_v4 = vld [vmem:[#allocation5_spill] sm:$0xff] }
 0x218   : > { %v2470_v55 = vmax.f32 %v5333_v28, %v2468_v0  ;;  %v2478_v48 = vmax.f32 %v5330_v7, %v2477_v12  ;;  %v2485_v23 = vsel %vm1607_vm5, %v5330_v7, -inf  ;;  %v2493_v44 = vsel %vm1616_vm6, %v5330_v7, -inf }
 0x219   : > { %v2462_v26 = vmax.f32 %v2460_v24, %v2461_v11  ;;  %v2503_v46 = vsel %vm1628_vm7, %v5330_v7, -inf  ;;  %v2362_v15 = vrot.slane %v2361_v62, 1  ;;  %v2372_v38 = vrot.slane %v4989_v34, 1 }
 0x21a   : > { %v2471_v42 = vrot.slane %v2470_v55, 4  ;;  %v2479_v18 = vrot.slane %v2478_v48, 4  ;;  %v2486_v10 = vmax.f32 %v2485_v23, %v4728_v36  ;;  %v2495_v25 = vmax.f32 %v2493_v44, %v4728_v36 }
 0x21b   : > { %v2463_v29 = vrot.slane %v2462_v26, 2  ;;  %v2505_v41 = vmax.f32 %v2503_v46, %v4728_v36  ;;  %v5009_v59 = vadd.f32 %v3200_v43, %v5334_v61  ;;  %v1682_v11 = vsel %vm1681_vm11, %v4812_v57, %v4798_v54  ;;  %v5339_v61 = vld [vmem:[#allocation38_spill] sm:$0xff] }
 0x21c   : > { %v2472_v32 = vmax.f32 %v2470_v55, %v2471_v42  ;;  %v2480_v1 = vmax.f32 %v2478_v48, %v2479_v18  ;;  %v2487_v31 = vrot.slane %v2486_v10, 4  ;;  %v2496_v7 = vmax.f32 %v2495_v25, %v5335_v4 }
 0x21d   : > { %v2464_v6 = vmax.f32 %v2462_v26, %v2463_v29  ;;  %v2506_v24 = vmax.f32 %v2505_v41, %v5336_v16  ;;  %v1376_v36 = vmax.f32 %v5009_v59, 0.0  ;;  %v1683_v48 = vsel %vm1598_vm4, %v1682_v11, %v4806_v14 }
 0x21e   : > { %v2473_v58 = vrot.slane %v2472_v32, 2  ;;  %v2481_v56 = vrot.slane %v2480_v1, 2  ;;  %v2488_v12 = vmax.f32 %v2486_v10, %v2487_v31  ;;  %v2497_v20 = vrot.slane %v2496_v7, 4 }
 0x21f   : > { %v2465_v0 = vrot.slane %v2464_v6, 1  ;;  %v2507_v28 = vrot.slane %v2506_v24, 4  ;;  %v1822_v26 = vsel %vm1681_vm11, %v4844_v47, %v4840_v40  ;;  %v1685_v46 = vsel %vm1684_vm12, %v1683_v48, %v4808_v27  ;;  %v5344_v48 = vld [vmem:[#allocation24_spill] sm:$0xff] }
 0x220   : > { %v2474_v55 = vmax.f32 %v2472_v32, %v2473_v58  ;;  %v2489_v57 = vrot.slane %v2488_v12, 2  ;;  %v2498_v23 = vmax.f32 %v2496_v7, %v2497_v20  ;;  %v1823_v42 = vsel %vm1598_vm4, %v1822_v26, %v4847_v22  ;;  %2659 = vst [vmem:[%s5021_s22] sm:$0xff] %v1685_v46  ;;  %v5341_v20 = vld [vmem:[#allocation16_spill] sm:$0xff] }
 0x221   : > { %v2466_v54 = vmax.f32 %v2464_v6, %v2465_v0  ;;  %v2508_v44 = vmax.f32 %v2506_v24, %v2507_v28  ;;  %v1961_v14 = vsel %vm1681_vm11, %v4870_v52, %v4865_v30  ;;  %v2099_v40 = vsel %vm1630_vm10, %v4940_v21, %v4922_v35  ;;  %v5337_v52 = vld [vmem:[#allocation12_spill] sm:$0xff] }
 0x222   : > { %v2499_v47 = vrot.slane %v2498_v23, 2  ;;  %v1824_v29 = vsel %vm1684_vm12, %v1823_v42, %v4849_v9  ;;  %v1962_v27 = vsel %vm1598_vm4, %v1961_v14, %v4887_v17  ;;  %v2100_v30 = vsel %vm1681_vm11, %v2099_v40, %v4920_v53  ;;  %v5340_v6 = vld [vmem:[#allocation32_spill] sm:$0xff] }
 0x223   : > { %v2509_v18 = vrot.slane %v2508_v44, 2  ;;  %v1963_v22 = vsel %vm1684_vm12, %v1962_v27, %v4899_v2  ;;  %v2236_v10 = vsel %vm1618_vm9, %v5337_v52, %v4916_v8  ;;  %v2345_v35 = vmax.f32 %v4968_v63, %v2344_v60  ;;  %2660 = vst [vmem:[%s5021_s22 + $0x8] sm:$0xff] %v1824_v29  ;;  %v5338_v60 = vld [vmem:[#allocation20_spill] sm:$0xff] }
 0x224   : > { %v2101_v9 = vsel %vm1598_vm4, %v2100_v30, %v4929_v13  ;;  %v2237_v17 = vsel %vm637_vm1, %v2236_v10, %v4918_v45  ;;  %v2353_v2 = vmax.f32 %v4972_v51, %v2352_v19  ;;  %v2363_v53 = vmax.f32 %v2361_v62, %v2362_v15  ;;  %2661 = vst [vmem:[%s5021_s22 + $0x10] sm:$0xff] %v1963_v22 }
 0x225   : > { %v2102_v8 = vsel %vm1684_vm12, %v2101_v9, %v4937_v49  ;;  %v2238_v21 = vsel %vm1630_vm10, %v2237_v17, %v4924_v39  ;;  %v2373_v63 = vmax.f32 %v4989_v34, %v2372_v38  ;;  %v2375_v13 = vsel %vm1618_vm9, %v5338_v60, %v4974_v37 }
 0x226   : > { %v2239_v45 = vsel %vm1681_vm11, %v2238_v21, %v4926_v5  ;;  %v2376_v51 = vsel %vm637_vm1, %v2375_v13, %v4983_v3  ;;  %v2475_v19 = vrot.slane %v2474_v55, 1  ;;  %v2482_v62 = vmax.f32 %v2480_v1, %v2481_v56  ;;  %2662 = vst [vmem:[%s5021_s22 + $0x18] sm:$0xff] %v2102_v8 }
 0x227   : > { %v2240_v49 = vsel %vm1598_vm4, %v2239_v45, %v4966_v33  ;;  %v2377_v39 = vsel %vm1630_vm10, %v2376_v51, %v2345_v35  ;;  %v2490_v34 = vmax.f32 %v2488_v12, %v2489_v57  ;;  %v2500_v15 = vmax.f32 %v2498_v23, %v2499_v47 }
 0x228   : > { %v2241_v37 = vsel %vm1684_vm12, %v2240_v49, %v4980_v50  ;;  %v2378_v38 = vsel %vm1681_vm11, %v2377_v39, %v2353_v2  ;;  %v2476_v5 = vmax.f32 %v2474_v55, %v2475_v19  ;;  %v2483_v25 = vrot.slane %v2482_v62, 1 }
 0x229   : > { %v2379_v3 = vsel %vm1598_vm4, %v2378_v38, %v2363_v53  ;;  %v2491_v41 = vrot.slane %v2490_v34, 1  ;;  %v2501_v32 = vrot.slane %v2500_v15, 1  ;;  %v2510_v1 = vmax.f32 %v2508_v44, %v2509_v18  ;;  %2663 = vst [vmem:[%s5021_s22 + $0x20] sm:$0xff] %v2241_v37  ;;  %v5346_v18 = vld [vmem:[#allocation9_spill] sm:$0xff] }
 0x22a   : > { %v2380_v33 = vsel %vm1684_vm12, %v2379_v3, %v2373_v63  ;;  %v2484_v43 = vmax.f32 %v2482_v62, %v2483_v25  ;;  %v2514_v59 = vsel %vm1618_vm9, %v5339_v61, %v2466_v54  ;;  %v2578_v31 = vmax.f32 %v5340_v6, %v1376_v36  ;;  %v5342_v36 = vld [vmem:[#allocation35_spill] sm:$0xff]  ;;  %v5347_v6 = vld [vmem:[#allocation13_spill] sm:$0xff] }
 0x22b   : > { %v2492_v50 = vmax.f32 %v2490_v34, %v2491_v41  ;;  %v2502_v4 = vmax.f32 %v2500_v15, %v2501_v32  ;;  %v2511_v7 = vrot.slane %v2510_v1, 1  ;;  %v2515_v16 = vsel %vm637_vm1, %v2514_v59, %v2476_v5  ;;  %2664 = vst [vmem:[%s5021_s22 + $0x28] sm:$0xff] %v2380_v33 }
 0x22c   : > { %v2516_v24 = vsel %vm1630_vm10, %v2515_v16, %v2484_v43  ;;  %v2597_v58 = vsel %vm1618_vm9, %v2578_v31, -inf  ;;  %v2607_v56 = vsel %vm1630_vm10, %v2578_v31, -inf  ;;  %v2616_v11 = vsel %vm1598_vm4, %v2578_v31, -inf }
 0x22d   : > { %v2512_v0 = vmax.f32 %v2510_v1, %v2511_v7  ;;  %v2517_v12 = vsel %vm1681_vm11, %v2516_v24, %v2492_v50  ;;  %v5343_v28 = vmax.f32 %v5341_v20, %v5342_v36  ;;  %v5345_v26 = vmax.f32 %v5344_v48, %v5342_v36 }
 0x22e   : > { %v2518_v57 = vsel %vm1598_vm4, %v2517_v12, %v2502_v4  ;;  %v2617_v23 = vmax.f32 %v5342_v36, %v2616_v11  ;;  %v2624_v44 = vsel %vm1607_vm5, %v5342_v36, -inf  ;;  %v2632_v46 = vsel %vm1616_vm6, %v5342_v36, -inf }
 0x22f   : > { %v2599_v55 = vmax.f32 %v5343_v28, %v2597_v58  ;;  %v2609_v54 = vmax.f32 %v5345_v26, %v2607_v56  ;;  %v2519_v42 = vsel %vm1684_vm12, %v2518_v57, %v2512_v0  ;;  %v2625_v47 = vmax.f32 %v2624_v44, %v2578_v31 }
 0x230   : > { %v2633_v29 = vsel %vm1618_vm9, %v5346_v18, -inf  ;;  %v2618_v27 = vrot.slane %v2617_v23, 4  ;;  %v2634_v22 = vmax.f32 %v2632_v46, %v2578_v31  ;;  %v2642_v30 = vsel %vm1628_vm7, %v5342_v36, -inf  ;;  %2665 = vst [vmem:[%s5021_s22 + $0x30] sm:$0xff] %v2519_v42 }
 0x231   : > { %v2600_v14 = vrot.slane %v2599_v55, 4  ;;  %v2610_v40 = vrot.slane %v2609_v54, 4  ;;  %v2626_v35 = vrot.slane %v2625_v47, 4  ;;  %v2644_v9 = vmax.f32 %v2642_v30, %v2578_v31 }
 0x232   : > { %v2643_v17 = vsel %vm1630_vm10, %v5346_v18, -inf  ;;  %v2619_v2 = vmax.f32 %v2617_v23, %v2618_v27  ;;  %v2635_v53 = vmax.f32 %v2634_v22, %v2633_v29 }
 0x233   : > { %v2601_v52 = vmax.f32 %v2599_v55, %v2600_v14  ;;  %v2611_v10 = vmax.f32 %v2609_v54, %v2610_v40  ;;  %v2627_v63 = vmax.f32 %v2625_v47, %v2626_v35  ;;  %v2645_v60 = vmax.f32 %v2644_v9, %v2643_v17 }
 0x234   : > { %v2620_v13 = vrot.slane %v2619_v2, 2  ;;  %v2636_v45 = vrot.slane %v2635_v53, 4 }
 0x235   : > { %v2602_v8 = vrot.slane %v2601_v52, 2  ;;  %v2612_v21 = vrot.slane %v2611_v10, 2  ;;  %v2628_v62 = vrot.slane %v2627_v63, 2  ;;  %v2646_v49 = vrot.slane %v2645_v60, 4 }
 0x236   : > { %v2621_v39 = vmax.f32 %v2619_v2, %v2620_v13  ;;  %v2637_v34 = vmax.f32 %v2635_v53, %v2636_v45 }
 0x237   : > { %v2603_v51 = vmax.f32 %v2601_v52, %v2602_v8  ;;  %v2613_v19 = vmax.f32 %v2611_v10, %v2612_v21  ;;  %v2629_v38 = vmax.f32 %v2627_v63, %v2628_v62  ;;  %v2647_v5 = vmax.f32 %v2645_v60, %v2646_v49 }
 0x238   : > { %v2622_v25 = vrot.slane %v2621_v39, 1  ;;  %v2638_v3 = vrot.slane %v2637_v34, 2 }
 0x239   : > { %v2604_v15 = vrot.slane %v2603_v51, 1  ;;  %v2614_v37 = vrot.slane %v2613_v19, 1  ;;  %v2630_v1 = vrot.slane %v2629_v38, 1  ;;  %v2648_v33 = vrot.slane %v2647_v5, 2 }
 0x23a   : > { %v2639_v43 = vmax.f32 %v2637_v34, %v2638_v3  ;;  %v2623_v61 = vmax.f32 %v2621_v39, %v2622_v25 }
 0x23b   : > { %v2605_v41 = vmax.f32 %v2603_v51, %v2604_v15  ;;  %v2615_v32 = vmax.f32 %v2613_v19, %v2614_v37  ;;  %v2649_v59 = vmax.f32 %v2647_v5, %v2648_v33  ;;  %v2631_v50 = vmax.f32 %v2629_v38, %v2630_v1 }
 0x23c   : > { %v2640_v4 = vrot.slane %v2639_v43, 1 }
 0x23d   : > { %v2653_v31 = vsel %vm1618_vm9, %v5347_v6, %v2605_v41  ;;  %v2650_v16 = vrot.slane %v2649_v59, 1 }
 0x23e   : > { %v2654_v7 = vsel %vm637_vm1, %v2653_v31, %v2615_v32  ;;  %v2641_v58 = vmax.f32 %v2639_v43, %v2640_v4 }
 0x23f   : > { %v2655_v24 = vsel %vm1630_vm10, %v2654_v7, %v2623_v61  ;;  %v2651_v11 = vmax.f32 %v2649_v59, %v2650_v16 }
 0x240   : > { %v2656_v56 = vsel %vm1681_vm11, %v2655_v24, %v2631_v50 }
 0x241   : > { %v2657_v0 = vsel %vm1598_vm4, %v2656_v56, %v2641_v58 }
 0x242   : > { %v2658_v12 = vsel %vm1684_vm12, %v2657_v0, %v2651_v11 }
 0x243   : > { %2666 = vst [vmem:[%s5021_s22 + $0x38] sm:$0xff] %v2658_v12 }
 0x244 PF: > { %s13_s12 = sadd.s32 1, %s3207_s12  }
 0x245   : > { %p10_p4 = scmp.ge.s32.totalorder %s13_s12, 4  }
 0x247   :  { %12 = sbr.rel (!%p10_p4) target bundleno = 1 (0x1), region = 62 }

// kernel: net_forward.3
= control target key start
LH: loop header
LB: loop body
LE: loop exit
PB: predicated region body
PF: predicated region fallthrough
CT: control target
= control target key end

     0   :  { %v388_v2 = vmov 0.0|0.0   ;;  %vm87_vm0 = vcmask 130048   ;;  %vm270_vm1 = vcmask 80896   ;;  %s639_s1 = inlined_call_operand.vmem [shape: f32[400,10], index: 1, kind: input, shape index: {}]   ;;  %s640_s0 = inlined_call_operand.vmem [shape: f32[32,400], index: 0, kind: input, shape index: {}]   ;;  %s641_s2 = inlined_call_operand.vmem [shape: f32[1,10], index: 2, kind: input, shape index: {}]   ;;  %s642_s3 = inlined_call_operand.vmem [shape: f32[32,10], index: 3, kind: output, shape index: {}]  }
   0x1   :  { %v46_v0 = vld [vmem:[%s639_s1 + $0x80] sm:$0xff]  ;;  %v47_v1 = vld [vmem:[%s639_s1 + $0x88] sm:$0xff]  ;;  %360 = vmatprep.subr.bf16.mxu1 %v388_v2  ;;  %v48_v10 = vld [vmem:[%s639_s1 + $0x90] sm:$0xff] }
   0x2   :  { %v30_v3 = vld [vmem:[%s639_s1] sm:$0xff]  ;;  %v328_v4 = vpack.c.bf16 %v47_v1, %v46_v0  ;;  %v31_v5 = vld [vmem:[%s639_s1 + $0x8] sm:$0xff]  ;;  %v49_v11 = vld [vmem:[%s639_s1 + $0x98] sm:$0xff] }
   0x3   :  { %v62_v6 = vld [vmem:[%s639_s1 + $0x100] sm:$0xff]  ;;  %v63_v7 = vld [vmem:[%s639_s1 + $0x108] sm:$0xff]  ;;  %v330_v8 = vpack.c.bf16 %v31_v5, %v30_v3  ;;  %v32_v12 = vld [vmem:[%s639_s1 + $0x10] sm:$0xff]  ;;  %v332_v13 = vpack.c.bf16 %v49_v11, %v48_v10 }
   0x4   :  { %v361_v9 = vpack.c.bf16 %v63_v7, %v62_v6  ;;  %329 = vmatprep.subr.bf16.mxu0 %v328_v4  ;;  %v33_v14 = vld [vmem:[%s639_s1 + $0x18] sm:$0xff]  ;;  %v64_v15 = vld [vmem:[%s639_s1 + $0x110] sm:$0xff]  ;;  %v50_v19 = vld [vmem:[%s639_s1 + $0xa0] sm:$0xff] }
   0x5   :  { %v65_v16 = vld [vmem:[%s639_s1 + $0x118] sm:$0xff]  ;;  %331 = vmatpush3.bf16.msra.mxu0 %v330_v8  ;;  %v334_v17 = vpack.c.bf16 %v33_v14, %v32_v12  ;;  %v51_v20 = vld [vmem:[%s639_s1 + $0xa8] sm:$0xff]  ;;  %v34_v21 = vld [vmem:[%s639_s1 + $0x20] sm:$0xff] }
   0x6   :  { %362 = vmatpush1.bf16.msra.mxu1 %v361_v9  ;;  %v364_v18 = vpack.c.bf16 %v65_v16, %v64_v15  ;;  %333 = vmatprep.subr.bf16.mxu0 %v332_v13  ;;  %v336_v22 = vpack.c.bf16 %v51_v20, %v50_v19  ;;  %v35_v23 = vld [vmem:[%s639_s1 + $0x28] sm:$0xff]  ;;  %v66_v24 = vld [vmem:[%s639_s1 + $0x120] sm:$0xff]  ;;  %v52_v26 = vld [vmem:[%s639_s1 + $0xb0] sm:$0xff] }
   0x7   :  { %363 = vmatprep.subr.bf16.mxu1 %v388_v2  ;;  %v67_v25 = vld [vmem:[%s639_s1 + $0x128] sm:$0xff]  ;;  %v53_v27 = vld [vmem:[%s639_s1 + $0xb8] sm:$0xff]  ;;  %v338_v28 = vpack.c.bf16 %v35_v23, %v34_v21  ;;  %v36_v30 = vld [vmem:[%s639_s1 + $0x30] sm:$0xff] }
   0x8   :  { %v367_v29 = vpack.c.bf16 %v67_v25, %v66_v24  ;;  %v340_v31 = vpack.c.bf16 %v53_v27, %v52_v26  ;;  %v37_v32 = vld [vmem:[%s639_s1 + $0x38] sm:$0xff]  ;;  %v68_v33 = vld [vmem:[%s639_s1 + $0x130] sm:$0xff]  ;;  %v54_v35 = vld [vmem:[%s639_s1 + $0xc0] sm:$0xff] }
   0x9   :  { %335 = vmatpush3.bf16.msra.mxu0 %v334_v17  ;;  %v69_v34 = vld [vmem:[%s639_s1 + $0x138] sm:$0xff]  ;;  %v55_v36 = vld [vmem:[%s639_s1 + $0xc8] sm:$0xff]  ;;  %v342_v37 = vpack.c.bf16 %v37_v32, %v36_v30  ;;  %v38_v39 = vld [vmem:[%s639_s1 + $0x40] sm:$0xff] }
   0xa   :  { %365 = vmatpush1.bf16.msra.mxu1 %v364_v18  ;;  %337 = vmatprep.subr.bf16.mxu0 %v336_v22  ;;  %v370_v38 = vpack.c.bf16 %v69_v34, %v68_v33  ;;  %v344_v40 = vpack.c.bf16 %v55_v36, %v54_v35  ;;  %v39_v41 = vld [vmem:[%s639_s1 + $0x48] sm:$0xff]  ;;  %v70_v42 = vld [vmem:[%s639_s1 + $0x140] sm:$0xff]  ;;  %v56_v44 = vld [vmem:[%s639_s1 + $0xd0] sm:$0xff] }
   0xb   :  { %366 = vmatprep.subr.bf16.mxu1 %v388_v2  ;;  %v71_v43 = vld [vmem:[%s639_s1 + $0x148] sm:$0xff]  ;;  %v57_v45 = vld [vmem:[%s639_s1 + $0xd8] sm:$0xff]  ;;  %v346_v46 = vpack.c.bf16 %v39_v41, %v38_v39  ;;  %v40_v48 = vld [vmem:[%s639_s1 + $0x50] sm:$0xff] }
   0xc   :  { %v373_v47 = vpack.c.bf16 %v71_v43, %v70_v42  ;;  %v41_v49 = vld [vmem:[%s639_s1 + $0x58] sm:$0xff]  ;;  %v15_v50 = vld [vmem:[%s640_s0 + $0x8] sm:$0xff]  ;;  %v348_v51 = vpack.c.bf16 %v57_v45, %v56_v44  ;;  %v72_v52 = vld [vmem:[%s639_s1 + $0x150] sm:$0xff] }
   0xd   :  { %339 = vmatpush3.bf16.msra.mxu0 %v338_v28  ;;  %v73_v53 = vld [vmem:[%s639_s1 + $0x158] sm:$0xff]  ;;  %v58_v55 = vld [vmem:[%s639_s1 + $0xe0] sm:$0xff]  ;;  %v59_v56 = vld [vmem:[%s639_s1 + $0xe8] sm:$0xff]  ;;  %164 = vmatprep.mubr.f32.mxu0 %v15_v50  ;;  %v350_v57 = vpack.c.bf16 %v41_v49, %v40_v48 }
   0xe   :  { %368 = vmatpush1.bf16.msra.mxu1 %v367_v29  ;;  %341 = vmatprep.subr.bf16.mxu0 %v340_v31  ;;  %v17_v54 = vld [vmem:[%s640_s0 + $0x18] sm:$0xff]  ;;  %v376_v58 = vpack.c.bf16 %v73_v53, %v72_v52  ;;  %v42_v59 = vld [vmem:[%s639_s1 + $0x60] sm:$0xff]  ;;  %v352_v60 = vpack.c.bf16 %v59_v56, %v58_v55  ;;  %v43_v61 = vld [vmem:[%s639_s1 + $0x68] sm:$0xff] }
   0xf   :  { %369 = vmatprep.subr.bf16.mxu1 %v388_v2  ;;  %280 = vmatprep.mubr.msk.f32.mxu1 %vm87_vm0, %v17_v54  ;;  %v74_v62 = vld [vmem:[%s639_s1 + $0x160] sm:$0xff]  ;;  %v75_v63 = vld [vmem:[%s639_s1 + $0x168] sm:$0xff]  ;;  %v60_v0 = vld [vmem:[%s639_s1 + $0xf0] sm:$0xff]  ;;  %v354_v3 = vpack.c.bf16 %v43_v61, %v42_v59 }
  0x10   :  { %v61_v1 = vld [vmem:[%s639_s1 + $0xf8] sm:$0xff]  ;;  %v379_v4 = vpack.c.bf16 %v75_v63, %v74_v62  ;;  %v44_v5 = vld [vmem:[%s639_s1 + $0x70] sm:$0xff]  ;;  %v78_v12 = vld [vmem:[%s639_s1 + $0x180] sm:$0xff] }
  0x11   :  { %343 = vmatpush3.bf16.msra.mxu0 %v342_v37  ;;  %v356_v6 = vpack.c.bf16 %v61_v1, %v60_v0  ;;  %v45_v7 = vld [vmem:[%s639_s1 + $0x78] sm:$0xff]  ;;  %v76_v8 = vld [vmem:[%s639_s1 + $0x170] sm:$0xff]  ;;  %v79_v13 = vld [vmem:[%s639_s1 + $0x188] sm:$0xff] }
  0x12   :  { %371 = vmatpush1.bf16.msra.mxu1 %v370_v38  ;;  %345 = vmatprep.subr.bf16.mxu0 %v344_v40  ;;  %v77_v9 = vld [vmem:[%s639_s1 + $0x178] sm:$0xff]  ;;  %v358_v10 = vpack.c.bf16 %v45_v7, %v44_v5  ;;  %v14_v14 = vld [vmem:[%s640_s0] sm:$0xff]  ;;  %v385_v15 = vpack.c.bf16 %v79_v13, %v78_v12  ;;  %v19_v16 = vld [vmem:[%s640_s0 + $0x28] sm:$0xff] }
  0x13   :  { %372 = vmatprep.subr.bf16.mxu1 %v388_v2  ;;  %v382_v11 = vpack.c.bf16 %v77_v9, %v76_v8  ;;  %v18_v17 = vld [vmem:[%s640_s0 + $0x20] sm:$0xff]  ;;  %v16_v18 = vld [vmem:[%s640_s0 + $0x10] sm:$0xff]  ;;  %v23_v19 = vld [vmem:[%s640_s0 + $0x48] sm:$0xff] }
  0x14   :  { %v22_v20 = vld [vmem:[%s640_s0 + $0x40] sm:$0xff]  ;;  %v20_v21 = vld [vmem:[%s640_s0 + $0x30] sm:$0xff]  ;;  %v27_v22 = vld [vmem:[%s640_s0 + $0x68] sm:$0xff] }
  0x15   :  { %347 = vmatpush3.bf16.msra.mxu0 %v346_v46  ;;  %v25_v23 = vld [vmem:[%s640_s0 + $0x58] sm:$0xff]  ;;  %v26_v24 = vld [vmem:[%s640_s0 + $0x60] sm:$0xff]  ;;  %v24_v25 = vld [vmem:[%s640_s0 + $0x50] sm:$0xff] }
  0x16   :  { %374 = vmatpush1.bf16.msra.mxu1 %v373_v47  ;;  %349 = vmatprep.subr.bf16.mxu0 %v348_v51  ;;  %v29_v26 = vld [vmem:[%s640_s0 + $0x78] sm:$0xff]  ;;  %v28_v27 = vld [vmem:[%s640_s0 + $0x70] sm:$0xff]  ;;  %v279_v30 = vld [vmem:[%s641_s2] ss:$0 sm:$0xff] }
  0x17   :  { %375 = vmatprep.subr.bf16.mxu1 %v388_v2 }
  0x19   :  { %351 = vmatpush3.bf16.msra.mxu0 %v350_v57 }
  0x1a   :  { %377 = vmatpush1.bf16.msra.mxu1 %v376_v58  ;;  %353 = vmatprep.subr.bf16.mxu0 %v352_v60 }
  0x1b   :  { %378 = vmatprep.subr.bf16.mxu1 %v388_v2 }
  0x1d   :  { %355 = vmatpush3.bf16.msra.mxu0 %v354_v3 }
  0x1e   :  { %380 = vmatpush1.bf16.msra.mxu1 %v379_v4  ;;  %357 = vmatprep.subr.bf16.mxu0 %v356_v6 }
  0x1f   :  { %381 = vmatprep.subr.bf16.mxu1 %v388_v2 }
  0x21   :  { %359 = vmatpush3.bf16.msra.mxu0 %v358_v10 }
  0x22   :  { %383 = vmatpush1.bf16.msra.mxu1 %v382_v11 }
  0x23   :  { %384 = vmatprep.subr.bf16.mxu1 %v388_v2  ;;  %v21_v2 = vld [vmem:[%s640_s0 + $0x38] sm:$0xff] }
  0x24   :  { %165 = vmatmul.mubr.f32.vlgmr.msra.gmra.mrb[0].mxu0 %v14_v14 }
  0x25   :  { %169 = vmatprep.mubr.f32.mxu0 %v19_v16 }
  0x26   :  { %386 = vmatpush1.bf16.msra.mxu1 %v385_v15 }
  0x28   :  { %170 = vmatmul.mubr.f32.gmra.mrb[2].mxu0 %v18_v17 }
  0x29   :  { %250 = vmatmul.mubr.f32.vlgmr.msra.gmra.mrb[0].mxu1 %v16_v18  ;;  %174 = vmatprep.mubr.f32.mxu0 %v23_v19 }
  0x2a   :  { %281 = vmatprep.mubr.msk.f32.mxu1 %vm87_vm0, %v21_v2 }
  0x2c   :  { %175 = vmatmul.mubr.f32.gmra.mrb[4].mxu0 %v22_v20 }
  0x2d   :  { %255 = vmatmul.mubr.f32.gmra.mrb[2].mxu1 %v20_v21  ;;  %179 = vmatprep.mubr.f32.mxu0 %v27_v22 }
  0x2e   :  { %282 = vmatprep.mubr.msk.f32.mxu1 %vm87_vm0, %v25_v23 }
  0x30   :  { %180 = vmatmul.mubr.f32.gmra.mrb[6].mxu0 %v26_v24 }
  0x31   :  { %260 = vmatmul.mubr.f32.gmra.mrb[4].mxu1 %v24_v25 }
  0x32   :  { %283 = vmatprep.mubr.msk.f32.mxu1 %vm87_vm0, %v29_v26 }
  0x35   :  { %265 = vmatmul.mubr.f32.gmra.mrb[6].mxu1 %v28_v27 }
  0xf7   :  { %v316_v28 = vpop.f32.mrb[0].mxu0 }
  0xf8   :  { %v317_v29 = vpop.f32.mrb[1].mxu0 }
  0xf9   :  { %v318_v31 = vadd.f32 %v317_v29, %v316_v28 }
  0xfb   :  { %v319_v32 = vpop.f32.mrb[2].mxu0  ;;  %v167_v33 = vadd.f32 %v318_v31, %v279_v30 }
  0xfc   :  { %v251_v34 = vpop.f32.mrb[0].mxu1  ;;  %v320_v35 = vpop.f32.mrb[3].mxu0 }
  0xfd   :  { %v253_v36 = vpop.f32.mrb[1].mxu1  ;;  %v252_v37 = vadd.f32 %v251_v34, %v167_v33  ;;  %v321_v38 = vadd.f32 %v320_v35, %v319_v32 }
  0xff   :  { %271 = vst.msk [vmem:[%s642_s3] sm:$0xff] %vm270_vm1, %v252_v37  ;;  %v322_v39 = vpop.f32.mrb[4].mxu0  ;;  %v172_v40 = vadd.f32 %v321_v38, %v279_v30 }
 0x100   :  { %v256_v41 = vpop.f32.mrb[2].mxu1  ;;  %v323_v42 = vpop.f32.mrb[5].mxu0 }
 0x101   :  { %v258_v43 = vpop.f32.mrb[3].mxu1  ;;  %v257_v44 = vadd.f32 %v256_v41, %v172_v40  ;;  %v324_v45 = vadd.f32 %v323_v42, %v322_v39 }
 0x103   :  { %272 = vst.msk [vmem:[%s642_s3 + $0x8] sm:$0xff] %vm270_vm1, %v257_v44  ;;  %v325_v46 = vpop.f32.mrb[6].mxu0  ;;  %v177_v47 = vadd.f32 %v324_v45, %v279_v30 }
 0x104   :  { %v261_v48 = vpop.f32.mrb[4].mxu1  ;;  %v326_v49 = vpop.f32.mrb[7].mxu0 }
 0x105   :  { %v263_v50 = vpop.f32.mrb[5].mxu1  ;;  %v262_v51 = vadd.f32 %v261_v48, %v177_v47  ;;  %v327_v52 = vadd.f32 %v326_v49, %v325_v46 }
 0x107   :  { %273 = vst.msk [vmem:[%s642_s3 + $0x10] sm:$0xff] %vm270_vm1, %v262_v51  ;;  %v182_v53 = vadd.f32 %v327_v52, %v279_v30 }
 0x108   :  { %v266_v54 = vpop.f32.mrb[6].mxu1 }
 0x109   :  { %v268_v55 = vpop.f32.mrb[7].mxu1  ;;  %v267_v56 = vadd.f32 %v266_v54, %v182_v53 }
 0x10b   :  { %274 = vst.msk [vmem:[%s642_s3 + $0x18] sm:$0xff] %vm270_vm1, %v267_v56 }

</bundles_post_ra>
